<compile_context>
chip_gen: v7x
topology: tpu7x:2x2x1
jax: 0.10.0
libtpu: 0.0.40
codegen_flags: <defaults>
</compile_context>

<pallas_src>
import functools

import jax
import jax.numpy as jnp
from jax import lax
from jax.experimental import pallas as pl
from jax.experimental.pallas import tpu as pltpu

NUM_CLASSES = 5
BN_EPS = 1e-3

C_STEM = 8     # stem output channels
C_EXP = 32     # MBConv expanded channels
C_SE = 8       # SE bottleneck channels
C_PROJ = 16    # MBConv projected channels
C_HEAD = 32    # conv_head / classifier in_features
K_STEM = 16    # stem im2col K (9 taps padded to 16 for sublane alignment)
OUT_PAD = 128  # classifier logits padded to a lane-dense width

# ---- packed parameter layout ------------------------------------------------
# wpack: (W_ROWS, OUT_PAD) f32 -- every matmul weight as a row-block (all block
# starts are multiples of 8 so sliced loads are sublane-aligned).
W_STEM = 0                      # (K_STEM, C_STEM)
W_EXP = W_STEM + K_STEM         # (C_STEM, C_EXP)
W_SE1 = W_EXP + C_STEM          # (C_EXP, C_SE)
W_SE2 = W_SE1 + C_EXP           # (C_SE, C_EXP)
W_PROJ = W_SE2 + C_SE           # (C_EXP, C_PROJ)
W_HEAD = W_PROJ + C_EXP         # (C_PROJ, C_HEAD)
W_FC = W_HEAD + C_PROJ          # (C_HEAD, OUT_PAD)
W_ROWS = W_FC + C_HEAD          # = 144

# vpack: (V_ROWS, 128) f32 -- per-channel vectors (dw taps, folded BN, biases).
V_DW_W = 0        # 9 rows, cols [0, C_EXP)
V_DW_SCALE = 9
V_DW_SHIFT = 10
V_STEM_B = 11
V_EXP_B = 12
V_SE_B1 = 13
V_SE_B2 = 14
V_PROJ_B = 15
V_HEAD_B = 16
V_FC_B = 17
V_ROWS = 18
V_COLS = 128

# Whole-array-in-VMEM spec (everything here is tiny; no grid tiling required).
VMEM_SPEC = pl.BlockSpec(memory_space=pltpu.MemorySpace.VMEM)


# ---------------------------------------------------------------------------
# Fused Pallas kernel: stem + MBConv (expand/dw/SE/project) + head + pool + FC
# ---------------------------------------------------------------------------
def _fused_kernel(taps_ref, wpack_ref, vpack_ref, out_ref,
                  hpad_ref, dwout_ref, *, Ho, Wo, Bp):
    HW = Ho * Wo
    M = HW * Bp
    inv_hw = 1.0 / float(HW)

    def silu(v):                           # f32 VPU + EUP
        return v * jax.nn.sigmoid(v)

    def dot(x, w):                         # f32 MXU (tiny K/N: bf16 buys nothing)
        return jnp.dot(x, w, preferred_element_type=jnp.float32)

    # ---- stem 3x3 stride-2 (Cin=1): one im2col matmul, folded BN, SiLU
    h = dot(taps_ref[...], wpack_ref[W_STEM:W_STEM + K_STEM, 0:C_STEM])
    h = silu(h + vpack_ref[V_STEM_B:V_STEM_B + 1, 0:C_STEM])          # (M, C_STEM)

    # ---- MBConv expand 1x1 (C_STEM -> C_EXP) + SiLU
    h = dot(h, wpack_ref[W_EXP:W_EXP + C_STEM, 0:C_EXP])
    h = silu(h + vpack_ref[V_EXP_B:V_EXP_B + 1, 0:C_EXP])             # (M, C_EXP)

    # ---- depthwise 3x3 input lives zero-padded in a VMEM scratch.  Only the
    #      four halo strips are zero-filled (no full-scratch memset).
    hpad_ref[0:1, :, :, :] = jnp.zeros((1, Wo + 2, Bp, C_EXP), jnp.float32)
    hpad_ref[Ho + 1:Ho + 2, :, :, :] = jnp.zeros((1, Wo + 2, Bp, C_EXP), jnp.float32)
    hpad_ref[1:1 + Ho, 0:1, :, :] = jnp.zeros((Ho, 1, Bp, C_EXP), jnp.float32)
    hpad_ref[1:1 + Ho, Wo + 1:Wo + 2, :, :] = jnp.zeros((Ho, 1, Bp, C_EXP), jnp.float32)
    hpad_ref[1:1 + Ho, 1:1 + Wo, :, :] = h.reshape(Ho, Wo, Bp, C_EXP)

    # ---- depthwise 3x3 + folded BN + SiLU, accumulated one output row at a
    #      time (bounded live set: ~3 row-slabs instead of a 64-tile slab).
    def dw_row(y, carry):
        acc = None
        for t in range(9):                                   # static 9-tap unroll
            dy, dx = t // 3, t % 3
            tap = hpad_ref[y + dy, dx:dx + Wo, :, :]         # (Wo, Bp, C_EXP)
            term = tap * vpack_ref[V_DW_W + t:V_DW_W + t + 1, 0:C_EXP]
            acc = term if acc is None else acc + term
        row = (acc * vpack_ref[V_DW_SCALE:V_DW_SCALE + 1, 0:C_EXP]
               + vpack_ref[V_DW_SHIFT:V_DW_SHIFT + 1, 0:C_EXP])
        start = pl.multiple_of(y * (Wo * Bp), Wo * Bp)       # aligned row store
        dwout_ref[pl.ds(start, Wo * Bp), :] = silu(row).reshape(Wo * Bp, C_EXP)
        return carry

    lax.fori_loop(0, Ho, dw_row, 0)
    dw = dwout_ref[...]                                      # (M, C_EXP)

    # ---- squeeze-and-excitation: pool -> FC+SiLU -> FC+sigmoid -> gate
    dw3 = dw.reshape(HW, Bp, C_EXP)
    pooled = jnp.sum(dw3, axis=0) * inv_hw                   # (Bp, C_EXP)
    g = silu(dot(pooled, wpack_ref[W_SE1:W_SE1 + C_EXP, 0:C_SE])
             + vpack_ref[V_SE_B1:V_SE_B1 + 1, 0:C_SE])       # (Bp, C_SE)
    g = jax.nn.sigmoid(dot(g, wpack_ref[W_SE2:W_SE2 + C_SE, 0:C_EXP])
                       + vpack_ref[V_SE_B2:V_SE_B2 + 1, 0:C_EXP])    # (Bp, C_EXP)
    h = (dw3 * g[None, :, :]).reshape(M, C_EXP)

    # ---- MBConv project 1x1 (C_EXP -> C_PROJ), linear (no residual: 8 -> 16)
    h = (dot(h, wpack_ref[W_PROJ:W_PROJ + C_EXP, 0:C_PROJ])
         + vpack_ref[V_PROJ_B:V_PROJ_B + 1, 0:C_PROJ])       # (M, C_PROJ)

    # ---- conv_head 1x1 (C_PROJ -> C_HEAD) + BN(folded) + SiLU
    h = silu(dot(h, wpack_ref[W_HEAD:W_HEAD + C_PROJ, 0:C_HEAD])
             + vpack_ref[V_HEAD_B:V_HEAD_B + 1, 0:C_HEAD])   # (M, C_HEAD)

    # ---- global average pool + replaced classifier Linear(n_features, 5),
    #      emitted lane-dense as (Bp, 128) (cols >= NUM_CLASSES are padding).
    pooled2 = jnp.sum(h.reshape(HW, Bp, C_HEAD), axis=0) * inv_hw     # (Bp, C_HEAD)
    out_ref[...] = (dot(pooled2, wpack_ref[W_FC:W_FC + C_HEAD, :])
                    + vpack_ref[V_FC_B:V_FC_B + 1, :])


# ---------------------------------------------------------------------------
# Parameter construction (deterministic, eval-mode BatchNorm folded into convs)
# ---------------------------------------------------------------------------
def _conv_bn_params(key, kin, kout):
    k1, k2, k3, k4, k5 = jax.random.split(key, 5)
    w = jax.random.normal(k1, (kin, kout), jnp.float32) / jnp.sqrt(float(kin))
    gamma = 1.0 + 0.1 * jax.random.normal(k2, (kout,), jnp.float32)
    beta = 0.1 * jax.random.normal(k3, (kout,), jnp.float32)
    mean = 0.1 * jax.random.normal(k4, (kout,), jnp.float32)
    var = jnp.abs(1.0 + 0.1 * jax.random.normal(k5, (kout,), jnp.float32))
    scale = gamma / jnp.sqrt(var + BN_EPS)
    shift = beta - mean * scale
    return w * scale[None, :], shift


def init_params(key):
    ks = jax.random.split(key, 8)
    p = {}
    p["stem_w"], p["stem_b"] = _conv_bn_params(ks[0], 9, C_STEM)      # (9,8),(8,)
    p["exp_w"], p["exp_b"] = _conv_bn_params(ks[1], C_STEM, C_EXP)
    kd = jax.random.split(ks[2], 5)
    p["dw_w"] = jax.random.normal(kd[0], (9, C_EXP), jnp.float32) / 3.0
    gamma = 1.0 + 0.1 * jax.random.normal(kd[1], (C_EXP,), jnp.float32)
    beta = 0.1 * jax.random.normal(kd[2], (C_EXP,), jnp.float32)
    mean = 0.1 * jax.random.normal(kd[3], (C_EXP,), jnp.float32)
    var = jnp.abs(1.0 + 0.1 * jax.random.normal(kd[4], (C_EXP,), jnp.float32))
    scale = gamma / jnp.sqrt(var + BN_EPS)
    p["dw_scale"] = scale
    p["dw_shift"] = beta - mean * scale
    kse = jax.random.split(ks[3], 4)
    p["se_w1"] = (jax.random.normal(kse[0], (C_EXP, C_SE), jnp.float32)
                  / jnp.sqrt(float(C_EXP)))
    p["se_b1"] = 0.1 * jax.random.normal(kse[1], (C_SE,), jnp.float32)
    p["se_w2"] = (jax.random.normal(kse[2], (C_SE, C_EXP), jnp.float32)
                  / jnp.sqrt(float(C_SE)))
    p["se_b2"] = 0.1 * jax.random.normal(kse[3], (C_EXP,), jnp.float32)
    p["proj_w"], p["proj_b"] = _conv_bn_params(ks[4], C_EXP, C_PROJ)
    p["head_w"], p["head_b"] = _conv_bn_params(ks[5], C_PROJ, C_HEAD)
    kfc = jax.random.split(ks[6], 2)
    p["fc_w"] = (jax.random.normal(kfc[0], (C_HEAD, NUM_CLASSES), jnp.float32)
                 / jnp.sqrt(float(C_HEAD)))
    p["fc_b"] = 0.01 * jax.random.normal(kfc[1], (NUM_CLASSES,), jnp.float32)
    return p


def _pack_params(p):
    """Pack all weights / per-channel vectors into two arrays (3 kernel inputs)."""
    wpack = jnp.zeros((W_ROWS, OUT_PAD), jnp.float32)
    wpack = wpack.at[W_STEM:W_STEM + 9, 0:C_STEM].set(p["stem_w"])
    wpack = wpack.at[W_EXP:W_EXP + C_STEM, 0:C_EXP].set(p["exp_w"])
    wpack = wpack.at[W_SE1:W_SE1 + C_EXP, 0:C_SE].set(p["se_w1"])
    wpack = wpack.at[W_SE2:W_SE2 + C_SE, 0:C_EXP].set(p["se_w2"])
    wpack = wpack.at[W_PROJ:W_PROJ + C_EXP, 0:C_PROJ].set(p["proj_w"])
    wpack = wpack.at[W_HEAD:W_HEAD + C_PROJ, 0:C_HEAD].set(p["head_w"])
    wpack = wpack.at[W_FC:W_FC + C_HEAD, 0:NUM_CLASSES].set(p["fc_w"])

    vpack = jnp.zeros((V_ROWS, V_COLS), jnp.float32)
    vpack = vpack.at[V_DW_W:V_DW_W + 9, 0:C_EXP].set(p["dw_w"])
    vpack = vpack.at[V_DW_SCALE, 0:C_EXP].set(p["dw_scale"])
    vpack = vpack.at[V_DW_SHIFT, 0:C_EXP].set(p["dw_shift"])
    vpack = vpack.at[V_STEM_B, 0:C_STEM].set(p["stem_b"])
    vpack = vpack.at[V_EXP_B, 0:C_EXP].set(p["exp_b"])
    vpack = vpack.at[V_SE_B1, 0:C_SE].set(p["se_b1"])
    vpack = vpack.at[V_SE_B2, 0:C_EXP].set(p["se_b2"])
    vpack = vpack.at[V_PROJ_B, 0:C_PROJ].set(p["proj_b"])
    vpack = vpack.at[V_HEAD_B, 0:C_HEAD].set(p["head_b"])
    vpack = vpack.at[V_FC_B, 0:NUM_CLASSES].set(p["fc_b"])
    return wpack, vpack


# ---------------------------------------------------------------------------
# Forward pass: wrapper does only input layout (NCHW->NHWC, batch pad, stem
# im2col of the 1-channel input, param packing); all compute is in the kernel.
# ---------------------------------------------------------------------------
def efficientnet_forward(x_nchw, params):
    x = jnp.transpose(x_nchw, (0, 2, 3, 1)).astype(jnp.float32)   # (B, H, W, 1)
    B, H, W, Cin = x.shape
    assert Cin == 1, "model was created with in_chans=1"
    assert H % 2 == 0 and W % 2 == 0
    Ho, Wo = H // 2, W // 2
    Bp = ((B + 7) // 8) * 8            # pad batch so it fills the sublane slot
    M = Ho * Wo * Bp

    # zero-pad batch, TF-SAME pad (bottom/right by 1) for k=3, s=2, even H/W
    xb = jnp.pad(x, ((0, Bp - B), (0, 0), (0, 0), (0, 0)))
    xp = jnp.pad(xb, ((0, 0), (0, 1), (0, 1), (0, 0)))            # (Bp,H+1,W+1,1)

    # stem im2col: one (M, 16) operand (9 real taps + 7 zero columns), rows
    # ordered (y, x, b) to match the in-kernel activation layout.
    cols = []
    for dy in range(3):
        for dx in range(3):
            t = xp[:, dy:dy + 2 * Ho - 1:2, dx:dx + 2 * Wo - 1:2, 0]  # (Bp,Ho,Wo)
            cols.append(jnp.transpose(t, (1, 2, 0)).reshape(M))
    taps = jnp.stack(cols, axis=1)                                # (M, 9)
    taps = jnp.pad(taps, ((0, 0), (0, K_STEM - 9)))               # (M, K_STEM)

    wpack, vpack = _pack_params(params)

    kernel = functools.partial(_fused_kernel, Ho=Ho, Wo=Wo, Bp=Bp)
    logits_full = pl.pallas_call(
        kernel,
        out_shape=jax.ShapeDtypeStruct((Bp, OUT_PAD), jnp.float32),
        in_specs=[VMEM_SPEC] * 3,
        out_specs=VMEM_SPEC,
        scratch_shapes=[
            pltpu.VMEM((Ho + 2, Wo + 2, Bp, C_EXP), jnp.float32),   # padded dw image
            pltpu.VMEM((M, C_EXP), jnp.float32),                    # dw+SiLU output
        ],
    )(taps, wpack, vpack)
    return logits_full[:B, :NUM_CLASSES]          # drop batch / lane padding


# ---------------------------------------------------------------------------
if __name__ == "__main__":
    key = jax.random.PRNGKey(0)
    pkey, xkey = jax.random.split(key)
    params = init_params(pkey)

    x = jax.random.normal(xkey, (2, 1, 16, 16), jnp.float32)      # NCHW, in_chans=1

    fwd = jax.jit(lambda xx: efficientnet_forward(xx, params))
    out = fwd(x)
    jax.block_until_ready(out)
    assert out.shape == (2, NUM_CLASSES), out.shape
    assert out.dtype == jnp.float32
    print("KERNEL_OK")
</pallas_src>

<mosaic_0001>
module attributes {stable_mosaic.version = 11 : i64} {
  func.func @_fused_kernel(%arg0: memref<512x16xf32, #tpu.memory_space<vmem>>, %arg1: memref<144x128xf32, #tpu.memory_space<vmem>>, %arg2: memref<18x128xf32, #tpu.memory_space<vmem>>, %arg3: memref<8x128xf32, #tpu.memory_space<vmem>>, %arg4: memref<10x10x8x32xf32, #tpu.memory_space<vmem>>, %arg5: memref<512x32xf32, #tpu.memory_space<vmem>>) attributes {dimension_semantics = [], scalar_prefetch = 0 : i64, scratch_operands = 2 : i64, tpu.core_type = #tpu.core_type<tc>} {
    %c0 = arith.constant 0 : index
    %c0_0 = arith.constant 0 : index
    %0 = vector.load %arg0[%c0, %c0_0] : memref<512x16xf32, #tpu.memory_space<vmem>>, vector<512x16xf32>
    %c0_1 = arith.constant 0 : index
    %c0_2 = arith.constant 0 : index
    %1 = vector.load %arg1[%c0_1, %c0_2] : memref<144x128xf32, #tpu.memory_space<vmem>>, vector<16x8xf32>
    %cst = arith.constant dense<0.000000e+00> : vector<512x8xf32>
    %2 = tpu.matmul %0, %1, %cst {dimension_numbers = #tpu.dot_dimension_numbers<[1], [0], [0], [1], [0, 0, 1, 1], [], []>} : vector<512x16xf32>, vector<16x8xf32>, vector<512x8xf32> -> vector<512x8xf32>
    %c11 = arith.constant 11 : index
    %c0_3 = arith.constant 0 : index
    %3 = vector.load %arg2[%c11, %c0_3] : memref<18x128xf32, #tpu.memory_space<vmem>>, vector<1x8xf32>
    %4 = vector.broadcast %3 : vector<1x8xf32> to vector<512x8xf32>
    %5 = arith.addf %2, %4 : vector<512x8xf32>
    %6 = arith.negf %5 : vector<512x8xf32>
    %7 = math.exp %6 : vector<512x8xf32>
    %cst_4 = arith.constant 1.000000e+00 : f32
    %8 = vector.broadcast %cst_4 : f32 to vector<512x8xf32>
    %9 = arith.addf %8, %7 : vector<512x8xf32>
    %10 = arith.divf %8, %9 : vector<512x8xf32>
    %11 = arith.mulf %5, %10 : vector<512x8xf32>
    %c16 = arith.constant 16 : index
    %c0_5 = arith.constant 0 : index
    %12 = vector.load %arg1[%c16, %c0_5] : memref<144x128xf32, #tpu.memory_space<vmem>>, vector<8x32xf32>
    %cst_6 = arith.constant dense<0.000000e+00> : vector<512x32xf32>
    %13 = tpu.matmul %11, %12, %cst_6 {dimension_numbers = #tpu.dot_dimension_numbers<[1], [0], [0], [1], [0, 0, 1, 1], [], []>} : vector<512x8xf32>, vector<8x32xf32>, vector<512x32xf32> -> vector<512x32xf32>
    %c12 = arith.constant 12 : index
    %c0_7 = arith.constant 0 : index
    %14 = vector.load %arg2[%c12, %c0_7] : memref<18x128xf32, #tpu.memory_space<vmem>>, vector<1x32xf32>
    %15 = vector.broadcast %14 : vector<1x32xf32> to vector<512x32xf32>
    %16 = arith.addf %13, %15 : vector<512x32xf32>
    %17 = arith.negf %16 : vector<512x32xf32>
    %18 = math.exp %17 : vector<512x32xf32>
    %cst_8 = arith.constant 1.000000e+00 : f32
    %19 = vector.broadcast %cst_8 : f32 to vector<512x32xf32>
    %20 = arith.addf %19, %18 : vector<512x32xf32>
    %21 = arith.divf %19, %20 : vector<512x32xf32>
    %22 = arith.mulf %16, %21 : vector<512x32xf32>
    %cst_9 = arith.constant 0.000000e+00 : f32
    %23 = vector.broadcast %cst_9 : f32 to vector<1x10x8x32xf32>
    %c0_10 = arith.constant 0 : index
    %c0_11 = arith.constant 0 : index
    %c0_12 = arith.constant 0 : index
    %c0_13 = arith.constant 0 : index
    %24 = vector.load %arg4[%c0_10, %c0_11, %c0_12, %c0_13] : memref<10x10x8x32xf32, #tpu.memory_space<vmem>>, vector<1x10x8x32xf32>
    tpu.vector_store %arg4[%c0_10, %c0_11, %c0_12, %c0_13], %23 {strides = array<i32>} : memref<10x10x8x32xf32, #tpu.memory_space<vmem>>, vector<1x10x8x32xf32>,
    %cst_14 = arith.constant 0.000000e+00 : f32
    %25 = vector.broadcast %cst_14 : f32 to vector<1x10x8x32xf32>
    %c9 = arith.constant 9 : index
    %c0_15 = arith.constant 0 : index
    %c0_16 = arith.constant 0 : index
    %c0_17 = arith.constant 0 : index
    %26 = vector.load %arg4[%c9, %c0_15, %c0_16, %c0_17] : memref<10x10x8x32xf32, #tpu.memory_space<vmem>>, vector<1x10x8x32xf32>
    tpu.vector_store %arg4[%c9, %c0_15, %c0_16, %c0_17], %25 {strides = array<i32>} : memref<10x10x8x32xf32, #tpu.memory_space<vmem>>, vector<1x10x8x32xf32>,
    %cst_18 = arith.constant 0.000000e+00 : f32
    %27 = vector.broadcast %cst_18 : f32 to vector<8x1x8x32xf32>
    %c1 = arith.constant 1 : index
    %c0_19 = arith.constant 0 : index
    %c0_20 = arith.constant 0 : index
    %c0_21 = arith.constant 0 : index
    %28 = vector.load %arg4[%c1, %c0_19, %c0_20, %c0_21] : memref<10x10x8x32xf32, #tpu.memory_space<vmem>>, vector<8x1x8x32xf32>
    tpu.vector_store %arg4[%c1, %c0_19, %c0_20, %c0_21], %27 {strides = array<i32>} : memref<10x10x8x32xf32, #tpu.memory_space<vmem>>, vector<8x1x8x32xf32>,
    %cst_22 = arith.constant 0.000000e+00 : f32
    %29 = vector.broadcast %cst_22 : f32 to vector<8x1x8x32xf32>
    %c1_23 = arith.constant 1 : index
    %c9_24 = arith.constant 9 : index
    %c0_25 = arith.constant 0 : index
    %c0_26 = arith.constant 0 : index
    %30 = vector.load %arg4[%c1_23, %c9_24, %c0_25, %c0_26] : memref<10x10x8x32xf32, #tpu.memory_space<vmem>>, vector<8x1x8x32xf32>
    tpu.vector_store %arg4[%c1_23, %c9_24, %c0_25, %c0_26], %29 {strides = array<i32>} : memref<10x10x8x32xf32, #tpu.memory_space<vmem>>, vector<8x1x8x32xf32>,
    %31 = vector.shape_cast %22 : vector<512x32xf32> to vector<8x8x8x32xf32>
    %c1_27 = arith.constant 1 : index
    %c1_28 = arith.constant 1 : index
    %c0_29 = arith.constant 0 : index
    %c0_30 = arith.constant 0 : index
    %32 = vector.load %arg4[%c1_27, %c1_28, %c0_29, %c0_30] : memref<10x10x8x32xf32, #tpu.memory_space<vmem>>, vector<8x8x8x32xf32>
    tpu.vector_store %arg4[%c1_27, %c1_28, %c0_29, %c0_30], %31 {strides = array<i32>} : memref<10x10x8x32xf32, #tpu.memory_space<vmem>>, vector<8x8x8x32xf32>,
    %c0_i32 = arith.constant 0 : i32
    %c8_i32 = arith.constant 8 : i32
    %33 = arith.addi %c0_i32, %c8_i32 : i32
    %c1_i32 = arith.constant 1 : i32
    scf.for %arg6 = %c0_i32 to %33 step %c1_i32  : i32 {
      %c0_i32_59 = arith.constant 0 : i32
      %90 = arith.addi %arg6, %c0_i32_59 : i32
      %91 = arith.index_cast %90 : i32 to index
      %c0_60 = arith.constant 0 : index
      %c0_61 = arith.constant 0 : index
      %c0_62 = arith.constant 0 : index
      %92 = vector.load %arg4[%91, %c0_60, %c0_61, %c0_62] : memref<10x10x8x32xf32, #tpu.memory_space<vmem>>, vector<1x8x8x32xf32>
      %93 = vector.shape_cast %92 : vector<1x8x8x32xf32> to vector<8x8x32xf32>
      %c0_63 = arith.constant 0 : index
      %c0_64 = arith.constant 0 : index
      %94 = vector.load %arg2[%c0_63, %c0_64] : memref<18x128xf32, #tpu.memory_space<vmem>>, vector<1x32xf32>
      %95 = vector.shape_cast %94 : vector<1x32xf32> to vector<1x1x32xf32>
      %96 = vector.broadcast %95 : vector<1x1x32xf32> to vector<8x8x32xf32>
      %97 = arith.mulf %93, %96 : vector<8x8x32xf32>
      %c0_i32_65 = arith.constant 0 : i32
      %98 = arith.addi %arg6, %c0_i32_65 : i32
      %99 = arith.index_cast %98 : i32 to index
      %c1_66 = arith.constant 1 : index
      %c0_67 = arith.constant 0 : index
      %c0_68 = arith.constant 0 : index
      %100 = vector.load %arg4[%99, %c1_66, %c0_67, %c0_68] : memref<10x10x8x32xf32, #tpu.memory_space<vmem>>, vector<1x8x8x32xf32>
      %101 = vector.shape_cast %100 : vector<1x8x8x32xf32> to vector<8x8x32xf32>
      %c1_69 = arith.constant 1 : index
      %c0_70 = arith.constant 0 : index
      %102 = vector.load %arg2[%c1_69, %c0_70] : memref<18x128xf32, #tpu.memory_space<vmem>>, vector<1x32xf32>
      %103 = vector.shape_cast %102 : vector<1x32xf32> to vector<1x1x32xf32>
      %104 = vector.broadcast %103 : vector<1x1x32xf32> to vector<8x8x32xf32>
      %105 = arith.mulf %101, %104 : vector<8x8x32xf32>
      %106 = arith.addf %97, %105 : vector<8x8x32xf32>
      %c0_i32_71 = arith.constant 0 : i32
      %107 = arith.addi %arg6, %c0_i32_71 : i32
      %108 = arith.index_cast %107 : i32 to index
      %c2 = arith.constant 2 : index
      %c0_72 = arith.constant 0 : index
      %c0_73 = arith.constant 0 : index
      %109 = vector.load %arg4[%108, %c2, %c0_72, %c0_73] : memref<10x10x8x32xf32, #tpu.memory_space<vmem>>, vector<1x8x8x32xf32>
      %110 = vector.shape_cast %109 : vector<1x8x8x32xf32> to vector<8x8x32xf32>
      %c2_74 = arith.constant 2 : index
      %c0_75 = arith.constant 0 : index
      %111 = vector.load %arg2[%c2_74, %c0_75] : memref<18x128xf32, #tpu.memory_space<vmem>>, vector<1x32xf32>
      %112 = vector.shape_cast %111 : vector<1x32xf32> to vector<1x1x32xf32>
      %113 = vector.broadcast %112 : vector<1x1x32xf32> to vector<8x8x32xf32>
      %114 = arith.mulf %110, %113 : vector<8x8x32xf32>
      %115 = arith.addf %106, %114 : vector<8x8x32xf32>
      %c1_i32_76 = arith.constant 1 : i32
      %116 = arith.addi %arg6, %c1_i32_76 : i32
      %117 = arith.index_cast %116 : i32 to index
      %c0_77 = arith.constant 0 : index
      %c0_78 = arith.constant 0 : index
      %c0_79 = arith.constant 0 : index
      %118 = vector.load %arg4[%117, %c0_77, %c0_78, %c0_79] : memref<10x10x8x32xf32, #tpu.memory_space<vmem>>, vector<1x8x8x32xf32>
      %119 = vector.shape_cast %118 : vector<1x8x8x32xf32> to vector<8x8x32xf32>
      %c3 = arith.constant 3 : index
      %c0_80 = arith.constant 0 : index
      %120 = vector.load %arg2[%c3, %c0_80] : memref<18x128xf32, #tpu.memory_space<vmem>>, vector<1x32xf32>
      %121 = vector.shape_cast %120 : vector<1x32xf32> to vector<1x1x32xf32>
      %122 = vector.broadcast %121 : vector<1x1x32xf32> to vector<8x8x32xf32>
      %123 = arith.mulf %119, %122 : vector<8x8x32xf32>
      %124 = arith.addf %115, %123 : vector<8x8x32xf32>
      %c1_i32_81 = arith.constant 1 : i32
      %125 = arith.addi %arg6, %c1_i32_81 : i32
      %126 = arith.index_cast %125 : i32 to index
      %c1_82 = arith.constant 1 : index
      %c0_83 = arith.constant 0 : index
      %c0_84 = arith.constant 0 : index
      %127 = vector.load %arg4[%126, %c1_82, %c0_83, %c0_84] : memref<10x10x8x32xf32, #tpu.memory_space<vmem>>, vector<1x8x8x32xf32>
      %128 = vector.shape_cast %127 : vector<1x8x8x32xf32> to vector<8x8x32xf32>
      %c4 = arith.constant 4 : index
      %c0_85 = arith.constant 0 : index
      %129 = vector.load %arg2[%c4, %c0_85] : memref<18x128xf32, #tpu.memory_space<vmem>>, vector<1x32xf32>
      %130 = vector.shape_cast %129 : vector<1x32xf32> to vector<1x1x32xf32>
      %131 = vector.broadcast %130 : vector<1x1x32xf32> to vector<8x8x32xf32>
      %132 = arith.mulf %128, %131 : vector<8x8x32xf32>
      %133 = arith.addf %124, %132 : vector<8x8x32xf32>
      %c1_i32_86 = arith.constant 1 : i32
      %134 = arith.addi %arg6, %c1_i32_86 : i32
      %135 = arith.index_cast %134 : i32 to index
      %c2_87 = arith.constant 2 : index
      %c0_88 = arith.constant 0 : index
      %c0_89 = arith.constant 0 : index
      %136 = vector.load %arg4[%135, %c2_87, %c0_88, %c0_89] : memref<10x10x8x32xf32, #tpu.memory_space<vmem>>, vector<1x8x8x32xf32>
      %137 = vector.shape_cast %136 : vector<1x8x8x32xf32> to vector<8x8x32xf32>
      %c5 = arith.constant 5 : index
      %c0_90 = arith.constant 0 : index
      %138 = vector.load %arg2[%c5, %c0_90] : memref<18x128xf32, #tpu.memory_space<vmem>>, vector<1x32xf32>
      %139 = vector.shape_cast %138 : vector<1x32xf32> to vector<1x1x32xf32>
      %140 = vector.broadcast %139 : vector<1x1x32xf32> to vector<8x8x32xf32>
      %141 = arith.mulf %137, %140 : vector<8x8x32xf32>
      %142 = arith.addf %133, %141 : vector<8x8x32xf32>
      %c2_i32 = arith.constant 2 : i32
      %143 = arith.addi %arg6, %c2_i32 : i32
      %144 = arith.index_cast %143 : i32 to index
      %c0_91 = arith.constant 0 : index
      %c0_92 = arith.constant 0 : index
      %c0_93 = arith.constant 0 : index
      %145 = vector.load %arg4[%144, %c0_91, %c0_92, %c0_93] : memref<10x10x8x32xf32, #tpu.memory_space<vmem>>, vector<1x8x8x32xf32>
      %146 = vector.shape_cast %145 : vector<1x8x8x32xf32> to vector<8x8x32xf32>
      %c6 = arith.constant 6 : index
      %c0_94 = arith.constant 0 : index
      %147 = vector.load %arg2[%c6, %c0_94] : memref<18x128xf32, #tpu.memory_space<vmem>>, vector<1x32xf32>
      %148 = vector.shape_cast %147 : vector<1x32xf32> to vector<1x1x32xf32>
      %149 = vector.broadcast %148 : vector<1x1x32xf32> to vector<8x8x32xf32>
      %150 = arith.mulf %146, %149 : vector<8x8x32xf32>
      %151 = arith.addf %142, %150 : vector<8x8x32xf32>
      %c2_i32_95 = arith.constant 2 : i32
      %152 = arith.addi %arg6, %c2_i32_95 : i32
      %153 = arith.index_cast %152 : i32 to index
      %c1_96 = arith.constant 1 : index
      %c0_97 = arith.constant 0 : index
      %c0_98 = arith.constant 0 : index
      %154 = vector.load %arg4[%153, %c1_96, %c0_97, %c0_98] : memref<10x10x8x32xf32, #tpu.memory_space<vmem>>, vector<1x8x8x32xf32>
      %155 = vector.shape_cast %154 : vector<1x8x8x32xf32> to vector<8x8x32xf32>
      %c7 = arith.constant 7 : index
      %c0_99 = arith.constant 0 : index
      %156 = vector.load %arg2[%c7, %c0_99] : memref<18x128xf32, #tpu.memory_space<vmem>>, vector<1x32xf32>
      %157 = vector.shape_cast %156 : vector<1x32xf32> to vector<1x1x32xf32>
      %158 = vector.broadcast %157 : vector<1x1x32xf32> to vector<8x8x32xf32>
      %159 = arith.mulf %155, %158 : vector<8x8x32xf32>
      %160 = arith.addf %151, %159 : vector<8x8x32xf32>
      %c2_i32_100 = arith.constant 2 : i32
      %161 = arith.addi %arg6, %c2_i32_100 : i32
      %162 = arith.index_cast %161 : i32 to index
      %c2_101 = arith.constant 2 : index
      %c0_102 = arith.constant 0 : index
      %c0_103 = arith.constant 0 : index
      %163 = vector.load %arg4[%162, %c2_101, %c0_102, %c0_103] : memref<10x10x8x32xf32, #tpu.memory_space<vmem>>, vector<1x8x8x32xf32>
      %164 = vector.shape_cast %163 : vector<1x8x8x32xf32> to vector<8x8x32xf32>
      %c8 = arith.constant 8 : index
      %c0_104 = arith.constant 0 : index
      %165 = vector.load %arg2[%c8, %c0_104] : memref<18x128xf32, #tpu.memory_space<vmem>>, vector<1x32xf32>
      %166 = vector.shape_cast %165 : vector<1x32xf32> to vector<1x1x32xf32>
      %167 = vector.broadcast %166 : vector<1x1x32xf32> to vector<8x8x32xf32>
      %168 = arith.mulf %164, %167 : vector<8x8x32xf32>
      %169 = arith.addf %160, %168 : vector<8x8x32xf32>
      %c9_105 = arith.constant 9 : index
      %c0_106 = arith.constant 0 : index
      %170 = vector.load %arg2[%c9_105, %c0_106] : memref<18x128xf32, #tpu.memory_space<vmem>>, vector<1x32xf32>
      %171 = vector.shape_cast %170 : vector<1x32xf32> to vector<1x1x32xf32>
      %172 = vector.broadcast %171 : vector<1x1x32xf32> to vector<8x8x32xf32>
      %173 = arith.mulf %169, %172 : vector<8x8x32xf32>
      %c10 = arith.constant 10 : index
      %c0_107 = arith.constant 0 : index
      %174 = vector.load %arg2[%c10, %c0_107] : memref<18x128xf32, #tpu.memory_space<vmem>>, vector<1x32xf32>
      %175 = vector.shape_cast %174 : vector<1x32xf32> to vector<1x1x32xf32>
      %176 = vector.broadcast %175 : vector<1x1x32xf32> to vector<8x8x32xf32>
      %177 = arith.addf %173, %176 : vector<8x8x32xf32>
      %c64_i32 = arith.constant 64 : i32
      %178 = arith.muli %arg6, %c64_i32 : i32
      %179 = tpu.assume_multiple %178, 64 : i32
      %180 = arith.negf %177 : vector<8x8x32xf32>
      %181 = math.exp %180 : vector<8x8x32xf32>
      %cst_108 = arith.constant 1.000000e+00 : f32
      %182 = vector.broadcast %cst_108 : f32 to vector<8x8x32xf32>
      %183 = arith.addf %182, %181 : vector<8x8x32xf32>
      %184 = arith.divf %182, %183 : vector<8x8x32xf32>
      %185 = arith.mulf %177, %184 : vector<8x8x32xf32>
      %186 = vector.shape_cast %185 : vector<8x8x32xf32> to vector<64x32xf32>
      %187 = arith.index_cast %179 : i32 to index
      %c0_109 = arith.constant 0 : index
      %188 = vector.load %arg5[%187, %c0_109] : memref<512x32xf32, #tpu.memory_space<vmem>>, vector<64x32xf32>
      tpu.vector_store %arg5[%187, %c0_109], %186 {strides = array<i32>} : memref<512x32xf32, #tpu.memory_space<vmem>>, vector<64x32xf32>,
    }
    %c8_i32_31 = arith.constant 8 : i32
    %c0_32 = arith.constant 0 : index
    %c0_33 = arith.constant 0 : index
    %34 = vector.load %arg5[%c0_32, %c0_33] : memref<512x32xf32, #tpu.memory_space<vmem>>, vector<512x32xf32>
    %35 = vector.shape_cast %34 : vector<512x32xf32> to vector<64x8x32xf32>
    %cst_34 = arith.constant dense<0.000000e+00> : vector<8x32xf32>
    %36 = vector.multi_reduction <add>, %35, %cst_34 [0] : vector<64x8x32xf32> to vector<8x32xf32>
    %cst_35 = arith.constant 1.562500e-02 : f32
    %37 = vector.broadcast %cst_35 : f32 to vector<8x32xf32>
    %38 = arith.mulf %36, %37 : vector<8x32xf32>
    %c24 = arith.constant 24 : index
    %c0_36 = arith.constant 0 : index
    %39 = vector.load %arg1[%c24, %c0_36] : memref<144x128xf32, #tpu.memory_space<vmem>>, vector<32x8xf32>
    %cst_37 = arith.constant dense<0.000000e+00> : vector<8x8xf32>
    %40 = tpu.matmul %38, %39, %cst_37 {dimension_numbers = #tpu.dot_dimension_numbers<[1], [0], [0], [1], [0, 0, 1, 1], [], []>} : vector<8x32xf32>, vector<32x8xf32>, vector<8x8xf32> -> vector<8x8xf32>
    %c13 = arith.constant 13 : index
    %c0_38 = arith.constant 0 : index
    %41 = vector.load %arg2[%c13, %c0_38] : memref<18x128xf32, #tpu.memory_space<vmem>>, vector<1x8xf32>
    %42 = vector.broadcast %41 : vector<1x8xf32> to vector<8x8xf32>
    %43 = arith.addf %40, %42 : vector<8x8xf32>
    %44 = arith.negf %43 : vector<8x8xf32>
    %45 = math.exp %44 : vector<8x8xf32>
    %cst_39 = arith.constant 1.000000e+00 : f32
    %46 = vector.broadcast %cst_39 : f32 to vector<8x8xf32>
    %47 = arith.addf %46, %45 : vector<8x8xf32>
    %48 = arith.divf %46, %47 : vector<8x8xf32>
    %49 = arith.mulf %43, %48 : vector<8x8xf32>
    %c56 = arith.constant 56 : index
    %c0_40 = arith.constant 0 : index
    %50 = vector.load %arg1[%c56, %c0_40] : memref<144x128xf32, #tpu.memory_space<vmem>>, vector<8x32xf32>
    %cst_41 = arith.constant dense<0.000000e+00> : vector<8x32xf32>
    %51 = tpu.matmul %49, %50, %cst_41 {dimension_numbers = #tpu.dot_dimension_numbers<[1], [0], [0], [1], [0, 0, 1, 1], [], []>} : vector<8x8xf32>, vector<8x32xf32>, vector<8x32xf32> -> vector<8x32xf32>
    %c14 = arith.constant 14 : index
    %c0_42 = arith.constant 0 : index
    %52 = vector.load %arg2[%c14, %c0_42] : memref<18x128xf32, #tpu.memory_space<vmem>>, vector<1x32xf32>
    %53 = vector.broadcast %52 : vector<1x32xf32> to vector<8x32xf32>
    %54 = arith.addf %51, %53 : vector<8x32xf32>
    %55 = arith.negf %54 : vector<8x32xf32>
    %56 = math.exp %55 : vector<8x32xf32>
    %cst_43 = arith.constant 1.000000e+00 : f32
    %57 = vector.broadcast %cst_43 : f32 to vector<8x32xf32>
    %58 = arith.addf %57, %56 : vector<8x32xf32>
    %59 = arith.divf %57, %58 : vector<8x32xf32>
    %60 = vector.shape_cast %59 : vector<8x32xf32> to vector<1x8x32xf32>
    %61 = vector.broadcast %60 : vector<1x8x32xf32> to vector<64x8x32xf32>
    %62 = arith.mulf %35, %61 : vector<64x8x32xf32>
    %63 = vector.shape_cast %62 : vector<64x8x32xf32> to vector<512x32xf32>
    %c64 = arith.constant 64 : index
    %c0_44 = arith.constant 0 : index
    %64 = vector.load %arg1[%c64, %c0_44] : memref<144x128xf32, #tpu.memory_space<vmem>>, vector<32x16xf32>
    %cst_45 = arith.constant dense<0.000000e+00> : vector<512x16xf32>
    %65 = tpu.matmul %63, %64, %cst_45 {dimension_numbers = #tpu.dot_dimension_numbers<[1], [0], [0], [1], [0, 0, 1, 1], [], []>} : vector<512x32xf32>, vector<32x16xf32>, vector<512x16xf32> -> vector<512x16xf32>
    %c15 = arith.constant 15 : index
    %c0_46 = arith.constant 0 : index
    %66 = vector.load %arg2[%c15, %c0_46] : memref<18x128xf32, #tpu.memory_space<vmem>>, vector<1x16xf32>
    %67 = vector.broadcast %66 : vector<1x16xf32> to vector<512x16xf32>
    %68 = arith.addf %65, %67 : vector<512x16xf32>
    %c96 = arith.constant 96 : index
    %c0_47 = arith.constant 0 : index
    %69 = vector.load %arg1[%c96, %c0_47] : memref<144x128xf32, #tpu.memory_space<vmem>>, vector<16x32xf32>
    %cst_48 = arith.constant dense<0.000000e+00> : vector<512x32xf32>
    %70 = tpu.matmul %68, %69, %cst_48 {dimension_numbers = #tpu.dot_dimension_numbers<[1], [0], [0], [1], [0, 0, 1, 1], [], []>} : vector<512x16xf32>, vector<16x32xf32>, vector<512x32xf32> -> vector<512x32xf32>
    %c16_49 = arith.constant 16 : index
    %c0_50 = arith.constant 0 : index
    %71 = vector.load %arg2[%c16_49, %c0_50] : memref<18x128xf32, #tpu.memory_space<vmem>>, vector<1x32xf32>
    %72 = vector.broadcast %71 : vector<1x32xf32> to vector<512x32xf32>
    %73 = arith.addf %70, %72 : vector<512x32xf32>
    %74 = arith.negf %73 : vector<512x32xf32>
    %75 = math.exp %74 : vector<512x32xf32>
    %cst_51 = arith.constant 1.000000e+00 : f32
    %76 = vector.broadcast %cst_51 : f32 to vector<512x32xf32>
    %77 = arith.addf %76, %75 : vector<512x32xf32>
    %78 = arith.divf %76, %77 : vector<512x32xf32>
    %79 = arith.mulf %73, %78 : vector<512x32xf32>
    %80 = vector.shape_cast %79 : vector<512x32xf32> to vector<64x8x32xf32>
    %cst_52 = arith.constant dense<0.000000e+00> : vector<8x32xf32>
    %81 = vector.multi_reduction <add>, %80, %cst_52 [0] : vector<64x8x32xf32> to vector<8x32xf32>
    %cst_53 = arith.constant 1.562500e-02 : f32
    %82 = vector.broadcast %cst_53 : f32 to vector<8x32xf32>
    %83 = arith.mulf %81, %82 : vector<8x32xf32>
    %c112 = arith.constant 112 : index
    %c0_54 = arith.constant 0 : index
    %84 = vector.load %arg1[%c112, %c0_54] : memref<144x128xf32, #tpu.memory_space<vmem>>, vector<32x128xf32>
    %cst_55 = arith.constant dense<0.000000e+00> : vector<8x128xf32>
    %85 = tpu.matmul %83, %84, %cst_55 {dimension_numbers = #tpu.dot_dimension_numbers<[1], [0], [0], [1], [0, 0, 1, 1], [], []>} : vector<8x32xf32>, vector<32x128xf32>, vector<8x128xf32> -> vector<8x128xf32>
    %c17 = arith.constant 17 : index
    %c0_56 = arith.constant 0 : index
    %86 = vector.load %arg2[%c17, %c0_56] : memref<18x128xf32, #tpu.memory_space<vmem>>, vector<1x128xf32>
    %87 = vector.broadcast %86 : vector<1x128xf32> to vector<8x128xf32>
    %88 = arith.addf %85, %87 : vector<8x128xf32>
    %c0_57 = arith.constant 0 : index
    %c0_58 = arith.constant 0 : index
    %89 = vector.load %arg3[%c0_57, %c0_58] : memref<8x128xf32, #tpu.memory_space<vmem>>, vector<8x128xf32>
    tpu.vector_store %arg3[%c0_57, %c0_58], %88 {strides = array<i32>} : memref<8x128xf32, #tpu.memory_space<vmem>>, vector<8x128xf32>,
    return
  }
}

</mosaic_0001>

<bundles_post_ra>
// kernel: _lambda_.1
= control target key start
LH: loop header
LB: loop body
LE: loop exit
PB: predicated region body
PF: predicated region fallthrough
CT: control target
= control target key end

     0   :  { %vm85_vm0 = vcmask 130048   ;;  %vm1117_vm1 = vcmask 64512   ;;  %vm2143_vm2 = vcmask 261120   ;;  %s8163_s18 = smov 0   ;;  %s9434_s1 = inlined_call_operand.vmem [shape: f32[144,128], index: 1, kind: input, shape index: {}]   ;;  %s9435_s3 = inlined_call_operand.vmem [shape: f32[8,128], index: 3, kind: output, shape index: {}]   ;;  %s9436_s0 = inlined_call_operand.vmem [shape: f32[512,16], index: 0, kind: input, shape index: {}]   ;;  %s9437_s2 = inlined_call_operand.vmem [shape: f32[18,128], index: 2, kind: input, shape index: {}]  }
   0x1   :  { %v78_v0 = vld [vmem:[%s9434_s1] sm:$0xff]  ;;  %v79_v1 = vld [vmem:[%s9434_s1 + $0x8] sm:$0xff]  ;;  %v16_v5 = vld [vmem:[%s9436_s0 + $0x10] sm:$0xff] }
   0x2   :  { %v14_v2 = vld [vmem:[%s9436_s0] sm:$0xff]  ;;  %v6165_v3 = vpack.c.bf16 %v79_v1, %v78_v0  ;;  %v15_v4 = vld [vmem:[%s9436_s0 + $0x8] sm:$0xff]  ;;  %v17_v6 = vld [vmem:[%s9436_s0 + $0x18] sm:$0xff] }
   0x3   :  { %5740 = vmatprep.mubr.msk.f32.mxu0 %vm85_vm0, %v14_v2  ;;  %v18_v7 = vld [vmem:[%s9436_s0 + $0x20] sm:$0xff]  ;;  %v19_v8 = vld [vmem:[%s9436_s0 + $0x28] sm:$0xff]  ;;  %v20_v9 = vld [vmem:[%s9436_s0 + $0x30] sm:$0xff] }
   0x4   :  { %6166 = vmatprep.subr.bf16.mxu0 %v6165_v3  ;;  %v21_v10 = vld [vmem:[%s9436_s0 + $0x38] sm:$0xff]  ;;  %v22_v11 = vld [vmem:[%s9436_s0 + $0x40] sm:$0xff]  ;;  %v23_v12 = vld [vmem:[%s9436_s0 + $0x48] sm:$0xff] }
   0x5   :  { %6168 = vmatpush3.bf16.msra.mxu0 %v6165_v3  ;;  %v24_v13 = vld [vmem:[%s9436_s0 + $0x50] sm:$0xff]  ;;  %v25_v14 = vld [vmem:[%s9436_s0 + $0x58] sm:$0xff]  ;;  %v26_v15 = vld [vmem:[%s9436_s0 + $0x60] sm:$0xff] }
   0x6   :  { %v27_v16 = vld [vmem:[%s9436_s0 + $0x68] sm:$0xff]  ;;  %v28_v17 = vld [vmem:[%s9436_s0 + $0x70] sm:$0xff]  ;;  %v29_v18 = vld [vmem:[%s9436_s0 + $0x78] sm:$0xff] }
   0x7   :  { %v30_v19 = vld [vmem:[%s9436_s0 + $0x80] sm:$0xff]  ;;  %v31_v20 = vld [vmem:[%s9436_s0 + $0x88] sm:$0xff]  ;;  %v32_v21 = vld [vmem:[%s9436_s0 + $0x90] sm:$0xff] }
   0x8   :  { %5741 = vmatmul.mubr.msk.f32.vlgmr.msra.gmra.mrb[0].mxu0 %vm85_vm0, %v15_v4  ;;  %v33_v22 = vld [vmem:[%s9436_s0 + $0x98] sm:$0xff]  ;;  %v34_v23 = vld [vmem:[%s9436_s0 + $0xa0] sm:$0xff]  ;;  %v35_v24 = vld [vmem:[%s9436_s0 + $0xa8] sm:$0xff] }
   0x9   :  { %5743 = vmatprep.mubr.msk.f32.mxu0 %vm85_vm0, %v16_v5  ;;  %v36_v25 = vld [vmem:[%s9436_s0 + $0xb0] sm:$0xff]  ;;  %v37_v26 = vld [vmem:[%s9436_s0 + $0xb8] sm:$0xff]  ;;  %v38_v27 = vld [vmem:[%s9436_s0 + $0xc0] sm:$0xff] }
   0xa   :  { %v39_v28 = vld [vmem:[%s9436_s0 + $0xc8] sm:$0xff]  ;;  %v40_v29 = vld [vmem:[%s9436_s0 + $0xd0] sm:$0xff]  ;;  %v41_v30 = vld [vmem:[%s9436_s0 + $0xd8] sm:$0xff] }
   0xb   :  { %v42_v31 = vld [vmem:[%s9436_s0 + $0xe0] sm:$0xff]  ;;  %v43_v32 = vld [vmem:[%s9436_s0 + $0xe8] sm:$0xff]  ;;  %v44_v33 = vld [vmem:[%s9436_s0 + $0xf0] sm:$0xff] }
   0xc   :  { %5744 = vmatmul.mubr.msk.f32.gmra.mrb[2].mxu0 %vm85_vm0, %v17_v6  ;;  %v45_v34 = vld [vmem:[%s9436_s0 + $0xf8] sm:$0xff]  ;;  %v46_v35 = vld [vmem:[%s9436_s0 + $0x100] sm:$0xff]  ;;  %v47_v36 = vld [vmem:[%s9436_s0 + $0x108] sm:$0xff] }
   0xd   :  { %5746 = vmatprep.mubr.msk.f32.mxu0 %vm85_vm0, %v18_v7  ;;  %v48_v37 = vld [vmem:[%s9436_s0 + $0x110] sm:$0xff]  ;;  %v49_v38 = vld [vmem:[%s9436_s0 + $0x118] sm:$0xff]  ;;  %v50_v39 = vld [vmem:[%s9436_s0 + $0x120] sm:$0xff] }
   0xe   :  { %v51_v40 = vld [vmem:[%s9436_s0 + $0x128] sm:$0xff]  ;;  %v52_v41 = vld [vmem:[%s9436_s0 + $0x130] sm:$0xff]  ;;  %v53_v42 = vld [vmem:[%s9436_s0 + $0x138] sm:$0xff] }
   0xf   :  { %v54_v43 = vld [vmem:[%s9436_s0 + $0x140] sm:$0xff]  ;;  %v55_v44 = vld [vmem:[%s9436_s0 + $0x148] sm:$0xff]  ;;  %v56_v45 = vld [vmem:[%s9436_s0 + $0x150] sm:$0xff] }
  0x10   :  { %5747 = vmatmul.mubr.msk.f32.gmra.mrb[4].mxu0 %vm85_vm0, %v19_v8  ;;  %v57_v46 = vld [vmem:[%s9436_s0 + $0x158] sm:$0xff]  ;;  %v58_v47 = vld [vmem:[%s9436_s0 + $0x160] sm:$0xff]  ;;  %v59_v48 = vld [vmem:[%s9436_s0 + $0x168] sm:$0xff] }
  0x11   :  { %5749 = vmatprep.mubr.msk.f32.mxu0 %vm85_vm0, %v20_v9  ;;  %v60_v49 = vld [vmem:[%s9436_s0 + $0x170] sm:$0xff]  ;;  %v61_v50 = vld [vmem:[%s9436_s0 + $0x178] sm:$0xff]  ;;  %v62_v51 = vld [vmem:[%s9436_s0 + $0x180] sm:$0xff] }
  0x12   :  { %v63_v52 = vld [vmem:[%s9436_s0 + $0x188] sm:$0xff]  ;;  %v64_v53 = vld [vmem:[%s9436_s0 + $0x190] sm:$0xff]  ;;  %v65_v54 = vld [vmem:[%s9436_s0 + $0x198] sm:$0xff] }
  0x13   :  { %v66_v55 = vld [vmem:[%s9436_s0 + $0x1a0] sm:$0xff]  ;;  %v67_v56 = vld [vmem:[%s9436_s0 + $0x1a8] sm:$0xff]  ;;  %v68_v57 = vld [vmem:[%s9436_s0 + $0x1b0] sm:$0xff] }
  0x14   :  { %5750 = vmatmul.mubr.msk.f32.gmra.mrb[6].mxu0 %vm85_vm0, %v21_v10  ;;  %v69_v58 = vld [vmem:[%s9436_s0 + $0x1b8] sm:$0xff]  ;;  %v70_v59 = vld [vmem:[%s9436_s0 + $0x1c0] sm:$0xff]  ;;  %v71_v60 = vld [vmem:[%s9436_s0 + $0x1c8] sm:$0xff] }
  0x15   :  { %5752 = vmatprep.mubr.msk.f32.mxu0 %vm85_vm0, %v22_v11  ;;  %v72_v61 = vld [vmem:[%s9436_s0 + $0x1d0] sm:$0xff]  ;;  %v73_v62 = vld [vmem:[%s9436_s0 + $0x1d8] sm:$0xff]  ;;  %v74_v63 = vld [vmem:[%s9436_s0 + $0x1e0] sm:$0xff] }
  0x16   :  { %v1111_v0 = vld [vmem:[%s9434_s1 + $0x10] sm:$0xff]  ;;  %v75_v1 = vld [vmem:[%s9436_s0 + $0x1e8] sm:$0xff]  ;;  %v77_v3 = vld [vmem:[%s9436_s0 + $0x1f8] sm:$0xff] }
  0x17   :  { %5836 = vmatprep.subr.mxu1 %v1111_v0  ;;  %v76_v2 = vld [vmem:[%s9436_s0 + $0x1f0] sm:$0xff]  ;;  %v7314_v4 = vld [vmem:[%s9437_s2 + $0xb] ss:$0 sm:$0xff] }
  0x18   :  { %5753 = vmatmul.mubr.msk.f32.gmra.mrb[8].mxu0 %vm85_vm0, %v23_v12  ;;  %5837 = vmatpush3.msra.mxu1 %v1111_v0 }
  0x19   :  { %5755 = vmatprep.mubr.msk.f32.mxu0 %vm85_vm0, %v24_v13 }
  0x1c   :  { %5756 = vmatmul.mubr.msk.f32.gmra.mrb[10].mxu0 %vm85_vm0, %v25_v14 }
  0x1d   :  { %5758 = vmatprep.mubr.msk.f32.mxu0 %vm85_vm0, %v26_v15 }
  0x20   :  { %5759 = vmatmul.mubr.msk.f32.gmra.mrb[12].mxu0 %vm85_vm0, %v27_v16 }
  0x21   :  { %5761 = vmatprep.mubr.msk.f32.mxu0 %vm85_vm0, %v28_v17 }
  0x24   :  { %5762 = vmatmul.mubr.msk.f32.gmra.mrb[14].mxu0 %vm85_vm0, %v29_v18 }
  0x25   :  { %5764 = vmatprep.mubr.msk.f32.mxu0 %vm85_vm0, %v30_v19 }
  0x28   :  { %5765 = vmatmul.mubr.msk.f32.gmra.mrb[16].mxu0 %vm85_vm0, %v31_v20 }
  0x29   :  { %5767 = vmatprep.mubr.msk.f32.mxu0 %vm85_vm0, %v32_v21 }
  0x2c   :  { %5768 = vmatmul.mubr.msk.f32.gmra.mrb[18].mxu0 %vm85_vm0, %v33_v22 }
  0x2d   :  { %5770 = vmatprep.mubr.msk.f32.mxu0 %vm85_vm0, %v34_v23 }
  0x30   :  { %5771 = vmatmul.mubr.msk.f32.gmra.mrb[20].mxu0 %vm85_vm0, %v35_v24 }
  0x31   :  { %5773 = vmatprep.mubr.msk.f32.mxu0 %vm85_vm0, %v36_v25 }
  0x34   :  { %5774 = vmatmul.mubr.msk.f32.gmra.mrb[22].mxu0 %vm85_vm0, %v37_v26 }
  0x35   :  { %5776 = vmatprep.mubr.msk.f32.mxu0 %vm85_vm0, %v38_v27 }
  0x38   :  { %5777 = vmatmul.mubr.msk.f32.gmra.mrb[24].mxu0 %vm85_vm0, %v39_v28 }
  0x39   :  { %5779 = vmatprep.mubr.msk.f32.mxu0 %vm85_vm0, %v40_v29 }
  0x3c   :  { %5780 = vmatmul.mubr.msk.f32.gmra.mrb[26].mxu0 %vm85_vm0, %v41_v30 }
  0x3d   :  { %5782 = vmatprep.mubr.msk.f32.mxu0 %vm85_vm0, %v42_v31 }
  0x40   :  { %5783 = vmatmul.mubr.msk.f32.gmra.mrb[28].mxu0 %vm85_vm0, %v43_v32 }
  0x41   :  { %5785 = vmatprep.mubr.msk.f32.mxu0 %vm85_vm0, %v44_v33 }
  0x44   :  { %5786 = vmatmul.mubr.msk.f32.gmra.mrb[30].mxu0 %vm85_vm0, %v45_v34 }
  0x45   :  { %5788 = vmatprep.mubr.msk.f32.mxu0 %vm85_vm0, %v46_v35 }
  0x48   :  { %5789 = vmatmul.mubr.msk.f32.gmra.mrb[32].mxu0 %vm85_vm0, %v47_v36 }
  0x49   :  { %5791 = vmatprep.mubr.msk.f32.mxu0 %vm85_vm0, %v48_v37 }
  0x4c   :  { %5792 = vmatmul.mubr.msk.f32.gmra.mrb[34].mxu0 %vm85_vm0, %v49_v38 }
  0x4d   :  { %5794 = vmatprep.mubr.msk.f32.mxu0 %vm85_vm0, %v50_v39 }
  0x50   :  { %5795 = vmatmul.mubr.msk.f32.gmra.mrb[36].mxu0 %vm85_vm0, %v51_v40 }
  0x51   :  { %5797 = vmatprep.mubr.msk.f32.mxu0 %vm85_vm0, %v52_v41 }
  0x54   :  { %5798 = vmatmul.mubr.msk.f32.gmra.mrb[38].mxu0 %vm85_vm0, %v53_v42 }
  0x55   :  { %5800 = vmatprep.mubr.msk.f32.mxu0 %vm85_vm0, %v54_v43 }
  0x58   :  { %5801 = vmatmul.mubr.msk.f32.gmra.mrb[40].mxu0 %vm85_vm0, %v55_v44 }
  0x59   :  { %5803 = vmatprep.mubr.msk.f32.mxu0 %vm85_vm0, %v56_v45 }
  0x5c   :  { %5804 = vmatmul.mubr.msk.f32.gmra.mrb[42].mxu0 %vm85_vm0, %v57_v46 }
  0x5d   :  { %5806 = vmatprep.mubr.msk.f32.mxu0 %vm85_vm0, %v58_v47 }
  0x60   :  { %5807 = vmatmul.mubr.msk.f32.gmra.mrb[44].mxu0 %vm85_vm0, %v59_v48 }
  0x61   :  { %5809 = vmatprep.mubr.msk.f32.mxu0 %vm85_vm0, %v60_v49 }
  0x64   :  { %5810 = vmatmul.mubr.msk.f32.gmra.mrb[46].mxu0 %vm85_vm0, %v61_v50 }
  0x65   :  { %5812 = vmatprep.mubr.msk.f32.mxu0 %vm85_vm0, %v62_v51 }
  0x68   :  { %5813 = vmatmul.mubr.msk.f32.gmra.mrb[48].mxu0 %vm85_vm0, %v63_v52 }
  0x69   :  { %5815 = vmatprep.mubr.msk.f32.mxu0 %vm85_vm0, %v64_v53 }
  0x6c   :  { %5816 = vmatmul.mubr.msk.f32.gmra.mrb[50].mxu0 %vm85_vm0, %v65_v54 }
  0x6d   :  { %5818 = vmatprep.mubr.msk.f32.mxu0 %vm85_vm0, %v66_v55 }
  0x70   :  { %5819 = vmatmul.mubr.msk.f32.gmra.mrb[52].mxu0 %vm85_vm0, %v67_v56 }
  0x71   :  { %5821 = vmatprep.mubr.msk.f32.mxu0 %vm85_vm0, %v68_v57 }
  0x74   :  { %5822 = vmatmul.mubr.msk.f32.gmra.mrb[54].mxu0 %vm85_vm0, %v69_v58 }
  0x75   :  { %5824 = vmatprep.mubr.msk.f32.mxu0 %vm85_vm0, %v70_v59 }
  0x78   :  { %5825 = vmatmul.mubr.msk.f32.gmra.mrb[56].mxu0 %vm85_vm0, %v71_v60 }
  0x79   :  { %5827 = vmatprep.mubr.msk.f32.mxu0 %vm85_vm0, %v72_v61 }
  0x7c   :  { %5828 = vmatmul.mubr.msk.f32.gmra.mrb[58].mxu0 %vm85_vm0, %v73_v62 }
  0x7d   :  { %5830 = vmatprep.mubr.msk.f32.mxu0 %vm85_vm0, %v74_v63 }
  0x80   :  { %5831 = vmatmul.mubr.msk.f32.gmra.mrb[60].mxu0 %vm85_vm0, %v75_v1 }
  0x81   :  { %5833 = vmatprep.mubr.msk.f32.mxu0 %vm85_vm0, %v76_v2 }
  0x84   :  { %5834 = vmatmul.mubr.msk.f32.gmra.mrb[62].mxu0 %vm85_vm0, %v77_v3 }
  0xdb   :  { %v5742_v5 = vpop.f32.mrb[0].mxu0 }
  0xdc   :  { %v7317_v6 = vadd.f32 %v5742_v5, %v7314_v4  ;;  %v344_v7 = vpop.f32.mrb[1].mxu0 }
  0xdd   :  { %v7320_v8 = vadd.f32 %v7314_v4, %v344_v7 }
  0xde   :  { %v4981_v9 = vmul.f32 -1.442695, %v7317_v6 }
  0xdf   :  { %v4980_v10 = vmul.f32 -1.442695, %v7320_v8  ;;  %v5745_v11 = vpop.f32.mrb[2].mxu0 }
  0xe0   :  { %6204 = vpow2.f32 %v4981_v9  ;;  %v7325_v12 = vadd.f32 %v5745_v11, %v7314_v4  ;;  %v354_v13 = vpop.f32.mrb[3].mxu0 }
  0xe1   :  { %6206 = vpow2.f32 %v4980_v10  ;;  %v7328_v14 = vadd.f32 %v7314_v4, %v354_v13 }
  0xe2   :  { %v4983_v15 = vmul.f32 -1.442695, %v7325_v12 }
  0xe3   :  { %v4982_v16 = vmul.f32 -1.442695, %v7328_v14  ;;  %v5748_v17 = vpop.f32.mrb[4].mxu0 }
  0xe4   :  { %6208 = vpow2.f32 %v4983_v15  ;;  %v7333_v18 = vadd.f32 %v5748_v17, %v7314_v4  ;;  %v364_v19 = vpop.f32.mrb[5].mxu0 }
  0xe5   :  { %6210 = vpow2.f32 %v4982_v16  ;;  %v7336_v20 = vadd.f32 %v7314_v4, %v364_v19 }
  0xe6   :  { %v4985_v21 = vmul.f32 -1.442695, %v7333_v18 }
  0xe7   :  { %v4984_v22 = vmul.f32 -1.442695, %v7336_v20  ;;  %v5751_v23 = vpop.f32.mrb[6].mxu0 }
  0xe8   :  { %6212 = vpow2.f32 %v4985_v21  ;;  %v7341_v24 = vadd.f32 %v5751_v23, %v7314_v4  ;;  %v374_v25 = vpop.f32.mrb[7].mxu0 }
  0xe9   :  { %6214 = vpow2.f32 %v4984_v22  ;;  %v7344_v26 = vadd.f32 %v7314_v4, %v374_v25 }
  0xea   :  { %v6205_v27 = vpop.eup %6204  ;;  %v4987_v28 = vmul.f32 -1.442695, %v7341_v24 }
  0xeb   :  { %v6207_v29 = vpop.eup %6206  ;;  %v856_v30 = vadd.f32 1.0, %v6205_v27  ;;  %v4986_v31 = vmul.f32 -1.442695, %v7344_v26  ;;  %v5754_v32 = vpop.f32.mrb[8].mxu0 }
  0xec   :  { %v855_v33 = vadd.f32 1.0, %v6207_v29  ;;  %6216 = vpow2.f32 %v4987_v28  ;;  %v7349_v34 = vadd.f32 %v5754_v32, %v7314_v4  ;;  %v384_v35 = vpop.f32.mrb[9].mxu0 }
  0xed   :  { %6218 = vrcp.f32 %v856_v30  ;;  %v7352_v36 = vadd.f32 %v7314_v4, %v384_v35 }
  0xee   :  { %v6209_v37 = vpop.eup %6208  ;;  %6220 = vrcp.f32 %v855_v33  ;;  %v4989_v38 = vmul.f32 -1.442695, %v7349_v34 }
  0xef   :  { %v6211_v39 = vpop.eup %6210  ;;  %v858_v40 = vadd.f32 1.0, %v6209_v37  ;;  %6222 = vpow2.f32 %v4986_v31  ;;  %v4988_v41 = vmul.f32 -1.442695, %v7352_v36  ;;  %v5757_v42 = vpop.f32.mrb[10].mxu0 }
  0xf0   :  { %v857_v43 = vadd.f32 1.0, %v6211_v39  ;;  %6224 = vpow2.f32 %v4989_v38  ;;  %v7357_v44 = vadd.f32 %v5757_v42, %v7314_v4  ;;  %v394_v45 = vpop.f32.mrb[11].mxu0 }
  0xf1   :  { %6226 = vrcp.f32 %v858_v40  ;;  %v7360_v46 = vadd.f32 %v7314_v4, %v394_v45 }
  0xf2   :  { %v6213_v47 = vpop.eup %6212  ;;  %6228 = vrcp.f32 %v857_v43  ;;  %v4991_v48 = vmul.f32 -1.442695, %v7357_v44 }
  0xf3   :  { %v6215_v49 = vpop.eup %6214  ;;  %v860_v50 = vadd.f32 1.0, %v6213_v47  ;;  %6230 = vpow2.f32 %v4988_v41  ;;  %v4990_v51 = vmul.f32 -1.442695, %v7360_v46  ;;  %v5760_v52 = vpop.f32.mrb[12].mxu0 }
  0xf4   :  { %v859_v53 = vadd.f32 1.0, %v6215_v49  ;;  %6232 = vpow2.f32 %v4991_v48  ;;  %v7365_v54 = vadd.f32 %v5760_v52, %v7314_v4  ;;  %v404_v55 = vpop.f32.mrb[13].mxu0 }
  0xf5   :  { %6234 = vrcp.f32 %v860_v50  ;;  %v7368_v56 = vadd.f32 %v7314_v4, %v404_v55 }
  0xf6   :  { %v6217_v57 = vpop.eup %6216  ;;  %6236 = vrcp.f32 %v859_v53  ;;  %v4993_v58 = vmul.f32 -1.442695, %v7365_v54 }
  0xf7   :  { %v6219_v59 = vpop.eup %6218  ;;  %v862_v60 = vadd.f32 1.0, %v6217_v57  ;;  %6238 = vpow2.f32 %v4990_v51  ;;  %v4992_v61 = vmul.f32 -1.442695, %v7368_v56  ;;  %v5763_v62 = vpop.f32.mrb[14].mxu0 }
  0xf8   :  { %v6221_v63 = vpop.eup %6220  ;;  %6240 = vpow2.f32 %v4993_v58  ;;  %v7373_v0 = vadd.f32 %v5763_v62, %v7314_v4  ;;  %v414_v1 = vpop.f32.mrb[15].mxu0  ;;  %v1048_v9 = vmul.f32 %v6219_v59, %v7317_v6 }
  0xf9   :  { %v6223_v2 = vpop.eup %6222  ;;  %v7376_v3 = vadd.f32 %v7314_v4, %v414_v1  ;;  %v1047_v5 = vmul.f32 %v6221_v63, %v7320_v8  ;;  %6242 = vpow2.f32 %v4992_v61 }
  0xfa   :  { %v6225_v7 = vpop.eup %6224  ;;  %v861_v10 = vadd.f32 1.0, %v6223_v2  ;;  %v4995_v11 = vmul.f32 -1.442695, %v7373_v0  ;;  %6244 = vrcp.f32 %v862_v60 }
  0xfb   :  { %v6227_v13 = vpop.eup %6226  ;;  %v864_v15 = vadd.f32 1.0, %v6225_v7  ;;  %v4994_v16 = vmul.f32 -1.442695, %v7376_v3  ;;  %v5766_v17 = vpop.f32.mrb[16].mxu0  ;;  %5838 = vmatprep.mubr.msk.f32.mxu1 %vm1117_vm1, %v1047_v5 }
  0xfc   :  { %v6229_v19 = vpop.eup %6228  ;;  %6246 = vrcp.f32 %v861_v10  ;;  %v7384_v21 = vadd.f32 %v5766_v17, %v7314_v4  ;;  %v424_v8 = vpop.f32.mrb[17].mxu0  ;;  %5839 = vmatmul.mubr.msk.f32.vlgmr.msra.gmra.mrb[0].mxu1 %vm1117_vm1, %v1048_v9  ;;  %v1050_v27 = vmul.f32 %v6227_v13, %v7325_v12 }
  0xfd   :  { %v6231_v6 = vpop.eup %6230  ;;  %v1049_v22 = vmul.f32 %v6229_v19, %v7328_v14  ;;  %6248 = vrcp.f32 %v864_v15  ;;  %v7389_v23 = vadd.f32 %v7314_v4, %v424_v8 }
  0xfe   :  { %v6233_v25 = vpop.eup %6232  ;;  %v863_v28 = vadd.f32 1.0, %v6231_v6  ;;  %6250 = vpow2.f32 %v4995_v11  ;;  %v4997_v29 = vmul.f32 -1.442695, %v7384_v21 }
  0xff   :  { %v6235_v30 = vpop.eup %6234  ;;  %v866_v31 = vadd.f32 1.0, %v6233_v25  ;;  %6252 = vpow2.f32 %v4994_v16  ;;  %v4996_v32 = vmul.f32 -1.442695, %v7389_v23  ;;  %v5769_v33 = vpop.f32.mrb[18].mxu0  ;;  %5841 = vmatprep.mubr.msk.f32.mxu1 %vm1117_vm1, %v1049_v22 }
 0x100   :  { %v6237_v14 = vpop.eup %6236  ;;  %6254 = vrcp.f32 %v863_v28  ;;  %v7396_v35 = vadd.f32 %v5769_v33, %v7314_v4  ;;  %v434_v37 = vpop.f32.mrb[19].mxu0  ;;  %5842 = vmatmul.mubr.msk.f32.gmra.mrb[2].mxu1 %vm1117_vm1, %v1050_v27  ;;  %v1052_v41 = vmul.f32 %v6235_v30, %v7333_v18 }
 0x101   :  { %v6239_v12 = vpop.eup %6238  ;;  %v1051_v38 = vmul.f32 %v6237_v14, %v7336_v20  ;;  %6256 = vrcp.f32 %v866_v31  ;;  %v7401_v39 = vadd.f32 %v7314_v4, %v434_v37 }
 0x102   :  { %v6241_v40 = vpop.eup %6240  ;;  %v865_v42 = vadd.f32 1.0, %v6239_v12  ;;  %6258 = vpow2.f32 %v4997_v29  ;;  %v4999_v43 = vmul.f32 -1.442695, %v7396_v35 }
 0x103   :  { %v868_v45 = vadd.f32 1.0, %v6241_v40  ;;  %6260 = vpow2.f32 %v4996_v32  ;;  %v5772_v47 = vpop.f32.mrb[20].mxu0  ;;  %5844 = vmatprep.mubr.msk.f32.mxu1 %vm1117_vm1, %v1051_v38  ;;  %v6243_v48 = vpop.eup %6242  ;;  %v4998_v20 = vmul.f32 -1.442695, %v7401_v39 }
 0x104   :  { %6262 = vrcp.f32 %v865_v42  ;;  %v7408_v49 = vadd.f32 %v5772_v47, %v7314_v4  ;;  %v444_v50 = vpop.f32.mrb[21].mxu0  ;;  %5845 = vmatmul.mubr.msk.f32.gmra.mrb[4].mxu1 %vm1117_vm1, %v1052_v41  ;;  %v6245_v18 = vpop.eup %6244  ;;  %v867_v51 = vadd.f32 1.0, %v6243_v48 }
 0x105   :  { %6264 = vrcp.f32 %v868_v45  ;;  %v7412_v52 = vadd.f32 %v7314_v4, %v444_v50  ;;  %v1054_v62 = vmul.f32 %v6245_v18, %v7341_v24 }
 0x106   :  { %v6247_v53 = vpop.eup %6246  ;;  %6266 = vpow2.f32 %v4999_v43  ;;  %v5001_v55 = vmul.f32 -1.442695, %v7408_v49 }
 0x107   :  { %v6249_v57 = vpop.eup %6248  ;;  %v1053_v58 = vmul.f32 %v6247_v53, %v7344_v26  ;;  %6268 = vrcp.f32 %v867_v51  ;;  %v5000_v59 = vmul.f32 -1.442695, %v7412_v52  ;;  %v5775_v60 = vpop.f32.mrb[22].mxu0 }
 0x108   :  { %v6251_v61 = vpop.eup %6250  ;;  %6270 = vpow2.f32 %v4998_v20  ;;  %v7419_v63 = vadd.f32 %v5775_v60, %v7314_v4  ;;  %v454_v1 = vpop.f32.mrb[23].mxu0  ;;  %v1056_v17 = vmul.f32 %v6249_v57, %v7349_v34 }
 0x109   :  { %v6253_v2 = vpop.eup %6252  ;;  %v870_v5 = vadd.f32 1.0, %v6251_v61  ;;  %6272 = vpow2.f32 %v5001_v55  ;;  %5847 = vmatprep.mubr.msk.f32.mxu1 %vm1117_vm1, %v1053_v58  ;;  %v7423_v7 = vadd.f32 %v7314_v4, %v454_v1 }
 0x10a   :  { %v6255_v26 = vpop.eup %6254  ;;  %v869_v9 = vadd.f32 1.0, %v6253_v2  ;;  %6274 = vpow2.f32 %v5000_v59  ;;  %v5003_v10 = vmul.f32 -1.442695, %v7419_v63  ;;  %5848 = vmatmul.mubr.msk.f32.gmra.mrb[6].mxu1 %vm1117_vm1, %v1054_v62 }
 0x10b   :  { %v6257_v24 = vpop.eup %6256  ;;  %v1055_v11 = vmul.f32 %v6255_v26, %v7352_v36  ;;  %6276 = vrcp.f32 %v870_v5  ;;  %v5002_v13 = vmul.f32 -1.442695, %v7423_v7  ;;  %v5778_v15 = vpop.f32.mrb[24].mxu0 }
 0x10c   :  { %v6259_v16 = vpop.eup %6258  ;;  %6278 = vrcp.f32 %v869_v9  ;;  %v7431_v19 = vadd.f32 %v5778_v15, %v7314_v4  ;;  %v464_v8 = vpop.f32.mrb[25].mxu0  ;;  %v1058_v33 = vmul.f32 %v6257_v24, %v7357_v44 }
 0x10d   :  { %v6261_v6 = vpop.eup %6260  ;;  %v872_v22 = vadd.f32 1.0, %v6259_v16  ;;  %6280 = vpow2.f32 %v5003_v10  ;;  %5850 = vmatprep.mubr.msk.f32.mxu1 %vm1117_vm1, %v1055_v11  ;;  %v7435_v25 = vadd.f32 %v7314_v4, %v464_v8 }
 0x10e   :  { %v6263_v36 = vpop.eup %6262  ;;  %v871_v27 = vadd.f32 1.0, %v6261_v6  ;;  %6282 = vpow2.f32 %v5002_v13  ;;  %v5005_v28 = vmul.f32 -1.442695, %v7431_v19  ;;  %5851 = vmatmul.mubr.msk.f32.gmra.mrb[8].mxu1 %vm1117_vm1, %v1056_v17 }
 0x10f   :  { %v6265_v34 = vpop.eup %6264  ;;  %v1057_v29 = vmul.f32 %v6263_v36, %v7360_v46  ;;  %6284 = vrcp.f32 %v872_v22  ;;  %v5004_v30 = vmul.f32 -1.442695, %v7435_v25  ;;  %v5781_v31 = vpop.f32.mrb[26].mxu0 }
 0x110   :  { %v6267_v32 = vpop.eup %6266  ;;  %6286 = vrcp.f32 %v871_v27  ;;  %v7443_v14 = vadd.f32 %v5781_v31, %v7314_v4  ;;  %v474_v37 = vpop.f32.mrb[27].mxu0  ;;  %v1060_v43 = vmul.f32 %v6265_v34, %v7365_v54 }
 0x111   :  { %v6269_v12 = vpop.eup %6268  ;;  %v874_v38 = vadd.f32 1.0, %v6267_v32  ;;  %6288 = vpow2.f32 %v5005_v28  ;;  %5853 = vmatprep.mubr.msk.f32.mxu1 %vm1117_vm1, %v1057_v29  ;;  %v7447_v40 = vadd.f32 %v7314_v4, %v474_v37 }
 0x112   :  { %v6271_v46 = vpop.eup %6270  ;;  %v1059_v41 = vmul.f32 %v6269_v12, %v7368_v56  ;;  %6290 = vpow2.f32 %v5004_v30  ;;  %v5007_v42 = vmul.f32 -1.442695, %v7443_v14  ;;  %5854 = vmatmul.mubr.msk.f32.gmra.mrb[10].mxu1 %vm1117_vm1, %v1058_v33 }
 0x113   :  { %v6273_v44 = vpop.eup %6272  ;;  %6292 = vrcp.f32 %v874_v38  ;;  %v873_v45 = vadd.f32 1.0, %v6271_v46  ;;  %v5784_v47 = vpop.f32.mrb[28].mxu0  ;;  %v5006_v50 = vmul.f32 -1.442695, %v7447_v40 }
 0x114   :  { %v6275_v48 = vpop.eup %6274  ;;  %v876_v20 = vadd.f32 1.0, %v6273_v44  ;;  %6294 = vpow2.f32 %v5007_v42  ;;  %v7455_v18 = vadd.f32 %v5784_v47, %v7314_v4  ;;  %5856 = vmatprep.mubr.msk.f32.mxu1 %vm1117_vm1, %v1059_v41  ;;  %v484_v56 = vpop.f32.mrb[29].mxu0 }
 0x115   :  { %v6277_v51 = vpop.eup %6276  ;;  %6296 = vrcp.f32 %v873_v45  ;;  %v875_v53 = vadd.f32 1.0, %v6275_v48  ;;  %v7459_v55 = vadd.f32 %v7314_v4, %v484_v56 }
 0x116   :  { %v6279_v54 = vpop.eup %6278  ;;  %6298 = vrcp.f32 %v876_v20  ;;  %v5009_v57 = vmul.f32 -1.442695, %v7455_v18  ;;  %5857 = vmatmul.mubr.msk.f32.gmra.mrb[12].mxu1 %vm1117_vm1, %v1060_v43  ;;  %v1062_v59 = vmul.f32 %v6277_v51, %v7373_v0 }
 0x117   :  { %v6281_v58 = vpop.eup %6280  ;;  %v1061_v60 = vmul.f32 %v6279_v54, %v7376_v3  ;;  %6300 = vrcp.f32 %v875_v53  ;;  %v5787_v61 = vpop.f32.mrb[30].mxu0  ;;  %v5008_v2 = vmul.f32 -1.442695, %v7459_v55 }
 0x118   :  { %v6283_v62 = vpop.eup %6282  ;;  %v878_v1 = vadd.f32 1.0, %v6281_v58  ;;  %6302 = vpow2.f32 %v5006_v50  ;;  %v7467_v5 = vadd.f32 %v5787_v61, %v7314_v4  ;;  %v494_v26 = vpop.f32.mrb[31].mxu0 }
 0x119   :  { %v6285_v9 = vpop.eup %6284  ;;  %v877_v10 = vadd.f32 1.0, %v6283_v62  ;;  %6304 = vpow2.f32 %v5009_v57  ;;  %5859 = vmatprep.mubr.msk.f32.mxu1 %vm1117_vm1, %v1061_v60  ;;  %v7471_v0 = vadd.f32 %v7314_v4, %v494_v26 }
 0x11a   :  { %v6287_v3 = vpop.eup %6286  ;;  %6306 = vrcp.f32 %v878_v1  ;;  %v5011_v24 = vmul.f32 -1.442695, %v7467_v5  ;;  %5860 = vmatmul.mubr.msk.f32.gmra.mrb[14].mxu1 %vm1117_vm1, %v1062_v59  ;;  %v1064_v13 = vmul.f32 %v6285_v9, %v7384_v21 }
 0x11b   :  { %v6289_v11 = vpop.eup %6288  ;;  %v1063_v15 = vmul.f32 %v6287_v3, %v7389_v23  ;;  %6308 = vrcp.f32 %v877_v10  ;;  %v5790_v16 = vpop.f32.mrb[32].mxu0  ;;  %v5010_v6 = vmul.f32 -1.442695, %v7471_v0 }
 0x11c   :  { %v6291_v17 = vpop.eup %6290  ;;  %v880_v8 = vadd.f32 1.0, %v6289_v11  ;;  %6310 = vpow2.f32 %v5008_v2  ;;  %v7479_v22 = vadd.f32 %v5790_v16, %v7314_v4  ;;  %v504_v36 = vpop.f32.mrb[33].mxu0 }
 0x11d   :  { %v6293_v27 = vpop.eup %6292  ;;  %v879_v28 = vadd.f32 1.0, %v6291_v17  ;;  %6312 = vpow2.f32 %v5011_v24  ;;  %5862 = vmatprep.mubr.msk.f32.mxu1 %vm1117_vm1, %v1063_v15  ;;  %v7483_v21 = vadd.f32 %v7314_v4, %v504_v36 }
 0x11e   :  { %v6295_v23 = vpop.eup %6294  ;;  %6314 = vrcp.f32 %v880_v8  ;;  %v5013_v34 = vmul.f32 -1.442695, %v7479_v22  ;;  %5863 = vmatmul.mubr.msk.f32.gmra.mrb[16].mxu1 %vm1117_vm1, %v1064_v13  ;;  %v1066_v41 = vmul.f32 %v6293_v27, %v7396_v35 }
 0x11f   :  { %v6297_v29 = vpop.eup %6296  ;;  %6316 = vrcp.f32 %v879_v28  ;;  %v882_v30 = vadd.f32 1.0, %v6295_v23  ;;  %v5012_v31 = vmul.f32 -1.442695, %v7483_v21  ;;  %v5793_v32 = vpop.f32.mrb[34].mxu0 }
 0x120   :  { %v6299_v33 = vpop.eup %6298  ;;  %v1065_v37 = vmul.f32 %v6297_v29, %v7401_v39  ;;  %6318 = vpow2.f32 %v5010_v6  ;;  %v7490_v12 = vadd.f32 %v5793_v32, %v7314_v4  ;;  %v514_v38 = vpop.f32.mrb[35].mxu0 }
 0x121   :  { %v6301_v46 = vpop.eup %6300  ;;  %6320 = vrcp.f32 %v882_v30  ;;  %v7494_v42 = vadd.f32 %v7314_v4, %v514_v38  ;;  %v1068_v53 = vmul.f32 %v6299_v33, %v7408_v49 }
 0x122   :  { %v6303_v44 = vpop.eup %6302  ;;  %v1067_v43 = vmul.f32 %v6301_v46, %v7412_v52  ;;  %6322 = vpow2.f32 %v5013_v34  ;;  %v5015_v45 = vmul.f32 -1.442695, %v7490_v12  ;;  %5865 = vmatprep.mubr.msk.f32.mxu1 %vm1117_vm1, %v1065_v37 }
 0x123   :  { %v6305_v39 = vpop.eup %6304  ;;  %v881_v47 = vadd.f32 1.0, %v6303_v44  ;;  %6324 = vpow2.f32 %v5012_v31  ;;  %v5014_v48 = vmul.f32 -1.442695, %v7494_v42  ;;  %5866 = vmatmul.mubr.msk.f32.gmra.mrb[18].mxu1 %vm1117_vm1, %v1066_v41  ;;  %v5796_v35 = vpop.f32.mrb[36].mxu0 }
 0x124   :  { %v6307_v20 = vpop.eup %6306  ;;  %v884_v50 = vadd.f32 1.0, %v6305_v39  ;;  %6326 = vpow2.f32 %v5015_v45  ;;  %v7502_v56 = vadd.f32 %v5796_v35, %v7314_v4  ;;  %5868 = vmatprep.mubr.msk.f32.mxu1 %vm1117_vm1, %v1067_v43  ;;  %v524_v52 = vpop.f32.mrb[37].mxu0 }
 0x125   :  { %v6309_v51 = vpop.eup %6308  ;;  %6328 = vrcp.f32 %v881_v47  ;;  %v7507_v54 = vadd.f32 %v7314_v4, %v524_v52  ;;  %v1070_v10 = vmul.f32 %v6307_v20, %v7419_v63 }
 0x126   :  { %v6311_v57 = vpop.eup %6310  ;;  %v1069_v58 = vmul.f32 %v6309_v51, %v7423_v7  ;;  %6330 = vrcp.f32 %v884_v50  ;;  %v5017_v59 = vmul.f32 -1.442695, %v7502_v56 }
 0x127   :  { %v6313_v60 = vpop.eup %6312  ;;  %v883_v61 = vadd.f32 1.0, %v6311_v57  ;;  %6332 = vpow2.f32 %v5014_v48  ;;  %v5016_v62 = vmul.f32 -1.442695, %v7507_v54  ;;  %5869 = vmatmul.mubr.msk.f32.gmra.mrb[20].mxu1 %vm1117_vm1, %v1068_v53  ;;  %v5799_v1 = vpop.f32.mrb[38].mxu0 }
 0x128   :  { %v6315_v2 = vpop.eup %6314  ;;  %v886_v49 = vadd.f32 1.0, %v6313_v60  ;;  %6334 = vpow2.f32 %v5017_v59  ;;  %v7514_v26 = vadd.f32 %v5799_v1, %v7314_v4  ;;  %5871 = vmatprep.mubr.msk.f32.mxu1 %vm1117_vm1, %v1069_v58  ;;  %v534_v7 = vpop.f32.mrb[39].mxu0 }
 0x129   :  { %v6317_v9 = vpop.eup %6316  ;;  %6336 = vrcp.f32 %v883_v61  ;;  %v7519_v3 = vadd.f32 %v7314_v4, %v534_v7  ;;  %v1072_v27 = vmul.f32 %v6315_v2, %v7431_v19 }
 0x12a   :  { %v6319_v24 = vpop.eup %6318  ;;  %v1071_v11 = vmul.f32 %v6317_v9, %v7435_v25  ;;  %6338 = vrcp.f32 %v886_v49  ;;  %v5019_v13 = vmul.f32 -1.442695, %v7514_v26 }
 0x12b   :  { %v6321_v15 = vpop.eup %6320  ;;  %v885_v16 = vadd.f32 1.0, %v6319_v24  ;;  %6340 = vpow2.f32 %v5016_v62  ;;  %v5018_v17 = vmul.f32 -1.442695, %v7519_v3  ;;  %5872 = vmatmul.mubr.msk.f32.gmra.mrb[22].mxu1 %vm1117_vm1, %v1070_v10  ;;  %v5802_v8 = vpop.f32.mrb[40].mxu0 }
 0x12c   :  { %v6323_v6 = vpop.eup %6322  ;;  %6342 = vpow2.f32 %v5019_v13  ;;  %v7526_v63 = vadd.f32 %v5802_v8, %v7314_v4  ;;  %5874 = vmatprep.mubr.msk.f32.mxu1 %vm1117_vm1, %v1071_v11  ;;  %v544_v36 = vpop.f32.mrb[41].mxu0  ;;  %v1074_v43 = vmul.f32 %v6321_v15, %v7443_v14 }
 0x12d   :  { %v6325_v25 = vpop.eup %6324  ;;  %6344 = vrcp.f32 %v885_v16  ;;  %v888_v28 = vadd.f32 1.0, %v6323_v6  ;;  %v7531_v23 = vadd.f32 %v7314_v4, %v544_v36 }
 0x12e   :  { %v6327_v34 = vpop.eup %6326  ;;  %v887_v29 = vadd.f32 1.0, %v6325_v25  ;;  %6346 = vpow2.f32 %v5018_v17  ;;  %v5021_v30 = vmul.f32 -1.442695, %v7526_v63 }
 0x12f   :  { %v6329_v31 = vpop.eup %6328  ;;  %6348 = vrcp.f32 %v888_v28  ;;  %v890_v32 = vadd.f32 1.0, %v6327_v34  ;;  %v5020_v33 = vmul.f32 -1.442695, %v7531_v23  ;;  %5875 = vmatmul.mubr.msk.f32.gmra.mrb[24].mxu1 %vm1117_vm1, %v1072_v27  ;;  %v5805_v37 = vpop.f32.mrb[42].mxu0 }
 0x130   :  { %v6331_v38 = vpop.eup %6330  ;;  %v1073_v19 = vmul.f32 %v6329_v31, %v7447_v40  ;;  %6350 = vrcp.f32 %v887_v29  ;;  %v7538_v46 = vadd.f32 %v5805_v37, %v7314_v4  ;;  %v554_v41 = vpop.f32.mrb[43].mxu0 }
 0x131   :  { %v6333_v44 = vpop.eup %6332  ;;  %6352 = vrcp.f32 %v890_v32  ;;  %v7542_v45 = vadd.f32 %v7314_v4, %v554_v41  ;;  %v1076_v58 = vmul.f32 %v6331_v38, %v7455_v18 }
 0x132   :  { %v6335_v39 = vpop.eup %6334  ;;  %v889_v47 = vadd.f32 1.0, %v6333_v44  ;;  %6354 = vpow2.f32 %v5021_v30  ;;  %v5023_v48 = vmul.f32 -1.442695, %v7538_v46  ;;  %5877 = vmatprep.mubr.msk.f32.mxu1 %vm1117_vm1, %v1073_v19 }
 0x133   :  { %v6337_v40 = vpop.eup %6336  ;;  %v892_v35 = vadd.f32 1.0, %v6335_v39  ;;  %6356 = vpow2.f32 %v5020_v33  ;;  %v5022_v20 = vmul.f32 -1.442695, %v7542_v45  ;;  %5878 = vmatmul.mubr.msk.f32.gmra.mrb[26].mxu1 %vm1117_vm1, %v1074_v43  ;;  %v5808_v50 = vpop.f32.mrb[44].mxu0 }
 0x134   :  { %v6339_v14 = vpop.eup %6338  ;;  %v1075_v52 = vmul.f32 %v6337_v40, %v7459_v55  ;;  %6358 = vrcp.f32 %v889_v47  ;;  %v7550_v51 = vadd.f32 %v5808_v50, %v7314_v4  ;;  %v564_v53 = vpop.f32.mrb[45].mxu0 }
 0x135   :  { %v6341_v57 = vpop.eup %6340  ;;  %6360 = vrcp.f32 %v892_v35  ;;  %v7554_v59 = vadd.f32 %v7314_v4, %v564_v53  ;;  %v1078_v11 = vmul.f32 %v6339_v14, %v7467_v5 }
 0x136   :  { %v6343_v60 = vpop.eup %6342  ;;  %v891_v61 = vadd.f32 1.0, %v6341_v57  ;;  %6362 = vpow2.f32 %v5023_v48  ;;  %v5025_v62 = vmul.f32 -1.442695, %v7550_v51  ;;  %5880 = vmatprep.mubr.msk.f32.mxu1 %vm1117_vm1, %v1075_v52 }
 0x137   :  { %v6345_v55 = vpop.eup %6344  ;;  %v894_v1 = vadd.f32 1.0, %v6343_v60  ;;  %6364 = vpow2.f32 %v5022_v20  ;;  %5881 = vmatmul.mubr.msk.f32.gmra.mrb[28].mxu1 %vm1117_vm1, %v1076_v58  ;;  %v5811_v2 = vpop.f32.mrb[46].mxu0  ;;  %v5024_v7 = vmul.f32 -1.442695, %v7554_v59 }
 0x138   :  { %v6347_v49 = vpop.eup %6346  ;;  %v1077_v18 = vmul.f32 %v6345_v55, %v7471_v0  ;;  %6366 = vrcp.f32 %v891_v61  ;;  %v7562_v9 = vadd.f32 %v5811_v2, %v7314_v4  ;;  %v574_v10 = vpop.f32.mrb[47].mxu0 }
 0x139   :  { %v6349_v24 = vpop.eup %6348  ;;  %6368 = vrcp.f32 %v894_v1  ;;  %v893_v13 = vadd.f32 1.0, %v6347_v49  ;;  %v7566_v15 = vadd.f32 %v7314_v4, %v574_v10 }
 0x13a   :  { %v6351_v16 = vpop.eup %6350  ;;  %6370 = vpow2.f32 %v5025_v62  ;;  %v5027_v17 = vmul.f32 -1.442695, %v7562_v9  ;;  %5883 = vmatprep.mubr.msk.f32.mxu1 %vm1117_vm1, %v1077_v18  ;;  %v1080_v34 = vmul.f32 %v6349_v24, %v7479_v22 }
 0x13b   :  { %v6353_v0 = vpop.eup %6352  ;;  %v1079_v8 = vmul.f32 %v6351_v16, %v7483_v21  ;;  %6372 = vrcp.f32 %v893_v13  ;;  %v5026_v6 = vmul.f32 -1.442695, %v7566_v15  ;;  %5884 = vmatmul.mubr.msk.f32.gmra.mrb[30].mxu1 %vm1117_vm1, %v1078_v11  ;;  %v5814_v5 = vpop.f32.mrb[48].mxu0 }
 0x13c   :  { %v6355_v36 = vpop.eup %6354  ;;  %6374 = vpow2.f32 %v5024_v7  ;;  %v7574_v25 = vadd.f32 %v5814_v5, %v7314_v4  ;;  %v584_v27 = vpop.f32.mrb[49].mxu0  ;;  %v1082_v39 = vmul.f32 %v6353_v0, %v7490_v12 }
 0x13d   :  { %v6357_v28 = vpop.eup %6356  ;;  %v896_v29 = vadd.f32 1.0, %v6355_v36  ;;  %6376 = vpow2.f32 %v5027_v17  ;;  %5886 = vmatprep.mubr.msk.f32.mxu1 %vm1117_vm1, %v1079_v8  ;;  %v7579_v21 = vadd.f32 %v7314_v4, %v584_v27 }
 0x13e   :  { %v6359_v30 = vpop.eup %6358  ;;  %v895_v31 = vadd.f32 1.0, %v6357_v28  ;;  %6378 = vpow2.f32 %v5026_v6  ;;  %v5029_v32 = vmul.f32 -1.442695, %v7574_v25 }
 0x13f   :  { %v6361_v33 = vpop.eup %6360  ;;  %v1081_v37 = vmul.f32 %v6359_v30, %v7494_v42  ;;  %6380 = vrcp.f32 %v896_v29  ;;  %v5028_v38 = vmul.f32 -1.442695, %v7579_v21  ;;  %5887 = vmatmul.mubr.msk.f32.gmra.mrb[32].mxu1 %vm1117_vm1, %v1080_v34  ;;  %v5817_v22 = vpop.f32.mrb[50].mxu0 }
 0x140   :  { %v6363_v19 = vpop.eup %6362  ;;  %6382 = vrcp.f32 %v895_v31  ;;  %v7586_v41 = vadd.f32 %v5817_v22, %v7314_v4  ;;  %v594_v44 = vpop.f32.mrb[51].mxu0  ;;  %v1084_v60 = vmul.f32 %v6361_v33, %v7502_v56 }
 0x141   :  { %v6365_v43 = vpop.eup %6364  ;;  %v898_v47 = vadd.f32 1.0, %v6363_v19  ;;  %6384 = vpow2.f32 %v5029_v32  ;;  %5889 = vmatprep.mubr.msk.f32.mxu1 %vm1117_vm1, %v1081_v37  ;;  %v7591_v42 = vadd.f32 %v7314_v4, %v594_v44 }
 0x142   :  { %v6367_v48 = vpop.eup %6366  ;;  %v897_v40 = vadd.f32 1.0, %v6365_v43  ;;  %6386 = vpow2.f32 %v5028_v38  ;;  %v5031_v35 = vmul.f32 -1.442695, %v7586_v41 }
 0x143   :  { %v6369_v20 = vpop.eup %6368  ;;  %v1083_v50 = vmul.f32 %v6367_v48, %v7507_v54  ;;  %6388 = vrcp.f32 %v898_v47  ;;  %v5030_v14 = vmul.f32 -1.442695, %v7591_v42  ;;  %5890 = vmatmul.mubr.msk.f32.gmra.mrb[34].mxu1 %vm1117_vm1, %v1082_v39  ;;  %v5820_v12 = vpop.f32.mrb[52].mxu0 }
 0x144   :  { %v6371_v52 = vpop.eup %6370  ;;  %6390 = vrcp.f32 %v897_v40  ;;  %v7598_v53 = vadd.f32 %v5820_v12, %v7314_v4  ;;  %v604_v57 = vpop.f32.mrb[53].mxu0  ;;  %v1086_v13 = vmul.f32 %v6369_v20, %v7514_v26 }
 0x145   :  { %v6373_v58 = vpop.eup %6372  ;;  %v900_v61 = vadd.f32 1.0, %v6371_v52  ;;  %6392 = vpow2.f32 %v5031_v35  ;;  %5892 = vmatprep.mubr.msk.f32.mxu1 %vm1117_vm1, %v1083_v50  ;;  %v7603_v54 = vadd.f32 %v7314_v4, %v604_v57 }
 0x146   :  { %v6375_v62 = vpop.eup %6374  ;;  %v1085_v55 = vmul.f32 %v6373_v58, %v7519_v3  ;;  %6394 = vpow2.f32 %v5030_v14  ;;  %v5033_v1 = vmul.f32 -1.442695, %v7598_v53 }
 0x147   :  { %v6377_v2 = vpop.eup %6376  ;;  %6396 = vrcp.f32 %v900_v61  ;;  %v899_v49 = vadd.f32 1.0, %v6375_v62  ;;  %5893 = vmatmul.mubr.msk.f32.gmra.mrb[36].mxu1 %vm1117_vm1, %v1084_v60  ;;  %v5823_v18 = vpop.f32.mrb[54].mxu0  ;;  %v5032_v10 = vmul.f32 -1.442695, %v7603_v54 }
 0x148   :  { %v6379_v56 = vpop.eup %6378  ;;  %v902_v7 = vadd.f32 1.0, %v6377_v2  ;;  %6398 = vpow2.f32 %v5033_v1  ;;  %v7610_v24 = vadd.f32 %v5823_v18, %v7314_v4  ;;  %5895 = vmatprep.mubr.msk.f32.mxu1 %vm1117_vm1, %v1085_v55  ;;  %v614_v3 = vpop.f32.mrb[55].mxu0 }
 0x149   :  { %v6381_v11 = vpop.eup %6380  ;;  %6400 = vrcp.f32 %v899_v49  ;;  %v901_v16 = vadd.f32 1.0, %v6379_v56  ;;  %v7615_v17 = vadd.f32 %v7314_v4, %v614_v3 }
 0x14a   :  { %v6383_v0 = vpop.eup %6382  ;;  %6402 = vrcp.f32 %v902_v7  ;;  %v5035_v8 = vmul.f32 -1.442695, %v7610_v24  ;;  %v1088_v31 = vmul.f32 %v6381_v11, %v7526_v63 }
 0x14b   :  { %v6385_v6 = vpop.eup %6384  ;;  %v1087_v5 = vmul.f32 %v6383_v0, %v7531_v23  ;;  %6404 = vrcp.f32 %v901_v16  ;;  %5896 = vmatmul.mubr.msk.f32.gmra.mrb[38].mxu1 %vm1117_vm1, %v1086_v13  ;;  %v5826_v36 = vpop.f32.mrb[56].mxu0  ;;  %v5034_v26 = vmul.f32 -1.442695, %v7615_v17 }
 0x14c   :  { %v6387_v27 = vpop.eup %6386  ;;  %v904_v28 = vadd.f32 1.0, %v6385_v6  ;;  %6406 = vpow2.f32 %v5032_v10  ;;  %v7622_v34 = vadd.f32 %v5826_v36, %v7314_v4  ;;  %v624_v29 = vpop.f32.mrb[57].mxu0 }
 0x14d   :  { %v6389_v30 = vpop.eup %6388  ;;  %v903_v32 = vadd.f32 1.0, %v6387_v27  ;;  %6408 = vpow2.f32 %v5035_v8  ;;  %5898 = vmatprep.mubr.msk.f32.mxu1 %vm1117_vm1, %v1087_v5  ;;  %v7627_v23 = vadd.f32 %v7314_v4, %v624_v29  ;;  %v6716_v4 = vld [vmem:[%s9437_s2 + $0xb] ss:$0 sm:$0xff] }
 0x14e   :  { %v6391_v33 = vpop.eup %6390  ;;  %6410 = vrcp.f32 %v904_v28  ;;  %v5037_v37 = vmul.f32 -1.442695, %v7622_v34  ;;  %v1090_v40 = vmul.f32 %v6389_v30, %v7538_v46 }
 0x14f   :  { %v6393_v38 = vpop.eup %6392  ;;  %v1089_v22 = vmul.f32 %v6391_v33, %v7542_v45  ;;  %6412 = vrcp.f32 %v903_v32  ;;  %5899 = vmatmul.mubr.msk.f32.gmra.mrb[40].mxu1 %vm1117_vm1, %v1088_v31  ;;  %v5829_v19 = vpop.f32.mrb[58].mxu0  ;;  %v5036_v43 = vmul.f32 -1.442695, %v7627_v23 }
 0x150   :  { %v6395_v44 = vpop.eup %6394  ;;  %v906_v63 = vadd.f32 1.0, %v6393_v38  ;;  %6414 = vpow2.f32 %v5034_v26  ;;  %v7636_v39 = vadd.f32 %v6716_v4, %v5829_v19  ;;  %v634_v47 = vpop.f32.mrb[59].mxu0 }
 0x151   :  { %v6397_v48 = vpop.eup %6396  ;;  %v905_v45 = vadd.f32 1.0, %v6395_v44  ;;  %6416 = vpow2.f32 %v5037_v37  ;;  %5901 = vmatprep.mubr.msk.f32.mxu1 %vm1117_vm1, %v1089_v22  ;;  %v7640_v35 = vadd.f32 %v6716_v4, %v634_v47 }
 0x152   :  { %v6399_v20 = vpop.eup %6398  ;;  %6418 = vrcp.f32 %v906_v63  ;;  %v5039_v50 = vmul.f32 -1.442695, %v7636_v39  ;;  %v1092_v55 = vmul.f32 %v6397_v48, %v7550_v51 }
 0x153   :  { %v6401_v14 = vpop.eup %6400  ;;  %6420 = vrcp.f32 %v905_v45  ;;  %v908_v12 = vadd.f32 1.0, %v6399_v20  ;;  %v5038_v52 = vmul.f32 -1.442695, %v7640_v35  ;;  %5902 = vmatmul.mubr.msk.f32.gmra.mrb[42].mxu1 %vm1117_vm1, %v1090_v40  ;;  %v5832_v57 = vpop.f32.mrb[60].mxu0 }
 0x154   :  { %v6403_v58 = vpop.eup %6402  ;;  %v1091_v46 = vmul.f32 %v6401_v14, %v7554_v59  ;;  %6422 = vpow2.f32 %v5036_v43  ;;  %v7646_v60 = vadd.f32 %v6716_v4, %v5832_v57  ;;  %v644_v61 = vpop.f32.mrb[61].mxu0 }
 0x155   :  { %v6405_v62 = vpop.eup %6404  ;;  %6424 = vrcp.f32 %v908_v12  ;;  %v7649_v1 = vadd.f32 %v6716_v4, %v644_v61  ;;  %v1094_v16 = vmul.f32 %v6403_v58, %v7562_v9 }
 0x156   :  { %v6407_v2 = vpop.eup %6406  ;;  %v1093_v49 = vmul.f32 %v6405_v62, %v7566_v15  ;;  %6426 = vpow2.f32 %v5039_v50  ;;  %v5041_v18 = vmul.f32 -1.442695, %v7646_v60  ;;  %5904 = vmatprep.mubr.msk.f32.mxu1 %vm1117_vm1, %v1091_v46 }
 0x157   :  { %v6409_v56 = vpop.eup %6408  ;;  %v907_v59 = vadd.f32 1.0, %v6407_v2  ;;  %6428 = vpow2.f32 %v5038_v52  ;;  %v5040_v7 = vmul.f32 -1.442695, %v7649_v1  ;;  %5905 = vmatmul.mubr.msk.f32.gmra.mrb[44].mxu1 %vm1117_vm1, %v1092_v55  ;;  %v5835_v10 = vpop.f32.mrb[62].mxu0 }
 0x158   :  { %v6411_v51 = vpop.eup %6410  ;;  %v910_v3 = vadd.f32 1.0, %v6409_v56  ;;  %6430 = vpow2.f32 %v5041_v18  ;;  %v7656_v11 = vadd.f32 %v6716_v4, %v5835_v10  ;;  %5907 = vmatprep.mubr.msk.f32.mxu1 %vm1117_vm1, %v1093_v49  ;;  %v654_v15 = vpop.f32.mrb[63].mxu0 }
 0x159   :  { %v6413_v13 = vpop.eup %6412  ;;  %6432 = vrcp.f32 %v907_v59  ;;  %v7660_v0 = vadd.f32 %v6716_v4, %v654_v15  ;;  %v1096_v30 = vmul.f32 %v6411_v51, %v7574_v25 }
 0x15a   :  { %v6415_v8 = vpop.eup %6414  ;;  %v1095_v6 = vmul.f32 %v6413_v13, %v7579_v21  ;;  %6434 = vrcp.f32 %v910_v3  ;;  %v5043_v5 = vmul.f32 -1.442695, %v7656_v11 }
 0x15b   :  { %v6417_v36 = vpop.eup %6416  ;;  %v909_v27 = vadd.f32 1.0, %v6415_v8  ;;  %6436 = vpow2.f32 %v5040_v7  ;;  %v5042_v28 = vmul.f32 -1.442695, %v7660_v0  ;;  %5908 = vmatmul.mubr.msk.f32.gmra.mrb[46].mxu1 %vm1117_vm1, %v1094_v16 }
 0x15c   :  { %v6419_v26 = vpop.eup %6418  ;;  %v912_v29 = vadd.f32 1.0, %v6417_v36  ;;  %6438 = vpow2.f32 %v5043_v5  ;;  %5910 = vmatprep.mubr.msk.f32.mxu1 %vm1117_vm1, %v1095_v6 }
 0x15d   :  { %v6421_v9 = vpop.eup %6420  ;;  %6440 = vrcp.f32 %v909_v27  ;;  %v1098_v22 = vmul.f32 %v6419_v26, %v7586_v41 }
 0x15e   :  { %v6423_v21 = vpop.eup %6422  ;;  %v1097_v31 = vmul.f32 %v6421_v9, %v7591_v42  ;;  %6442 = vpow2.f32 %v5042_v28 }
 0x15f   :  { %v6425_v32 = vpop.eup %6424  ;;  %v911_v33 = vadd.f32 1.0, %v6423_v21  ;;  %5911 = vmatmul.mubr.msk.f32.gmra.mrb[48].mxu1 %vm1117_vm1, %v1096_v30  ;;  %6444 = vrcp.f32 %v912_v29 }
 0x160   :  { %v6427_v37 = vpop.eup %6426  ;;  %5913 = vmatprep.mubr.msk.f32.mxu1 %vm1117_vm1, %v1097_v31  ;;  %v1100_v48 = vmul.f32 %v6425_v32, %v7598_v53 }
 0x161   :  { %v6429_v38 = vpop.eup %6428  ;;  %6446 = vrcp.f32 %v911_v33  ;;  %v914_v19 = vadd.f32 1.0, %v6427_v37 }
 0x162   :  { %v6431_v44 = vpop.eup %6430  ;;  %v913_v25 = vadd.f32 1.0, %v6429_v38 }
 0x163   :  { %v6433_v63 = vpop.eup %6432  ;;  %6448 = vrcp.f32 %v914_v19  ;;  %v916_v43 = vadd.f32 1.0, %v6431_v44  ;;  %5914 = vmatmul.mubr.msk.f32.gmra.mrb[50].mxu1 %vm1117_vm1, %v1098_v22 }
 0x164   :  { %v6435_v42 = vpop.eup %6434  ;;  %v1099_v4 = vmul.f32 %v6433_v63, %v7603_v54  ;;  %6450 = vrcp.f32 %v913_v25 }
 0x165   :  { %v6437_v47 = vpop.eup %6436  ;;  %6452 = vrcp.f32 %v916_v43  ;;  %v1102_v12 = vmul.f32 %v6435_v42, %v7610_v24 }
 0x166   :  { %v6439_v40 = vpop.eup %6438  ;;  %v915_v45 = vadd.f32 1.0, %v6437_v47  ;;  %5916 = vmatprep.mubr.msk.f32.mxu1 %vm1117_vm1, %v1099_v4 }
 0x167   :  { %v6441_v41 = vpop.eup %6440  ;;  %v918_v20 = vadd.f32 1.0, %v6439_v40  ;;  %5917 = vmatmul.mubr.msk.f32.gmra.mrb[52].mxu1 %vm1117_vm1, %v1100_v48 }
 0x168   :  { %v1101_v50 = vmul.f32 %v6441_v41, %v7615_v17  ;;  %6454 = vrcp.f32 %v915_v45  ;;  %v6443_v14 = vpop.eup %6442 }
 0x169   :  { %v6445_v54 = vpop.eup %6444  ;;  %v917_v52 = vadd.f32 1.0, %v6443_v14  ;;  %6456 = vrcp.f32 %v918_v20 }
 0x16a   :  { %5919 = vmatprep.mubr.msk.f32.mxu1 %vm1117_vm1, %v1101_v50  ;;  %v1104_v46 = vmul.f32 %v6445_v54, %v7622_v34 }
 0x16b   :  { %v6447_v53 = vpop.eup %6446  ;;  %5920 = vmatmul.mubr.msk.f32.gmra.mrb[54].mxu1 %vm1117_vm1, %v1102_v12  ;;  %6458 = vrcp.f32 %v917_v52 }
 0x16c   :  { %v1103_v57 = vmul.f32 %v6447_v53, %v7627_v23 }
 0x16d   :  { %v6449_v58 = vpop.eup %6448 }
 0x16e   :  { %v6451_v61 = vpop.eup %6450  ;;  %5922 = vmatprep.mubr.msk.f32.mxu1 %vm1117_vm1, %v1103_v57  ;;  %v1106_v62 = vmul.f32 %v6449_v58, %v7636_v39  ;;  %v7700_v39 = vld [vmem:[%s9437_s2 + $0xc] ss:$0 sm:$0xff] }
 0x16f   :  { %v1105_v17 = vmul.f32 %v6451_v61, %v7640_v35  ;;  %5923 = vmatmul.mubr.msk.f32.gmra.mrb[56].mxu1 %vm1117_vm1, %v1104_v46  ;;  %v6453_v24 = vpop.eup %6452 }
 0x170   :  { %v1108_v34 = vmul.f32 %v6453_v24, %v7646_v60 }
 0x171   :  { %5925 = vmatprep.mubr.msk.f32.mxu1 %vm1117_vm1, %v1105_v17 }
 0x172   :  { %v6455_v55 = vpop.eup %6454 }
 0x173   :  { %v1107_v2 = vmul.f32 %v6455_v55, %v7649_v1  ;;  %5926 = vmatmul.mubr.msk.f32.gmra.mrb[58].mxu1 %vm1117_vm1, %v1106_v62  ;;  %v6457_v23 = vpop.eup %6456 }
 0x174   :  { %v1110_v18 = vmul.f32 %v6457_v23, %v7656_v11 }
 0x175   :  { %5928 = vmatprep.mubr.msk.f32.mxu1 %vm1117_vm1, %v1107_v2  ;;  %v6459_v49 = vpop.eup %6458 }
 0x176   :  { %v1109_v35 = vmul.f32 %v6459_v49, %v7660_v0 }
 0x177   :  { %5929 = vmatmul.mubr.msk.f32.gmra.mrb[60].mxu1 %vm1117_vm1, %v1108_v34 }
 0x178   :  { %5931 = vmatprep.mubr.msk.f32.mxu1 %vm1117_vm1, %v1109_v35 }
 0x17b   :  { %5932 = vmatmul.mubr.msk.f32.gmra.mrb[62].mxu1 %vm1117_vm1, %v1110_v18 }
 0x1cf   :  { %v5840_v1 = vpop.f32.mrb[0].mxu1 }
 0x1d0   :  { %v7703_v60 = vadd.f32 %v5840_v1, %v7700_v39  ;;  %v1376_v56 = vpop.f32.mrb[1].mxu1 }
 0x1d1   :  { %v7706_v59 = vadd.f32 %v7700_v39, %v1376_v56 }
 0x1d2   :  { %v5110_v7 = vmul.f32 -1.442695, %v7703_v60 }
 0x1d3   :  { %v5109_v10 = vmul.f32 -1.442695, %v7706_v59  ;;  %v5843_v51 = vpop.f32.mrb[2].mxu1 }
 0x1d4   :  { %6460 = vpow2.f32 %v5110_v7  ;;  %v7711_v3 = vadd.f32 %v5843_v51, %v7700_v39  ;;  %v1386_v11 = vpop.f32.mrb[3].mxu1 }
 0x1d5   :  { %6462 = vpow2.f32 %v5109_v10  ;;  %v7714_v15 = vadd.f32 %v7700_v39, %v1386_v11  ;;  %v9438_v11 = vmov 0.0  }
 0x1d6   :  { %v5112_v13 = vmul.f32 -1.442695, %v7711_v3  ;;  %2144 = vst.msk [vmem:[#allocation2] sm:$0xff] %vm2143_vm2, %v9438_v11  ;;  %2145 = vst.msk [vmem:[#allocation2 + $0x8] sm:$0xff] %vm2143_vm2, %v9438_v11 }
 0x1d7   :  { %v5111_v16 = vmul.f32 -1.442695, %v7714_v15  ;;  %v5846_v0 = vpop.f32.mrb[4].mxu1  ;;  %2146 = vst.msk [vmem:[#allocation2 + $0x10] sm:$0xff] %vm2143_vm2, %v9438_v11  ;;  %2147 = vst.msk [vmem:[#allocation2 + $0x18] sm:$0xff] %vm2143_vm2, %v9438_v11 }
 0x1d8   :  { %6464 = vpow2.f32 %v5112_v13  ;;  %v7719_v8 = vadd.f32 %v5846_v0, %v7700_v39  ;;  %v1396_v6 = vpop.f32.mrb[5].mxu1  ;;  %2148 = vst.msk [vmem:[#allocation2 + $0x20] sm:$0xff] %vm2143_vm2, %v9438_v11  ;;  %2149 = vst.msk [vmem:[#allocation2 + $0x28] sm:$0xff] %vm2143_vm2, %v9438_v11 }
 0x1d9   :  { %6466 = vpow2.f32 %v5111_v16  ;;  %v7722_v5 = vadd.f32 %v7700_v39, %v1396_v6  ;;  %2150 = vst.msk [vmem:[#allocation2 + $0x30] sm:$0xff] %vm2143_vm2, %v9438_v11  ;;  %2151 = vst.msk [vmem:[#allocation2 + $0x38] sm:$0xff] %vm2143_vm2, %v9438_v11 }
 0x1da   :  { %v5114_v36 = vmul.f32 -1.442695, %v7719_v8  ;;  %2152 = vst.msk [vmem:[#allocation2 + $0x40] sm:$0xff] %vm2143_vm2, %v9438_v11  ;;  %2153 = vst.msk [vmem:[#allocation2 + $0x48] sm:$0xff] %vm2143_vm2, %v9438_v11 }
 0x1db   :  { %v5113_v27 = vmul.f32 -1.442695, %v7722_v5  ;;  %2155 = vst.msk [vmem:[#allocation2 + $0x2d0] sm:$0xff] %vm2143_vm2, %v9438_v11  ;;  %2156 = vst.msk [vmem:[#allocation2 + $0x2d8] sm:$0xff] %vm2143_vm2, %v9438_v11 }
 0x1dc   :  { %6468 = vpow2.f32 %v5114_v36  ;;  %2157 = vst.msk [vmem:[#allocation2 + $0x2e0] sm:$0xff] %vm2143_vm2, %v9438_v11  ;;  %2158 = vst.msk [vmem:[#allocation2 + $0x2e8] sm:$0xff] %vm2143_vm2, %v9438_v11 }
 0x1dd   :  { %6470 = vpow2.f32 %v5113_v27  ;;  %v5849_v28 = vpop.f32.mrb[6].mxu1  ;;  %2159 = vst.msk [vmem:[#allocation2 + $0x2f0] sm:$0xff] %vm2143_vm2, %v9438_v11  ;;  %2160 = vst.msk [vmem:[#allocation2 + $0x2f8] sm:$0xff] %vm2143_vm2, %v9438_v11 }
 0x1de   :  { %v6461_v26 = vpop.eup %6460  ;;  %v7727_v29 = vadd.f32 %v5849_v28, %v7700_v39  ;;  %v1406_v9 = vpop.f32.mrb[7].mxu1  ;;  %2161 = vst.msk [vmem:[#allocation2 + $0x300] sm:$0xff] %vm2143_vm2, %v9438_v11  ;;  %2162 = vst.msk [vmem:[#allocation2 + $0x308] sm:$0xff] %vm2143_vm2, %v9438_v11 }
 0x1df   :  { %v6463_v30 = vpop.eup %6462  ;;  %v1888_v21 = vadd.f32 1.0, %v6461_v26  ;;  %v7730_v31 = vadd.f32 %v7700_v39, %v1406_v9  ;;  %2163 = vst.msk [vmem:[#allocation2 + $0x310] sm:$0xff] %vm2143_vm2, %v9438_v11  ;;  %2164 = vst.msk [vmem:[#allocation2 + $0x318] sm:$0xff] %vm2143_vm2, %v9438_v11 }
 0x1e0   :  { %v1887_v32 = vadd.f32 1.0, %v6463_v30  ;;  %v5116_v33 = vmul.f32 -1.442695, %v7727_v29  ;;  %2166 = vst.msk [vmem:[#allocation2 + $0x50] sm:$0xff] %vm2143_vm2, %v9438_v11  ;;  %2167 = vst.msk [vmem:[#allocation2 + $0xa0] sm:$0xff] %vm2143_vm2, %v9438_v11 }
 0x1e1   :  { %6472 = vrcp.f32 %v1888_v21  ;;  %v5115_v37 = vmul.f32 -1.442695, %v7730_v31  ;;  %v5852_v38 = vpop.f32.mrb[8].mxu1  ;;  %2168 = vst.msk [vmem:[#allocation2 + $0xf0] sm:$0xff] %vm2143_vm2, %v9438_v11  ;;  %2169 = vst.msk [vmem:[#allocation2 + $0x140] sm:$0xff] %vm2143_vm2, %v9438_v11 }
 0x1e2   :  { %v6465_v22 = vpop.eup %6464  ;;  %6474 = vrcp.f32 %v1887_v32  ;;  %v7735_v19 = vadd.f32 %v5852_v38, %v7700_v39  ;;  %v1416_v44 = vpop.f32.mrb[9].mxu1  ;;  %2170 = vst.msk [vmem:[#allocation2 + $0x190] sm:$0xff] %vm2143_vm2, %v9438_v11  ;;  %2171 = vst.msk [vmem:[#allocation2 + $0x1e0] sm:$0xff] %vm2143_vm2, %v9438_v11 }
 0x1e3   :  { %v6467_v25 = vpop.eup %6466  ;;  %v1890_v63 = vadd.f32 1.0, %v6465_v22  ;;  %6476 = vpow2.f32 %v5116_v33  ;;  %v7738_v43 = vadd.f32 %v7700_v39, %v1416_v44  ;;  %2172 = vst.msk [vmem:[#allocation2 + $0x230] sm:$0xff] %vm2143_vm2, %v9438_v11  ;;  %2173 = vst.msk [vmem:[#allocation2 + $0x280] sm:$0xff] %vm2143_vm2, %v9438_v11 }
 0x1e4   :  { %v1889_v42 = vadd.f32 1.0, %v6467_v25  ;;  %6478 = vpow2.f32 %v5115_v37  ;;  %v5118_v4 = vmul.f32 -1.442695, %v7735_v19  ;;  %2175 = vst.msk [vmem:[#allocation2 + $0x98] sm:$0xff] %vm2143_vm2, %v9438_v11  ;;  %2176 = vst.msk [vmem:[#allocation2 + $0xe8] sm:$0xff] %vm2143_vm2, %v9438_v11 }
 0x1e5   :  { %6480 = vrcp.f32 %v1890_v63  ;;  %v5117_v47 = vmul.f32 -1.442695, %v7738_v43  ;;  %v5855_v48 = vpop.f32.mrb[10].mxu1  ;;  %2177 = vst.msk [vmem:[#allocation2 + $0x138] sm:$0xff] %vm2143_vm2, %v9438_v11  ;;  %2178 = vst.msk [vmem:[#allocation2 + $0x188] sm:$0xff] %vm2143_vm2, %v9438_v11 }
 0x1e6   :  { %v6469_v40 = vpop.eup %6468  ;;  %6482 = vrcp.f32 %v1889_v42  ;;  %v7743_v45 = vadd.f32 %v5855_v48, %v7700_v39  ;;  %v1426_v41 = vpop.f32.mrb[11].mxu1  ;;  %2179 = vst.msk [vmem:[#allocation2 + $0x1d8] sm:$0xff] %vm2143_vm2, %v9438_v11  ;;  %2180 = vst.msk [vmem:[#allocation2 + $0x228] sm:$0xff] %vm2143_vm2, %v9438_v11 }
 0x1e7   :  { %v6471_v20 = vpop.eup %6470  ;;  %v1892_v50 = vadd.f32 1.0, %v6469_v40  ;;  %6484 = vpow2.f32 %v5118_v4  ;;  %v7746_v14 = vadd.f32 %v7700_v39, %v1426_v41  ;;  %2181 = vst.msk [vmem:[#allocation2 + $0x278] sm:$0xff] %vm2143_vm2, %v9438_v11  ;;  %2182 = vst.msk [vmem:[#allocation2 + $0x2c8] sm:$0xff] %vm2143_vm2, %v9438_v11 }
 0x1e8   :  { %v1891_v12 = vadd.f32 1.0, %v6471_v20  ;;  %6486 = vpow2.f32 %v5117_v47  ;;  %v5120_v54 = vmul.f32 -1.442695, %v7743_v45 }
 0x1e9   :  { %6488 = vrcp.f32 %v1892_v50  ;;  %v5119_v52 = vmul.f32 -1.442695, %v7746_v14  ;;  %v5858_v53 = vpop.f32.mrb[12].mxu1 }
 0x1ea   :  { %6490 = vrcp.f32 %v1891_v12  ;;  %v7751_v57 = vadd.f32 %v5858_v53, %v7700_v39  ;;  %v1436_v58 = vpop.f32.mrb[13].mxu1 }
 0x1eb   :  { %v6473_v46 = vpop.eup %6472  ;;  %6492 = vpow2.f32 %v5120_v54  ;;  %v7754_v61 = vadd.f32 %v7700_v39, %v1436_v58 }
 0x1ec   :  { %v6475_v17 = vpop.eup %6474  ;;  %v2080_v24 = vmul.f32 %v6473_v46, %v7703_v60  ;;  %6494 = vpow2.f32 %v5119_v52  ;;  %v5122_v62 = vmul.f32 -1.442695, %v7751_v57 }
 0x1ed   :  { %v6477_v55 = vpop.eup %6476  ;;  %v2079_v2 = vmul.f32 %v6475_v17, %v7706_v59  ;;  %v5121_v23 = vmul.f32 -1.442695, %v7754_v61  ;;  %v5861_v34 = vpop.f32.mrb[14].mxu1 }
 0x1ee   :  { %v6479_v49 = vpop.eup %6478  ;;  %2185 = vst.msk [vmem:[#allocation2 + $0x60] sm:$0xff] %vm2143_vm2, %v2080_v24  ;;  %v1894_v35 = vadd.f32 1.0, %v6477_v55  ;;  %6496 = vpow2.f32 %v5122_v62  ;;  %v7762_v18 = vadd.f32 %v5861_v34, %v7700_v39  ;;  %v1446_v1 = vpop.f32.mrb[15].mxu1 }
 0x1ef   :  { %v6481_v56 = vpop.eup %6480  ;;  %2184 = vst.msk [vmem:[#allocation2 + $0x58] sm:$0xff] %vm2143_vm2, %v2079_v2  ;;  %v1893_v60 = vadd.f32 1.0, %v6479_v49  ;;  %6498 = vpow2.f32 %v5121_v23  ;;  %v7766_v7 = vadd.f32 %v7700_v39, %v1446_v1 }
 0x1f0   :  { %v6483_v59 = vpop.eup %6482  ;;  %v2082_v10 = vmul.f32 %v6481_v56, %v7711_v3  ;;  %6500 = vrcp.f32 %v1894_v35  ;;  %v5124_v51 = vmul.f32 -1.442695, %v7762_v18 }
 0x1f1   :  { %v6485_v3 = vpop.eup %6484  ;;  %v2081_v13 = vmul.f32 %v6483_v59, %v7714_v15  ;;  %6502 = vrcp.f32 %v1893_v60  ;;  %v5123_v16 = vmul.f32 -1.442695, %v7766_v7  ;;  %v5864_v0 = vpop.f32.mrb[16].mxu1 }
 0x1f2   :  { %v6487_v6 = vpop.eup %6486  ;;  %2187 = vst.msk [vmem:[#allocation2 + $0x70] sm:$0xff] %vm2143_vm2, %v2082_v10  ;;  %v1896_v36 = vadd.f32 1.0, %v6485_v3  ;;  %6504 = vpow2.f32 %v5124_v51  ;;  %v7846_v27 = vadd.f32 %v5864_v0, %v7700_v39  ;;  %v1456_v28 = vpop.f32.mrb[17].mxu1 }
 0x1f3   :  { %v6489_v26 = vpop.eup %6488  ;;  %2186 = vst.msk [vmem:[#allocation2 + $0x68] sm:$0xff] %vm2143_vm2, %v2081_v13  ;;  %v1895_v9 = vadd.f32 1.0, %v6487_v6  ;;  %6506 = vpow2.f32 %v5123_v16  ;;  %v7850_v15 = vadd.f32 %v7700_v39, %v1456_v28 }
 0x1f4   :  { %v6491_v30 = vpop.eup %6490  ;;  %v2084_v21 = vmul.f32 %v6489_v26, %v7719_v8  ;;  %6508 = vrcp.f32 %v1896_v36  ;;  %v5126_v32 = vmul.f32 -1.442695, %v7846_v27 }
 0x1f5   :  { %v6493_v33 = vpop.eup %6492  ;;  %v2083_v37 = vmul.f32 %v6491_v30, %v7722_v5  ;;  %6510 = vrcp.f32 %v1895_v9  ;;  %v5125_v38 = vmul.f32 -1.442695, %v7850_v15 }
 0x1f6   :  { %v6495_v22 = vpop.eup %6494  ;;  %2189 = vst.msk [vmem:[#allocation2 + $0x80] sm:$0xff] %vm2143_vm2, %v2084_v21  ;;  %v1898_v44 = vadd.f32 1.0, %v6493_v33  ;;  %6512 = vpow2.f32 %v5126_v32  ;;  %v5867_v25 = vpop.f32.mrb[18].mxu1 }
 0x1f7   :  { %2188 = vst.msk [vmem:[#allocation2 + $0x78] sm:$0xff] %vm2143_vm2, %v2083_v37  ;;  %v1897_v63 = vadd.f32 1.0, %v6495_v22  ;;  %6514 = vpow2.f32 %v5125_v38  ;;  %v7859_v8 = vadd.f32 %v5867_v25, %v7700_v39  ;;  %v1466_v42 = vpop.f32.mrb[19].mxu1 }
 0x1f8   :  { %v6497_v4 = vpop.eup %6496  ;;  %6516 = vrcp.f32 %v1898_v44  ;;  %v7862_v5 = vadd.f32 %v7700_v39, %v1466_v42 }
 0x1f9   :  { %v6499_v47 = vpop.eup %6498  ;;  %6518 = vrcp.f32 %v1897_v63  ;;  %v1900_v48 = vadd.f32 1.0, %v6497_v4  ;;  %v5128_v40 = vmul.f32 -1.442695, %v7859_v8 }
 0x1fa   :  { %v6501_v41 = vpop.eup %6500  ;;  %v1899_v20 = vadd.f32 1.0, %v6499_v47  ;;  %v5127_v50 = vmul.f32 -1.442695, %v7862_v5  ;;  %v5870_v12 = vpop.f32.mrb[20].mxu1 }
 0x1fb   :  { %v6503_v54 = vpop.eup %6502  ;;  %v2086_v52 = vmul.f32 %v6501_v41, %v7727_v29  ;;  %6520 = vrcp.f32 %v1900_v48  ;;  %v7868_v53 = vadd.f32 %v5870_v12, %v7700_v39  ;;  %v1476_v58 = vpop.f32.mrb[21].mxu1 }
 0x1fc   :  { %v6505_v46 = vpop.eup %6504  ;;  %v2085_v17 = vmul.f32 %v6503_v54, %v7730_v31  ;;  %6522 = vrcp.f32 %v1899_v20  ;;  %v7872_v24 = vadd.f32 %v7700_v39, %v1476_v58 }
 0x1fd   :  { %v6507_v62 = vpop.eup %6506  ;;  %2191 = vst.msk [vmem:[#allocation2 + $0x90] sm:$0xff] %vm2143_vm2, %v2086_v52  ;;  %v1902_v55 = vadd.f32 1.0, %v6505_v46  ;;  %6524 = vpow2.f32 %v5128_v40  ;;  %v5130_v2 = vmul.f32 -1.442695, %v7868_v53 }
 0x1fe   :  { %v6509_v29 = vpop.eup %6508  ;;  %2190 = vst.msk [vmem:[#allocation2 + $0x88] sm:$0xff] %vm2143_vm2, %v2085_v17  ;;  %v1901_v23 = vadd.f32 1.0, %v6507_v62  ;;  %6526 = vpow2.f32 %v5127_v50  ;;  %v5129_v34 = vmul.f32 -1.442695, %v7872_v24  ;;  %v5873_v49 = vpop.f32.mrb[22].mxu1 }
 0x1ff   :  { %v6511_v31 = vpop.eup %6510  ;;  %v2088_v35 = vmul.f32 %v6509_v29, %v7735_v19  ;;  %6528 = vrcp.f32 %v1902_v55  ;;  %v7880_v1 = vadd.f32 %v5873_v49, %v7700_v39  ;;  %v1486_v56 = vpop.f32.mrb[23].mxu1 }
 0x200   :  { %v6513_v60 = vpop.eup %6512  ;;  %v2087_v59 = vmul.f32 %v6511_v31, %v7738_v43  ;;  %6530 = vrcp.f32 %v1901_v23  ;;  %v7884_v10 = vadd.f32 %v7700_v39, %v1486_v56 }
 0x201   :  { %v6515_v51 = vpop.eup %6514  ;;  %2193 = vst.msk [vmem:[#allocation2 + $0xb0] sm:$0xff] %vm2143_vm2, %v2088_v35  ;;  %v1904_v3 = vadd.f32 1.0, %v6513_v60  ;;  %6532 = vpow2.f32 %v5130_v2  ;;  %v5132_v13 = vmul.f32 -1.442695, %v7880_v1 }
 0x202   :  { %v6517_v19 = vpop.eup %6516  ;;  %2192 = vst.msk [vmem:[#allocation2 + $0xa8] sm:$0xff] %vm2143_vm2, %v2087_v59  ;;  %v1903_v16 = vadd.f32 1.0, %v6515_v51  ;;  %6534 = vpow2.f32 %v5129_v34  ;;  %v5131_v0 = vmul.f32 -1.442695, %v7884_v10  ;;  %v5876_v6 = vpop.f32.mrb[24].mxu1 }
 0x203   :  { %v6519_v43 = vpop.eup %6518  ;;  %v2090_v36 = vmul.f32 %v6517_v19, %v7743_v45  ;;  %6536 = vrcp.f32 %v1904_v3  ;;  %v7892_v28 = vadd.f32 %v5876_v6, %v7700_v39  ;;  %v1496_v26 = vpop.f32.mrb[25].mxu1 }
 0x204   :  { %v2089_v9 = vmul.f32 %v6519_v43, %v7746_v14  ;;  %6538 = vrcp.f32 %v1903_v16  ;;  %v7896_v30 = vadd.f32 %v7700_v39, %v1496_v26 }
 0x205   :  { %v6521_v21 = vpop.eup %6520  ;;  %2195 = vst.msk [vmem:[#allocation2 + $0xc0] sm:$0xff] %vm2143_vm2, %v2090_v36  ;;  %6540 = vpow2.f32 %v5132_v13  ;;  %v5134_v32 = vmul.f32 -1.442695, %v7892_v28 }
 0x206   :  { %v6523_v33 = vpop.eup %6522  ;;  %2194 = vst.msk [vmem:[#allocation2 + $0xb8] sm:$0xff] %vm2143_vm2, %v2089_v9  ;;  %v2092_v45 = vmul.f32 %v6521_v21, %v7751_v57  ;;  %6542 = vpow2.f32 %v5131_v0  ;;  %v5133_v37 = vmul.f32 -1.442695, %v7896_v30  ;;  %v5879_v38 = vpop.f32.mrb[26].mxu1 }
 0x207   :  { %v6525_v14 = vpop.eup %6524  ;;  %v2091_v22 = vmul.f32 %v6523_v33, %v7754_v61  ;;  %6544 = vpow2.f32 %v5134_v32  ;;  %v7905_v44 = vadd.f32 %v5879_v38, %v7700_v39  ;;  %v1506_v25 = vpop.f32.mrb[27].mxu1 }
 0x208   :  { %v6527_v63 = vpop.eup %6526  ;;  %2197 = vst.msk [vmem:[#allocation2 + $0xd0] sm:$0xff] %vm2143_vm2, %v2092_v45  ;;  %v1906_v42 = vadd.f32 1.0, %v6525_v14  ;;  %6546 = vpow2.f32 %v5133_v37  ;;  %v7909_v4 = vadd.f32 %v7700_v39, %v1506_v25 }
 0x209   :  { %v6529_v57 = vpop.eup %6528  ;;  %2196 = vst.msk [vmem:[#allocation2 + $0xc8] sm:$0xff] %vm2143_vm2, %v2091_v22  ;;  %v1905_v47 = vadd.f32 1.0, %v6527_v63  ;;  %v5136_v48 = vmul.f32 -1.442695, %v7905_v44 }
 0x20a   :  { %v6531_v61 = vpop.eup %6530  ;;  %v2094_v40 = vmul.f32 %v6529_v57, %v7762_v18  ;;  %6548 = vrcp.f32 %v1906_v42  ;;  %v5135_v41 = vmul.f32 -1.442695, %v7909_v4  ;;  %v5882_v20 = vpop.f32.mrb[28].mxu1 }
 0x20b   :  { %v6533_v50 = vpop.eup %6532  ;;  %v2093_v12 = vmul.f32 %v6531_v61, %v7766_v7  ;;  %6550 = vrcp.f32 %v1905_v47  ;;  %v7917_v54 = vadd.f32 %v5882_v20, %v7700_v39  ;;  %v1516_v52 = vpop.f32.mrb[29].mxu1 }
 0x20c   :  { %v6535_v58 = vpop.eup %6534  ;;  %2199 = vst.msk [vmem:[#allocation2 + $0xe0] sm:$0xff] %vm2143_vm2, %v2094_v40  ;;  %v1908_v46 = vadd.f32 1.0, %v6533_v50  ;;  %6552 = vpow2.f32 %v5136_v48  ;;  %v7921_v17 = vadd.f32 %v7700_v39, %v1516_v52 }
 0x20d   :  { %v6537_v18 = vpop.eup %6536  ;;  %2198 = vst.msk [vmem:[#allocation2 + $0xd8] sm:$0xff] %vm2143_vm2, %v2093_v12  ;;  %v1907_v62 = vadd.f32 1.0, %v6535_v58  ;;  %6554 = vpow2.f32 %v5135_v41  ;;  %v5138_v7 = vmul.f32 -1.442695, %v7917_v54 }
 0x20e   :  { %v6539_v55 = vpop.eup %6538  ;;  %v2096_v2 = vmul.f32 %v6537_v18, %v7846_v27  ;;  %6556 = vrcp.f32 %v1908_v46  ;;  %v5137_v29 = vmul.f32 -1.442695, %v7921_v17  ;;  %v5885_v23 = vpop.f32.mrb[30].mxu1 }
 0x20f   :  { %v6541_v34 = vpop.eup %6540  ;;  %v2095_v49 = vmul.f32 %v6539_v55, %v7850_v15  ;;  %6558 = vrcp.f32 %v1907_v62  ;;  %v7929_v31 = vadd.f32 %v5885_v23, %v7700_v39  ;;  %v1526_v35 = vpop.f32.mrb[31].mxu1 }
 0x210   :  { %v6543_v56 = vpop.eup %6542  ;;  %2201 = vst.msk [vmem:[#allocation2 + $0x100] sm:$0xff] %vm2143_vm2, %v2096_v2  ;;  %v1910_v60 = vadd.f32 1.0, %v6541_v34  ;;  %6560 = vpow2.f32 %v5138_v7  ;;  %v7933_v59 = vadd.f32 %v7700_v39, %v1526_v35 }
 0x211   :  { %v6545_v27 = vpop.eup %6544  ;;  %2200 = vst.msk [vmem:[#allocation2 + $0xf8] sm:$0xff] %vm2143_vm2, %v2095_v49  ;;  %v1909_v51 = vadd.f32 1.0, %v6543_v56  ;;  %6562 = vpow2.f32 %v5137_v29  ;;  %v5140_v13 = vmul.f32 -1.442695, %v7929_v31 }
 0x212   :  { %v6547_v3 = vpop.eup %6546  ;;  %6564 = vrcp.f32 %v1910_v60  ;;  %v1912_v15 = vadd.f32 1.0, %v6545_v27  ;;  %v5888_v19 = vpop.f32.mrb[32].mxu1  ;;  %v5139_v0 = vmul.f32 -1.442695, %v7933_v59 }
 0x213   :  { %6566 = vrcp.f32 %v1909_v51  ;;  %v1911_v16 = vadd.f32 1.0, %v6547_v3  ;;  %v7939_v6 = vadd.f32 %v5888_v19, %v7700_v39  ;;  %v1536_v43 = vpop.f32.mrb[33].mxu1 }
 0x214   :  { %v6549_v36 = vpop.eup %6548  ;;  %6568 = vrcp.f32 %v1912_v15  ;;  %v7942_v26 = vadd.f32 %v7700_v39, %v1536_v43 }
 0x215   :  { %v6551_v9 = vpop.eup %6550  ;;  %v2098_v21 = vmul.f32 %v6549_v36, %v7859_v8  ;;  %6570 = vrcp.f32 %v1911_v16  ;;  %v5142_v32 = vmul.f32 -1.442695, %v7939_v6 }
 0x216   :  { %v6553_v33 = vpop.eup %6552  ;;  %v2097_v45 = vmul.f32 %v6551_v9, %v7862_v5  ;;  %6572 = vpow2.f32 %v5140_v13  ;;  %v5891_v37 = vpop.f32.mrb[34].mxu1  ;;  %v5141_v22 = vmul.f32 -1.442695, %v7942_v26 }
 0x217   :  { %v6555_v38 = vpop.eup %6554  ;;  %2203 = vst.msk [vmem:[#allocation2 + $0x110] sm:$0xff] %vm2143_vm2, %v2098_v21  ;;  %v1914_v14 = vadd.f32 1.0, %v6553_v33  ;;  %6574 = vpow2.f32 %v5139_v0  ;;  %v7950_v25 = vadd.f32 %v5891_v37, %v7700_v39  ;;  %v1546_v63 = vpop.f32.mrb[35].mxu1 }
 0x218   :  { %v6557_v8 = vpop.eup %6556  ;;  %2202 = vst.msk [vmem:[#allocation2 + $0x108] sm:$0xff] %vm2143_vm2, %v2097_v45  ;;  %v1913_v42 = vadd.f32 1.0, %v6555_v38  ;;  %6576 = vpow2.f32 %v5142_v32  ;;  %v7954_v5 = vadd.f32 %v7700_v39, %v1546_v63 }
 0x219   :  { %v6559_v57 = vpop.eup %6558  ;;  %v2100_v47 = vmul.f32 %v6557_v8, %v7868_v53  ;;  %6578 = vrcp.f32 %v1914_v14  ;;  %v5144_v48 = vmul.f32 -1.442695, %v7950_v25 }
 0x21a   :  { %v6561_v61 = vpop.eup %6560  ;;  %v2099_v40 = vmul.f32 %v6559_v57, %v7872_v24  ;;  %6580 = vrcp.f32 %v1913_v42  ;;  %v5894_v41 = vpop.f32.mrb[36].mxu1  ;;  %v5143_v12 = vmul.f32 -1.442695, %v7954_v5 }
 0x21b   :  { %v6563_v20 = vpop.eup %6562  ;;  %2205 = vst.msk [vmem:[#allocation2 + $0x120] sm:$0xff] %vm2143_vm2, %v2100_v47  ;;  %v1916_v50 = vadd.f32 1.0, %v6561_v61  ;;  %6582 = vpow2.f32 %v5141_v22  ;;  %v7962_v52 = vadd.f32 %v5894_v41, %v7700_v39  ;;  %v1556_v58 = vpop.f32.mrb[37].mxu1 }
 0x21c   :  { %v6565_v53 = vpop.eup %6564  ;;  %2204 = vst.msk [vmem:[#allocation2 + $0x118] sm:$0xff] %vm2143_vm2, %v2099_v40  ;;  %v1915_v46 = vadd.f32 1.0, %v6563_v20  ;;  %6584 = vpow2.f32 %v5144_v48  ;;  %v7966_v24 = vadd.f32 %v7700_v39, %v1556_v58 }
 0x21d   :  { %v6567_v18 = vpop.eup %6566  ;;  %v2102_v62 = vmul.f32 %v6565_v53, %v7880_v1  ;;  %6586 = vrcp.f32 %v1916_v50  ;;  %v5146_v7 = vmul.f32 -1.442695, %v7962_v52 }
 0x21e   :  { %v6569_v55 = vpop.eup %6568  ;;  %v2101_v2 = vmul.f32 %v6567_v18, %v7884_v10  ;;  %6588 = vrcp.f32 %v1915_v46  ;;  %v5145_v29 = vmul.f32 -1.442695, %v7966_v24  ;;  %v5897_v23 = vpop.f32.mrb[38].mxu1 }
 0x21f   :  { %v6571_v34 = vpop.eup %6570  ;;  %2207 = vst.msk [vmem:[#allocation2 + $0x130] sm:$0xff] %vm2143_vm2, %v2102_v62  ;;  %v2104_v49 = vmul.f32 %v6569_v55, %v7892_v28  ;;  %6590 = vpow2.f32 %v5143_v12  ;;  %v7975_v35 = vadd.f32 %v5897_v23, %v7700_v39  ;;  %v1566_v1 = vpop.f32.mrb[39].mxu1 }
 0x220   :  { %v6573_v56 = vpop.eup %6572  ;;  %2206 = vst.msk [vmem:[#allocation2 + $0x128] sm:$0xff] %vm2143_vm2, %v2101_v2  ;;  %v2103_v60 = vmul.f32 %v6571_v34, %v7896_v30  ;;  %6592 = vpow2.f32 %v5146_v7  ;;  %v7980_v10 = vadd.f32 %v7700_v39, %v1566_v1 }
 0x221   :  { %v6575_v27 = vpop.eup %6574  ;;  %2209 = vst.msk [vmem:[#allocation2 + $0x150] sm:$0xff] %vm2143_vm2, %v2104_v49  ;;  %v1918_v51 = vadd.f32 1.0, %v6573_v56  ;;  %6594 = vpow2.f32 %v5145_v29  ;;  %v5148_v15 = vmul.f32 -1.442695, %v7975_v35 }
 0x222   :  { %v6577_v28 = vpop.eup %6576  ;;  %2208 = vst.msk [vmem:[#allocation2 + $0x148] sm:$0xff] %vm2143_vm2, %v2103_v60  ;;  %v1917_v3 = vadd.f32 1.0, %v6575_v27  ;;  %v5900_v13 = vpop.f32.mrb[40].mxu1  ;;  %v5147_v30 = vmul.f32 -1.442695, %v7980_v10 }
 0x223   :  { %v6579_v19 = vpop.eup %6578  ;;  %6596 = vrcp.f32 %v1918_v51  ;;  %v1920_v16 = vadd.f32 1.0, %v6577_v28  ;;  %v7987_v0 = vadd.f32 %v5900_v13, %v7700_v39  ;;  %v1576_v43 = vpop.f32.mrb[41].mxu1 }
 0x224   :  { %v6581_v36 = vpop.eup %6580  ;;  %v2106_v9 = vmul.f32 %v6579_v19, %v7905_v44  ;;  %6598 = vrcp.f32 %v1917_v3  ;;  %v7991_v21 = vadd.f32 %v7700_v39, %v1576_v43 }
 0x225   :  { %v6583_v32 = vpop.eup %6582  ;;  %v2105_v33 = vmul.f32 %v6581_v36, %v7909_v4  ;;  %6600 = vrcp.f32 %v1920_v16  ;;  %v5150_v38 = vmul.f32 -1.442695, %v7987_v0 }
 0x226   :  { %v6585_v45 = vpop.eup %6584  ;;  %2211 = vst.msk [vmem:[#allocation2 + $0x160] sm:$0xff] %vm2143_vm2, %v2106_v9  ;;  %v1919_v37 = vadd.f32 1.0, %v6583_v32  ;;  %6602 = vpow2.f32 %v5148_v15  ;;  %v5903_v14 = vpop.f32.mrb[42].mxu1  ;;  %v5149_v63 = vmul.f32 -1.442695, %v7991_v21 }
 0x227   :  { %v6587_v22 = vpop.eup %6586  ;;  %2210 = vst.msk [vmem:[#allocation2 + $0x158] sm:$0xff] %vm2143_vm2, %v2105_v33  ;;  %v1922_v44 = vadd.f32 1.0, %v6585_v45  ;;  %6604 = vpow2.f32 %v5147_v30  ;;  %v7999_v8 = vadd.f32 %v5903_v14, %v7700_v39  ;;  %v1586_v4 = vpop.f32.mrb[43].mxu1 }
 0x228   :  { %v6589_v42 = vpop.eup %6588  ;;  %v2108_v57 = vmul.f32 %v6587_v22, %v7917_v54  ;;  %6606 = vrcp.f32 %v1919_v37  ;;  %v8003_v47 = vadd.f32 %v7700_v39, %v1586_v4 }
 0x229   :  { %v6591_v48 = vpop.eup %6590  ;;  %v2107_v61 = vmul.f32 %v6589_v42, %v7921_v17  ;;  %6608 = vrcp.f32 %v1922_v44  ;;  %v5152_v54 = vmul.f32 -1.442695, %v7999_v8 }
 0x22a   :  { %v6593_v40 = vpop.eup %6592  ;;  %2213 = vst.msk [vmem:[#allocation2 + $0x170] sm:$0xff] %vm2143_vm2, %v2108_v57  ;;  %v1921_v41 = vadd.f32 1.0, %v6591_v48  ;;  %6610 = vpow2.f32 %v5150_v38  ;;  %v5906_v20 = vpop.f32.mrb[44].mxu1  ;;  %v5151_v46 = vmul.f32 -1.442695, %v8003_v47 }
 0x22b   :  { %v6595_v50 = vpop.eup %6594  ;;  %2212 = vst.msk [vmem:[#allocation2 + $0x168] sm:$0xff] %vm2143_vm2, %v2107_v61  ;;  %v1924_v12 = vadd.f32 1.0, %v6593_v40  ;;  %6612 = vpow2.f32 %v5149_v63  ;;  %v8010_v58 = vadd.f32 %v5906_v20, %v7700_v39  ;;  %v1596_v53 = vpop.f32.mrb[45].mxu1 }
 0x22c   :  { %6614 = vrcp.f32 %v1921_v41  ;;  %v1923_v17 = vadd.f32 1.0, %v6595_v50  ;;  %v8014_v18 = vadd.f32 %v7700_v39, %v1596_v53 }
 0x22d   :  { %v6597_v62 = vpop.eup %6596  ;;  %6616 = vrcp.f32 %v1924_v12  ;;  %v5154_v7 = vmul.f32 -1.442695, %v8010_v58 }
 0x22e   :  { %v6599_v55 = vpop.eup %6598  ;;  %v2110_v2 = vmul.f32 %v6597_v62, %v7929_v31  ;;  %6618 = vrcp.f32 %v1923_v17  ;;  %v5153_v29 = vmul.f32 -1.442695, %v8014_v18  ;;  %v5909_v23 = vpop.f32.mrb[46].mxu1 }
 0x22f   :  { %v6601_v34 = vpop.eup %6600  ;;  %v2109_v49 = vmul.f32 %v6599_v55, %v7933_v59  ;;  %6620 = vpow2.f32 %v5152_v54  ;;  %v8021_v1 = vadd.f32 %v5909_v23, %v7700_v39  ;;  %v1606_v56 = vpop.f32.mrb[47].mxu1 }
 0x230   :  { %v6603_v60 = vpop.eup %6602  ;;  %2215 = vst.msk [vmem:[#allocation2 + $0x180] sm:$0xff] %vm2143_vm2, %v2110_v2  ;;  %v2112_v27 = vmul.f32 %v6601_v34, %v7939_v6  ;;  %6622 = vpow2.f32 %v5151_v46  ;;  %v8026_v31 = vadd.f32 %v7700_v39, %v1606_v56 }
 0x231   :  { %v6605_v51 = vpop.eup %6604  ;;  %2214 = vst.msk [vmem:[#allocation2 + $0x178] sm:$0xff] %vm2143_vm2, %v2109_v49  ;;  %v1926_v28 = vadd.f32 1.0, %v6603_v60  ;;  %6624 = vpow2.f32 %v5154_v7  ;;  %v5156_v59 = vmul.f32 -1.442695, %v8021_v1 }
 0x232   :  { %v6607_v3 = vpop.eup %6606  ;;  %2217 = vst.msk [vmem:[#allocation2 + $0x1a0] sm:$0xff] %vm2143_vm2, %v2112_v27  ;;  %v1925_v15 = vadd.f32 1.0, %v6605_v51  ;;  %6626 = vpow2.f32 %v5153_v29  ;;  %v5155_v13 = vmul.f32 -1.442695, %v8026_v31  ;;  %v5912_v19 = vpop.f32.mrb[48].mxu1 }
 0x233   :  { %v6609_v6 = vpop.eup %6608  ;;  %v2111_v16 = vmul.f32 %v6607_v3, %v7942_v26  ;;  %6628 = vrcp.f32 %v1926_v28  ;;  %v8034_v30 = vadd.f32 %v5912_v19, %v7700_v39  ;;  %v1616_v43 = vpop.f32.mrb[49].mxu1 }
 0x234   :  { %v6611_v36 = vpop.eup %6610  ;;  %v2114_v9 = vmul.f32 %v6609_v6, %v7950_v25  ;;  %6630 = vrcp.f32 %v1925_v15  ;;  %v8038_v32 = vadd.f32 %v7700_v39, %v1616_v43 }
 0x235   :  { %v6613_v33 = vpop.eup %6612  ;;  %2216 = vst.msk [vmem:[#allocation2 + $0x198] sm:$0xff] %vm2143_vm2, %v2111_v16  ;;  %v1928_v45 = vadd.f32 1.0, %v6611_v36  ;;  %6632 = vpow2.f32 %v5156_v59  ;;  %v5158_v37 = vmul.f32 -1.442695, %v8034_v30 }
 0x236   :  { %v6615_v26 = vpop.eup %6614  ;;  %2219 = vst.msk [vmem:[#allocation2 + $0x1b0] sm:$0xff] %vm2143_vm2, %v2114_v9  ;;  %v1927_v38 = vadd.f32 1.0, %v6613_v33  ;;  %6634 = vpow2.f32 %v5155_v13  ;;  %v5157_v14 = vmul.f32 -1.442695, %v8038_v32  ;;  %v5915_v22 = vpop.f32.mrb[50].mxu1 }
 0x237   :  { %v6617_v25 = vpop.eup %6616  ;;  %v2113_v44 = vmul.f32 %v6615_v26, %v7954_v5  ;;  %6636 = vrcp.f32 %v1928_v45  ;;  %v8046_v63 = vadd.f32 %v5915_v22, %v7700_v39  ;;  %v1626_v4 = vpop.f32.mrb[51].mxu1 }
 0x238   :  { %v6619_v42 = vpop.eup %6618  ;;  %v2116_v57 = vmul.f32 %v6617_v25, %v7962_v52  ;;  %6638 = vrcp.f32 %v1927_v38  ;;  %v8050_v48 = vadd.f32 %v7700_v39, %v1626_v4 }
 0x239   :  { %v6621_v61 = vpop.eup %6620  ;;  %2218 = vst.msk [vmem:[#allocation2 + $0x1a8] sm:$0xff] %vm2143_vm2, %v2113_v44  ;;  %v2115_v40 = vmul.f32 %v6619_v42, %v7966_v24  ;;  %6640 = vpow2.f32 %v5158_v37  ;;  %v5160_v5 = vmul.f32 -1.442695, %v8046_v63 }
 0x23a   :  { %v6623_v41 = vpop.eup %6622  ;;  %2221 = vst.msk [vmem:[#allocation2 + $0x1c0] sm:$0xff] %vm2143_vm2, %v2116_v57  ;;  %v1930_v20 = vadd.f32 1.0, %v6621_v61  ;;  %6642 = vpow2.f32 %v5157_v14  ;;  %v5918_v50 = vpop.f32.mrb[52].mxu1  ;;  %v5159_v46 = vmul.f32 -1.442695, %v8050_v48 }
 0x23b   :  { %v6625_v12 = vpop.eup %6624  ;;  %2220 = vst.msk [vmem:[#allocation2 + $0x1b8] sm:$0xff] %vm2143_vm2, %v2115_v40  ;;  %v1929_v52 = vadd.f32 1.0, %v6623_v41  ;;  %6644 = vpow2.f32 %v5160_v5  ;;  %v8058_v54 = vadd.f32 %v5918_v50, %v7700_v39  ;;  %v1636_v53 = vpop.f32.mrb[53].mxu1 }
 0x23c   :  { %v6627_v17 = vpop.eup %6626  ;;  %6646 = vrcp.f32 %v1930_v20  ;;  %v1932_v24 = vadd.f32 1.0, %v6625_v12  ;;  %v8062_v62 = vadd.f32 %v7700_v39, %v1636_v53 }
 0x23d   :  { %v6629_v7 = vpop.eup %6628  ;;  %6648 = vrcp.f32 %v1929_v52  ;;  %v1931_v55 = vadd.f32 1.0, %v6627_v17  ;;  %v5162_v2 = vmul.f32 -1.442695, %v8058_v54 }
 0x23e   :  { %v6631_v29 = vpop.eup %6630  ;;  %v2118_v23 = vmul.f32 %v6629_v7, %v7975_v35  ;;  %6650 = vrcp.f32 %v1932_v24  ;;  %v5921_v34 = vpop.f32.mrb[54].mxu1  ;;  %v5161_v59 = vmul.f32 -1.442695, %v8062_v62 }
 0x23f   :  { %v6633_v49 = vpop.eup %6632  ;;  %v2117_v56 = vmul.f32 %v6631_v29, %v7980_v10  ;;  %6652 = vrcp.f32 %v1931_v55  ;;  %v8068_v60 = vadd.f32 %v5921_v34, %v7700_v39  ;;  %v1646_v27 = vpop.f32.mrb[55].mxu1  ;;  %v8077_v39 = vld [vmem:[%s9437_s2 + $0xc] ss:$0 sm:$0xff] }
 0x240   :  { %v6635_v51 = vpop.eup %6634  ;;  %2223 = vst.msk [vmem:[#allocation2 + $0x1d0] sm:$0xff] %vm2143_vm2, %v2118_v23  ;;  %v1934_v28 = vadd.f32 1.0, %v6633_v49  ;;  %6654 = vpow2.f32 %v5159_v46  ;;  %v8080_v10 = vadd.f32 %v8077_v39, %v1646_v27 }
 0x241   :  { %v6637_v3 = vpop.eup %6636  ;;  %2222 = vst.msk [vmem:[#allocation2 + $0x1c8] sm:$0xff] %vm2143_vm2, %v2117_v56  ;;  %v1933_v35 = vadd.f32 1.0, %v6635_v51  ;;  %6656 = vpow2.f32 %v5162_v2  ;;  %v5164_v15 = vmul.f32 -1.442695, %v8068_v60 }
 0x242   :  { %v6639_v13 = vpop.eup %6638  ;;  %v2120_v19 = vmul.f32 %v6637_v3, %v7987_v0  ;;  %6658 = vrcp.f32 %v1934_v28  ;;  %v5924_v6 = vpop.f32.mrb[56].mxu1 }
 0x243   :  { %v6641_v16 = vpop.eup %6640  ;;  %v2119_v43 = vmul.f32 %v6639_v13, %v7991_v21  ;;  %6660 = vrcp.f32 %v1933_v35  ;;  %v8085_v36 = vadd.f32 %v8077_v39, %v5924_v6  ;;  %v1656_v9 = vpop.f32.mrb[57].mxu1  ;;  %v5163_v21 = vmul.f32 -1.442695, %v8080_v10 }
 0x244   :  { %v6643_v33 = vpop.eup %6642  ;;  %2225 = vst.msk [vmem:[#allocation2 + $0x1f0] sm:$0xff] %vm2143_vm2, %v2120_v19  ;;  %v1936_v45 = vadd.f32 1.0, %v6641_v16  ;;  %6662 = vpow2.f32 %v5161_v59  ;;  %v8089_v37 = vadd.f32 %v8077_v39, %v1656_v9 }
 0x245   :  { %v6645_v26 = vpop.eup %6644  ;;  %2224 = vst.msk [vmem:[#allocation2 + $0x1e8] sm:$0xff] %vm2143_vm2, %v2119_v43  ;;  %v1935_v0 = vadd.f32 1.0, %v6643_v33  ;;  %6664 = vpow2.f32 %v5164_v15  ;;  %v5166_v22 = vmul.f32 -1.442695, %v8085_v36 }
 0x246   :  { %v6647_v38 = vpop.eup %6646  ;;  %6666 = vrcp.f32 %v1936_v45  ;;  %v1938_v14 = vadd.f32 1.0, %v6645_v26  ;;  %v5927_v25 = vpop.f32.mrb[58].mxu1  ;;  %v5165_v42 = vmul.f32 -1.442695, %v8089_v37 }
 0x247   :  { %v6649_v44 = vpop.eup %6648  ;;  %v2122_v4 = vmul.f32 %v6647_v38, %v7999_v8  ;;  %6668 = vrcp.f32 %v1935_v0  ;;  %v8097_v57 = vadd.f32 %v8077_v39, %v5927_v25  ;;  %v1666_v61 = vpop.f32.mrb[59].mxu1 }
 0x248   :  { %v6651_v40 = vpop.eup %6650  ;;  %v2121_v5 = vmul.f32 %v6649_v44, %v8003_v47  ;;  %6670 = vrcp.f32 %v1938_v14  ;;  %v8101_v41 = vadd.f32 %v8077_v39, %v1666_v61 }
 0x249   :  { %v6653_v20 = vpop.eup %6652  ;;  %2227 = vst.msk [vmem:[#allocation2 + $0x200] sm:$0xff] %vm2143_vm2, %v2122_v4  ;;  %v2124_v50 = vmul.f32 %v6651_v40, %v8010_v58  ;;  %6672 = vpow2.f32 %v5163_v21  ;;  %v5168_v8 = vmul.f32 -1.442695, %v8097_v57 }
 0x24a   :  { %v6655_v12 = vpop.eup %6654  ;;  %2226 = vst.msk [vmem:[#allocation2 + $0x1f8] sm:$0xff] %vm2143_vm2, %v2121_v5  ;;  %v2123_v52 = vmul.f32 %v6653_v20, %v8014_v18  ;;  %6674 = vpow2.f32 %v5166_v22  ;;  %v5930_v53 = vpop.f32.mrb[60].mxu1  ;;  %v5167_v24 = vmul.f32 -1.442695, %v8101_v41 }
 0x24b   :  { %v6657_v47 = vpop.eup %6656  ;;  %2229 = vst.msk [vmem:[#allocation2 + $0x210] sm:$0xff] %vm2143_vm2, %v2124_v50  ;;  %v1937_v17 = vadd.f32 1.0, %v6655_v12  ;;  %6676 = vpow2.f32 %v5165_v42  ;;  %v8111_v46 = vadd.f32 %v8077_v39, %v5930_v53  ;;  %v1676_v58 = vpop.f32.mrb[61].mxu1 }
 0x24c   :  { %v6659_v7 = vpop.eup %6658  ;;  %2228 = vst.msk [vmem:[#allocation2 + $0x208] sm:$0xff] %vm2143_vm2, %v2123_v52  ;;  %v1940_v55 = vadd.f32 1.0, %v6657_v47  ;;  %6678 = vpow2.f32 %v5168_v8  ;;  %v8115_v18 = vadd.f32 %v8077_v39, %v1676_v58 }
 0x24d   :  { %v6661_v2 = vpop.eup %6660  ;;  %v2126_v29 = vmul.f32 %v6659_v7, %v8021_v1  ;;  %6680 = vrcp.f32 %v1937_v17  ;;  %v5170_v23 = vmul.f32 -1.442695, %v8111_v46 }
 0x24e   :  { %v6663_v34 = vpop.eup %6662  ;;  %v2125_v49 = vmul.f32 %v6661_v2, %v8026_v31  ;;  %6682 = vrcp.f32 %v1940_v55  ;;  %v5933_v56 = vpop.f32.mrb[62].mxu1  ;;  %v5169_v28 = vmul.f32 -1.442695, %v8115_v18 }
 0x24f   :  { %v6665_v27 = vpop.eup %6664  ;;  %2231 = vst.msk [vmem:[#allocation2 + $0x220] sm:$0xff] %vm2143_vm2, %v2126_v29  ;;  %v1939_v51 = vadd.f32 1.0, %v6663_v34  ;;  %6684 = vpow2.f32 %v5167_v24  ;;  %v8123_v59 = vadd.f32 %v8077_v39, %v5933_v56  ;;  %v1686_v3 = vpop.f32.mrb[63].mxu1 }
 0x250   :  { %v6667_v1 = vpop.eup %6666  ;;  %2230 = vst.msk [vmem:[#allocation2 + $0x218] sm:$0xff] %vm2143_vm2, %v2125_v49  ;;  %v1942_v35 = vadd.f32 1.0, %v6665_v27  ;;  %6686 = vpow2.f32 %v5170_v23  ;;  %v8127_v31 = vadd.f32 %v8077_v39, %v1686_v3 }
 0x251   :  { %v6669_v15 = vpop.eup %6668  ;;  %v2128_v13 = vmul.f32 %v6667_v1, %v8034_v30  ;;  %6688 = vrcp.f32 %v1939_v51  ;;  %v5172_v19 = vmul.f32 -1.442695, %v8123_v59 }
 0x252   :  { %v6671_v6 = vpop.eup %6670  ;;  %v2127_v16 = vmul.f32 %v6669_v15, %v8038_v32  ;;  %6690 = vrcp.f32 %v1942_v35  ;;  %v5171_v43 = vmul.f32 -1.442695, %v8127_v31 }
 0x253   :  { %v6673_v9 = vpop.eup %6672  ;;  %2233 = vst.msk [vmem:[#allocation2 + $0x240] sm:$0xff] %vm2143_vm2, %v2128_v13  ;;  %v2130_v33 = vmul.f32 %v6671_v6, %v8046_v63  ;;  %6692 = vpow2.f32 %v5169_v28 }
 0x254   :  { %v6675_v39 = vpop.eup %6674  ;;  %2232 = vst.msk [vmem:[#allocation2 + $0x238] sm:$0xff] %vm2143_vm2, %v2127_v16  ;;  %v1941_v45 = vadd.f32 1.0, %v6673_v9  ;;  %6694 = vpow2.f32 %v5172_v19 }
 0x255   :  { %v6677_v30 = vpop.eup %6676  ;;  %2235 = vst.msk [vmem:[#allocation2 + $0x250] sm:$0xff] %vm2143_vm2, %v2130_v33  ;;  %v1944_v26 = vadd.f32 1.0, %v6675_v39  ;;  %6696 = vpow2.f32 %v5171_v43 }
 0x256   :  { %v6679_v32 = vpop.eup %6678  ;;  %6698 = vrcp.f32 %v1941_v45  ;;  %v1943_v0 = vadd.f32 1.0, %v6677_v30 }
 0x257   :  { %v6681_v21 = vpop.eup %6680  ;;  %6700 = vrcp.f32 %v1944_v26  ;;  %v1946_v38 = vadd.f32 1.0, %v6679_v32 }
 0x258   :  { %v6683_v14 = vpop.eup %6682  ;;  %v2129_v63 = vmul.f32 %v6681_v21, %v8050_v48  ;;  %6702 = vrcp.f32 %v1943_v0 }
 0x259   :  { %v6685_v22 = vpop.eup %6684  ;;  %v2132_v25 = vmul.f32 %v6683_v14, %v8058_v54  ;;  %6704 = vrcp.f32 %v1946_v38 }
 0x25a   :  { %v6687_v44 = vpop.eup %6686  ;;  %2234 = vst.msk [vmem:[#allocation2 + $0x248] sm:$0xff] %vm2143_vm2, %v2129_v63  ;;  %v1945_v4 = vadd.f32 1.0, %v6685_v22 }
 0x25b   :  { %v6689_v42 = vpop.eup %6688  ;;  %2237 = vst.msk [vmem:[#allocation2 + $0x260] sm:$0xff] %vm2143_vm2, %v2132_v25  ;;  %v1948_v61 = vadd.f32 1.0, %v6687_v44 }
 0x25c   :  { %v6691_v40 = vpop.eup %6690  ;;  %v2131_v5 = vmul.f32 %v6689_v42, %v8062_v62  ;;  %6706 = vrcp.f32 %v1945_v4 }
 0x25d   :  { %v6693_v20 = vpop.eup %6692  ;;  %v2134_v48 = vmul.f32 %v6691_v40, %v8068_v60  ;;  %6708 = vrcp.f32 %v1948_v61 }
 0x25e   :  { %v6695_v50 = vpop.eup %6694  ;;  %2236 = vst.msk [vmem:[#allocation2 + $0x258] sm:$0xff] %vm2143_vm2, %v2131_v5  ;;  %v1947_v54 = vadd.f32 1.0, %v6693_v20 }
 0x25f   :  { %v6697_v8 = vpop.eup %6696  ;;  %2239 = vst.msk [vmem:[#allocation2 + $0x270] sm:$0xff] %vm2143_vm2, %v2134_v48  ;;  %v1950_v12 = vadd.f32 1.0, %v6695_v50 }
 0x260   :  { %v6699_v52 = vpop.eup %6698  ;;  %6710 = vrcp.f32 %v1947_v54  ;;  %v1949_v53 = vadd.f32 1.0, %v6697_v8 }
 0x261   :  { %v6701_v47 = vpop.eup %6700  ;;  %v2133_v17 = vmul.f32 %v6699_v52, %v8080_v10  ;;  %6712 = vrcp.f32 %v1950_v12 }
 0x262   :  { %v6703_v62 = vpop.eup %6702  ;;  %v2136_v24 = vmul.f32 %v6701_v47, %v8085_v36  ;;  %6714 = vrcp.f32 %v1949_v53 }
 0x263   :  { %v6705_v60 = vpop.eup %6704  ;;  %2238 = vst.msk [vmem:[#allocation2 + $0x268] sm:$0xff] %vm2143_vm2, %v2133_v17  ;;  %v2135_v58 = vmul.f32 %v6703_v62, %v8089_v37 }
 0x264   :  { %2241 = vst.msk [vmem:[#allocation2 + $0x290] sm:$0xff] %vm2143_vm2, %v2136_v24  ;;  %v2138_v7 = vmul.f32 %v6705_v60, %v8097_v57 }
 0x265   :  { %2240 = vst.msk [vmem:[#allocation2 + $0x288] sm:$0xff] %vm2143_vm2, %v2135_v58 }
 0x266   :  { %v6707_v55 = vpop.eup %6706  ;;  %2243 = vst.msk [vmem:[#allocation2 + $0x2a0] sm:$0xff] %vm2143_vm2, %v2138_v7 }
 0x267   :  { %v6709_v10 = vpop.eup %6708  ;;  %v2137_v2 = vmul.f32 %v6707_v55, %v8101_v41 }
 0x268   :  { %v2140_v36 = vmul.f32 %v6709_v10, %v8111_v46 }
 0x269   :  { %2242 = vst.msk [vmem:[#allocation2 + $0x298] sm:$0xff] %vm2143_vm2, %v2137_v2 }
 0x26a   :  { %v6711_v29 = vpop.eup %6710  ;;  %2245 = vst.msk [vmem:[#allocation2 + $0x2b0] sm:$0xff] %vm2143_vm2, %v2140_v36 }
 0x26b   :  { %v6713_v37 = vpop.eup %6712  ;;  %v2139_v23 = vmul.f32 %v6711_v29, %v8115_v18 }
 0x26c   :  { %v6715_v34 = vpop.eup %6714  ;;  %v2142_v57 = vmul.f32 %v6713_v37, %v8123_v59 }
 0x26d   :  { %2244 = vst.msk [vmem:[#allocation2 + $0x2a8] sm:$0xff] %vm2143_vm2, %v2139_v23  ;;  %v2141_v49 = vmul.f32 %v6715_v34, %v8127_v31 }
 0x26e   :  { %2247 = vst.msk [vmem:[#allocation2 + $0x2c0] sm:$0xff] %vm2143_vm2, %v2142_v57 }
 0x26f   :  { %2246 = vst.msk [vmem:[#allocation2 + $0x2b8] sm:$0xff] %vm2143_vm2, %v2141_v49 }
 0x270 LB: > { %s2254_s19 = smul.u32 80, %s7021_s18  ;;  %v8172_v41 = vld [vmem:[%s9437_s2] ss:$0 sm:$0xff]  ;;  %v8177_v46 = vld [vmem:[%s9437_s2 + $0x1] ss:$0 sm:$0xff]  ;;  %s5248_s15 = sshll.u32 %s7021_s18, 6  ;;  %s7021_s18 = sphi %s8163_s18, %s2253_s18  }
 0x271   : > { %v8182_v18 = vld [vmem:[%s9437_s2 + $0x2] ss:$0 sm:$0xff]  ;;  %v8187_v56 = vld [vmem:[%s9437_s2 + $0x3] ss:$0 sm:$0xff]  ;;  %v8192_v27 = vld [vmem:[%s9437_s2 + $0x4] ss:$0 sm:$0xff] }
 0x272   : > { %v8197_v51 = vld [vmem:[%s9437_s2 + $0x5] ss:$0 sm:$0xff]  ;;  %v8202_v28 = vld [vmem:[%s9437_s2 + $0x6] ss:$0 sm:$0xff]  ;;  %s8204_s7 = scalar_lea.vmem [#allocation2], %s2254_s19  ;;  %s8360_s16 = scalar_lea.vmem [#allocation3], %s5248_s15 }
 0x273   : > { %v8217_v6 = vld [vmem:[%s9437_s2 + $0x7] ss:$0 sm:$0xff]  ;;  %v8226_v39 = vld [vmem:[%s9437_s2 + $0x8] ss:$0 sm:$0xff]  ;;  %s2253_s18 = sadd.s32 1, %s7021_s18  }
 0x274   : > { %p2250_p0 = scmp.ge.s32.totalorder %s2253_s18, 8  }
 0x275   :  { %5945 = vmatprep.subr.mxu0 (%p2250_p0), %v9438_v11  ;;  %vm7025_vm3 = vmmov (%p2250_p0), 0  }
 0x276   : > { %v2256_v59 = vld [vmem:[%s8204_s7] sm:$0xff]  ;;  %v5174_v3 = vld [vmem:[%s8204_s7 + $0x8] sm:$0xff]  ;;  %v5183_v1 = vld [vmem:[%s8204_s7 + $0x10] sm:$0xff]  ;;  %5942 = vmatprep.mubr.msk.f32.mxu1 (%p2250_p0), %vm7025_vm3, %v9438_v11  ;;  %5947 = vmatprep.mubr.msk.f32.mxu0 (%p2250_p0), %vm7025_vm3, %v9438_v11 }
 0x277   : > { %v2269_v35 = vmul.f32 %v8172_v41, %v2256_v59  ;;  %v2292_v31 = vmul.f32 %v8177_v46, %v5174_v3  ;;  %v2323_v15 = vmul.f32 %v8182_v18, %v5183_v1  ;;  %v5192_v13 = vld [vmem:[%s8204_s7 + $0x50] sm:$0xff]  ;;  %v5201_v19 = vld [vmem:[%s8204_s7 + $0x58] sm:$0xff]  ;;  %v2270_v16 = vmul.f32 %v5174_v3, %v8172_v41  ;;  %v5210_v9 = vld [vmem:[%s8204_s7 + $0x60] sm:$0xff] }
 0x278   : > { %v2355_v43 = vmul.f32 %v8187_v56, %v5192_v13  ;;  %v5219_v33 = vld [vmem:[%s8204_s7 + $0xa0] sm:$0xff]  ;;  %v2293_v45 = vmul.f32 %v5183_v1, %v8177_v46  ;;  %v2386_v26 = vmul.f32 %v8192_v27, %v5201_v19  ;;  %v2417_v32 = vmul.f32 %v8197_v51, %v5210_v9  ;;  %v5228_v21 = vld [vmem:[%s8204_s7 + $0xa8] sm:$0xff]  ;;  %v5184_v38 = vld [vmem:[%s8204_s7 + $0x18] sm:$0xff] }
 0x279   : > { %v2300_v30 = vadd.f32 %v2292_v31, %v2269_v35  ;;  %v2449_v0 = vmul.f32 %v8202_v28, %v5219_v33  ;;  %v2480_v14 = vmul.f32 %v8217_v6, %v5228_v21  ;;  %v5237_v63 = vld [vmem:[%s8204_s7 + $0xb0] sm:$0xff]  ;;  %v2324_v25 = vmul.f32 %v8182_v18, %v5184_v38  ;;  %v5211_v4 = vld [vmem:[%s8204_s7 + $0x68] sm:$0xff]  ;;  %v5238_v50 = vld [vmem:[%s8204_s7 + $0xb8] sm:$0xff] }
 0x27a   : > { %v2301_v22 = vadd.f32 %v2293_v45, %v2270_v16  ;;  %v2356_v44 = vmul.f32 %v5201_v19, %v8187_v56  ;;  %v2511_v61 = vmul.f32 %v8226_v39, %v5237_v63  ;;  %v2387_v40 = vmul.f32 %v5210_v9, %v8192_v27  ;;  %v5185_v12 = vld [vmem:[%s8204_s7 + $0x20] sm:$0xff]  ;;  %v5212_v7 = vld [vmem:[%s8204_s7 + $0x70] sm:$0xff]  ;;  %v5186_v29 = vld [vmem:[%s8204_s7 + $0x28] sm:$0xff] }
 0x27b   : > { %v2331_v42 = vadd.f32 %v2323_v15, %v2300_v30  ;;  %v2418_v5 = vmul.f32 %v8197_v51, %v5211_v4  ;;  %v2450_v48 = vmul.f32 %v5228_v21, %v8202_v28  ;;  %v2271_v54 = vmul.f32 %v5183_v1, %v8172_v41  ;;  %v5239_v34 = vld [vmem:[%s8204_s7 + $0xc0] sm:$0xff]  ;;  %v5213_v16 = vld [vmem:[%s8204_s7 + $0x78] sm:$0xff] }
 0x27c   : > { %v2332_v20 = vadd.f32 %v2324_v25, %v2301_v22  ;;  %v2294_v8 = vmul.f32 %v5184_v38, %v8177_v46  ;;  %v2481_v53 = vmul.f32 %v5237_v63, %v8217_v6  ;;  %v2512_v47 = vmul.f32 %v8226_v39, %v5238_v50 }
 0x27d   : > { %v2363_v52 = vadd.f32 %v2355_v43, %v2331_v42  ;;  %v2325_v17 = vmul.f32 %v8182_v18, %v5185_v12  ;;  %v2357_v60 = vmul.f32 %v5210_v9, %v8187_v56  ;;  %v2388_v58 = vmul.f32 %v5211_v4, %v8192_v27 }
 0x27e   : > { %v2364_v62 = vadd.f32 %v2356_v44, %v2332_v20  ;;  %v2302_v24 = vadd.f32 %v2294_v8, %v2271_v54  ;;  %v2419_v10 = vmul.f32 %v8197_v51, %v5212_v7  ;;  %v2451_v2 = vmul.f32 %v5237_v63, %v8202_v28  ;;  %v8276_v44 = vld [vmem:[%s9437_s2 + $0x9] ss:$0 sm:$0xff] }
 0x27f   : > { %v2394_v55 = vadd.f32 %v2386_v26, %v2363_v52  ;;  %v2272_v36 = vmul.f32 %v5184_v38, %v8172_v41  ;;  %v2295_v57 = vmul.f32 %v5185_v12, %v8177_v46  ;;  %v2326_v49 = vmul.f32 %v8182_v18, %v5186_v29  ;;  %v5187_v38 = vld [vmem:[%s8204_s7 + $0x30] sm:$0xff] }
 0x280   : > { %v2395_v37 = vadd.f32 %v2387_v40, %v2364_v62  ;;  %v2333_v23 = vadd.f32 %v2325_v17, %v2302_v24  ;;  %v2482_v3 = vmul.f32 %v5238_v50, %v8217_v6  ;;  %v2513_v1 = vmul.f32 %v8226_v39, %v5239_v34 }
 0x281   : > { %v2425_v59 = vadd.f32 %v2417_v32, %v2394_v55  ;;  %v2358_v35 = vmul.f32 %v5211_v4, %v8187_v56  ;;  %v2303_v13 = vadd.f32 %v2295_v57, %v2272_v36  ;;  %v2389_v19 = vmul.f32 %v5212_v7, %v8192_v27 }
 0x282   : > { %v2426_v31 = vadd.f32 %v2418_v5, %v2395_v37  ;;  %v2365_v15 = vadd.f32 %v2357_v60, %v2333_v23  ;;  %v2420_v9 = vmul.f32 %v8197_v51, %v5213_v16  ;;  %v2452_v33 = vmul.f32 %v5238_v50, %v8202_v28  ;;  %v5240_v5 = vld [vmem:[%s8204_s7 + $0xc8] sm:$0xff]  ;;  %v5188_v37 = vld [vmem:[%s8204_s7 + $0x38] sm:$0xff] }
 0x283   : > { %v2457_v43 = vadd.f32 %v2449_v0, %v2425_v59  ;;  %v2273_v45 = vmul.f32 %v5185_v12, %v8172_v41  ;;  %v2334_v32 = vadd.f32 %v2326_v49, %v2303_v13  ;;  %v2296_v21 = vmul.f32 %v5186_v29, %v8177_v46  ;;  %v8286_v12 = vld [vmem:[%s9437_s2 + $0xa] ss:$0 sm:$0xff] }
 0x284   : > { %v2458_v30 = vadd.f32 %v2450_v48, %v2426_v31  ;;  %v2396_v26 = vadd.f32 %v2388_v58, %v2365_v15  ;;  %v2483_v22 = vmul.f32 %v5239_v34, %v8217_v6  ;;  %v2327_v25 = vmul.f32 %v8182_v18, %v5187_v38  ;;  %v5214_v48 = vld [vmem:[%s8204_s7 + $0x80] sm:$0xff] }
 0x285   : > { %v2488_v63 = vadd.f32 %v2480_v14, %v2457_v43  ;;  %v2359_v0 = vmul.f32 %v5212_v7, %v8187_v56  ;;  %v2366_v40 = vadd.f32 %v2358_v35, %v2334_v32  ;;  %v2304_v20 = vadd.f32 %v2296_v21, %v2273_v45  ;;  %v5215_v45 = vld [vmem:[%s8204_s7 + $0x88] sm:$0xff] }
 0x286   : > { %v2489_v4 = vadd.f32 %v2481_v53, %v2458_v30  ;;  %v2427_v42 = vadd.f32 %v2419_v10, %v2396_v26  ;;  %v2514_v14 = vmul.f32 %v8226_v39, %v5240_v5  ;;  %v2390_v54 = vmul.f32 %v5213_v16, %v8192_v27 }
 0x287   : > { %v2519_v50 = vadd.f32 %v2511_v61, %v2488_v63  ;;  %v2421_v8 = vmul.f32 %v8197_v51, %v5214_v48  ;;  %v2397_v17 = vadd.f32 %v2389_v19, %v2366_v40  ;;  %v2335_v62 = vadd.f32 %v2327_v25, %v2304_v20 }
 0x288   : > { %v2520_v52 = vadd.f32 %v2512_v47, %v2489_v4  ;;  %v2459_v53 = vadd.f32 %v2451_v2, %v2427_v42  ;;  %v2453_v61 = vmul.f32 %v5239_v34, %v8202_v28  ;;  %v2274_v60 = vmul.f32 %v5186_v29, %v8172_v41  ;;  %v5189_v4 = vld [vmem:[%s8204_s7 + $0x40] sm:$0xff] }
 0x289   : > { %v2532_v24 = vmul.f32 %v8276_v44, %v2519_v50  ;;  %v2297_v58 = vmul.f32 %v5187_v38, %v8177_v46  ;;  %v2428_v10 = vadd.f32 %v2420_v9, %v2397_v17  ;;  %v2367_v36 = vadd.f32 %v2359_v0, %v2335_v62  ;;  %v5241_v9 = vld [vmem:[%s8204_s7 + $0xd0] sm:$0xff]  ;;  %v5190_v17 = vld [vmem:[%s8204_s7 + $0x48] sm:$0xff] }
 0x28a   : > { %v2533_v7 = vmul.f32 %v8276_v44, %v2520_v52  ;;  %v2490_v55 = vadd.f32 %v2482_v3, %v2459_v53  ;;  %v2328_v2 = vmul.f32 %v8182_v18, %v5188_v37  ;;  %v2360_v34 = vmul.f32 %v5213_v16, %v8187_v56  ;;  %v5242_v53 = vld [vmem:[%s8204_s7 + $0xd8] sm:$0xff] }
 0x28b   : > { %v8295_v23 = vadd.f32 %v8286_v12, %v2532_v24  ;;  %v2305_v47 = vadd.f32 %v2297_v58, %v2274_v60  ;;  %v2460_v49 = vadd.f32 %v2452_v33, %v2428_v10  ;;  %v2398_v59 = vadd.f32 %v2390_v54, %v2367_v36  ;;  %v5216_v58 = vld [vmem:[%s8204_s7 + $0x90] sm:$0xff] }
 0x28c   : > { %v8300_v29 = vadd.f32 %v8286_v12, %v2533_v7  ;;  %v2521_v57 = vadd.f32 %v2513_v1, %v2490_v55  ;;  %v2484_v35 = vmul.f32 %v5240_v5, %v8217_v6  ;;  %v2391_v15 = vmul.f32 %v5214_v48, %v8192_v27 }
 0x28d   : > { %v5249_v3 = vmul.f32 -1.442695, %v8295_v23  ;;  %v2336_v31 = vadd.f32 %v2328_v2, %v2305_v47  ;;  %v2491_v43 = vadd.f32 %v2483_v22, %v2460_v49  ;;  %v2429_v16 = vadd.f32 %v2421_v8, %v2398_v59 }
 0x28e   : > { %v5250_v13 = vmul.f32 -1.442695, %v8300_v29  ;;  %v2534_v19 = vmul.f32 %v8276_v44, %v2521_v57  ;;  %v2515_v1 = vmul.f32 %v8226_v39, %v5241_v9  ;;  %v2422_v30 = vmul.f32 %v8197_v51, %v5215_v45 }
 0x28f   : > { %6718 = vpow2.f32 %v5249_v3  ;;  %v2368_v33 = vadd.f32 %v2360_v34, %v2336_v31  ;;  %v2522_v32 = vadd.f32 %v2514_v14, %v2491_v43  ;;  %v2461_v21 = vadd.f32 %v2453_v61, %v2429_v16 }
 0x290   : > { %6720 = vpow2.f32 %v5250_v13  ;;  %v8312_v26 = vadd.f32 %v8286_v12, %v2534_v19  ;;  %v2454_v22 = vmul.f32 %v5240_v5, %v8202_v28  ;;  %v2275_v25 = vmul.f32 %v5187_v38, %v8172_v41 }
 0x291   : > { %v2399_v63 = vadd.f32 %v2391_v15, %v2368_v33  ;;  %v2298_v0 = vmul.f32 %v5188_v37, %v8177_v46  ;;  %v2535_v40 = vmul.f32 %v8276_v44, %v2522_v32  ;;  %v2492_v20 = vadd.f32 %v2484_v35, %v2461_v21 }
 0x292   : > { %v5251_v42 = vmul.f32 -1.442695, %v8312_v26  ;;  %v2329_v50 = vmul.f32 %v8182_v18, %v5189_v4  ;;  %v2485_v54 = vmul.f32 %v5241_v9, %v8217_v6  ;;  %v2361_v5 = vmul.f32 %v5214_v48, %v8187_v56 }
 0x293   : > { %v2430_v14 = vadd.f32 %v2422_v30, %v2399_v63  ;;  %v2306_v8 = vadd.f32 %v2298_v0, %v2275_v25  ;;  %v8324_v38 = vadd.f32 %v8286_v12, %v2535_v40  ;;  %v2523_v52 = vadd.f32 %v2515_v1, %v2492_v20 }
 0x294   : > { %6722 = vpow2.f32 %v5251_v42  ;;  %v2516_v24 = vmul.f32 %v8226_v39, %v5242_v53  ;;  %v2392_v60 = vmul.f32 %v5215_v45, %v8192_v27  ;;  %v2423_v48 = vmul.f32 %v8197_v51, %v5216_v58  ;;  %v5244_v42 = vld [vmem:[%s8204_s7 + $0xe8] sm:$0xff] }
 0x295   : > { %v2462_v62 = vadd.f32 %v2454_v22, %v2430_v14  ;;  %v2337_v61 = vadd.f32 %v2329_v50, %v2306_v8  ;;  %v5252_v7 = vmul.f32 -1.442695, %v8324_v38  ;;  %v2536_v55 = vmul.f32 %v8276_v44, %v2523_v52 }
 0x296   : > { %v2276_v10 = vmul.f32 %v5188_v37, %v8172_v41  ;;  %v2299_v2 = vmul.f32 %v5189_v4, %v8177_v46  ;;  %v2330_v34 = vmul.f32 %v8182_v18, %v5190_v17  ;;  %v2455_v49 = vmul.f32 %v5241_v9, %v8202_v28  ;;  %v5217_v41 = vld [vmem:[%s8204_s7 + $0x98] sm:$0xff]  ;;  %v5243_v9 = vld [vmem:[%s8204_s7 + $0xe0] sm:$0xff] }
 0x297   : > { %v2493_v36 = vadd.f32 %v2485_v54, %v2462_v62  ;;  %v2369_v47 = vadd.f32 %v2361_v5, %v2337_v61  ;;  %6724 = vpow2.f32 %v5252_v7  ;;  %v8338_v57 = vadd.f32 %v8286_v12, %v2536_v55 }
 0x298   : > { %v2307_v31 = vadd.f32 %v2299_v2, %v2276_v10  ;;  %v2362_v15 = vmul.f32 %v5215_v45, %v8187_v56  ;;  %v2486_v18 = vmul.f32 %v5242_v53, %v8217_v6  ;;  %v2393_v19 = vmul.f32 %v5216_v58, %v8192_v27 }
 0x299   : > { %v6719_v59 = vpop.eup %6718  ;;  %v2524_v3 = vadd.f32 %v2516_v24, %v2493_v36  ;;  %v2400_v35 = vadd.f32 %v2392_v60, %v2369_v47  ;;  %v5253_v46 = vmul.f32 -1.442695, %v8338_v57  ;;  %v2517_v30 = vmul.f32 %v8226_v39, %v5243_v9 }
 0x29a   : > { %v6721_v37 = vpop.eup %6720  ;;  %v2578_v13 = vadd.f32 1.0, %v6719_v59  ;;  %v2338_v33 = vadd.f32 %v2330_v34, %v2307_v31  ;;  %v2424_v56 = vmul.f32 %v8197_v51, %v5217_v41  ;;  %v2456_v27 = vmul.f32 %v5242_v53, %v8202_v28  ;;  %v2812_v41 = vld [vmem:[%s9434_s1 + $0x20] sm:$0xff] (%p2250_p0) }
 0x29b   : > { %v2579_v43 = vadd.f32 1.0, %v6721_v37  ;;  %v2537_v16 = vmul.f32 %v8276_v44, %v2524_v3  ;;  %v2431_v1 = vadd.f32 %v2423_v48, %v2400_v35  ;;  %v2487_v51 = vmul.f32 %v5243_v9, %v8217_v6  ;;  %v2813_v37 = vld [vmem:[%s9434_s1 + $0x28] sm:$0xff] (%p2250_p0) }
 0x29c   : > { %6726 = vrcp.f32 %v2578_v13  ;;  %v2370_v21 = vadd.f32 %v2362_v15, %v2338_v33  ;;  %v2518_v5 = vmul.f32 %v8226_v39, %v5244_v42  ;;  %v9439_v13 = vmov (%p2250_p0), 0.0|0.0  }
 0x29d   : > { %6728 = vrcp.f32 %v2579_v43  ;;  %v2550_v45 = vadd.f32 %v8286_v12, %v2537_v16  ;;  %v2463_v32 = vadd.f32 %v2455_v49, %v2431_v1  ;;  %6169 = vmatprep.subr.bf16.mxu1 (%p2250_p0), %v9439_v13 }
 0x29e   : > { %v6723_v63 = vpop.eup %6722  ;;  %6730 = vpow2.f32 %v5253_v46  ;;  %v2401_v4 = vadd.f32 %v2393_v19, %v2370_v21 }
 0x29f   : > { %v2580_v22 = vadd.f32 1.0, %v6723_v63  ;;  %v5254_v25 = vmul.f32 -1.442695, %v2550_v45  ;;  %v2494_v0 = vadd.f32 %v2486_v18, %v2463_v32  ;;  %v2814_v18 = vld [vmem:[%s9434_s1 + $0x30] sm:$0xff] (%p2250_p0) }
 0x2a0   : > { %v2432_v20 = vadd.f32 %v2424_v56, %v2401_v4 }
 0x2a1   : > { %6732 = vrcp.f32 %v2580_v22  ;;  %v2525_v40 = vadd.f32 %v2517_v30, %v2494_v0  ;;  %v6725_v50 = vpop.eup %6724  ;;  %v6173_v30 = vpack.c.bf16 (%p2250_p0), %v2814_v18, %v2813_v37 }
 0x2a2   : > { %6734 = vpow2.f32 %v5254_v25  ;;  %v2581_v14 = vadd.f32 1.0, %v6725_v50  ;;  %v2464_v8 = vadd.f32 %v2456_v27, %v2432_v20 }
 0x2a3   : > { %v2538_v54 = vmul.f32 %v8276_v44, %v2525_v40 }
 0x2a4   : > { %6736 = vrcp.f32 %v2581_v14  ;;  %v2495_v52 = vadd.f32 %v2487_v51, %v2464_v8 }
 0x2a5   : > { %v2551_v28 = vadd.f32 %v8286_v12, %v2538_v54 }
 0x2a6   : > { %v6727_v53 = vpop.eup %6726  ;;  %v2526_v61 = vadd.f32 %v2518_v5, %v2495_v52 }
 0x2a7   : > { %v6729_v17 = vpop.eup %6728  ;;  %v2602_v62 = vmul.f32 %v6727_v53, %v8295_v23  ;;  %v5255_v24 = vmul.f32 -1.442695, %v2551_v28 }
 0x2a8   : > { %v6731_v6 = vpop.eup %6730  ;;  %v2603_v60 = vmul.f32 %v6729_v17, %v8300_v29  ;;  %v2539_v58 = vmul.f32 %v8276_v44, %v2526_v61 }
 0x2a9   : > { %2611 = vst.msk [vmem:[%s8360_s16] sm:$0xff] %vm2143_vm2, %v2602_v62  ;;  %v2582_v39 = vadd.f32 1.0, %v6731_v6  ;;  %6738 = vpow2.f32 %v5255_v24 }
 0x2aa   : > { %2612 = vst.msk [vmem:[%s8360_s16 + $0x8] sm:$0xff] %vm2143_vm2, %v2603_v60  ;;  %v2552_v7 = vadd.f32 %v8286_v12, %v2539_v58 }
 0x2ab   : > { %v6733_v23 = vpop.eup %6732  ;;  %6740 = vrcp.f32 %v2582_v39 }
 0x2ac   : > { %v6735_v29 = vpop.eup %6734  ;;  %v2604_v55 = vmul.f32 %v6733_v23, %v8312_v26  ;;  %v5256_v10 = vmul.f32 -1.442695, %v2552_v7 }
 0x2ad   : > { %v2583_v48 = vadd.f32 1.0, %v6735_v29 }
 0x2ae   : > { %2613 = vst.msk [vmem:[%s8360_s16 + $0x10] sm:$0xff] %vm2143_vm2, %v2604_v55  ;;  %v6737_v36 = vpop.eup %6736 }
 0x2af   : > { %6742 = vrcp.f32 %v2583_v48  ;;  %v2605_v47 = vmul.f32 %v6737_v36, %v8324_v38 }
 0x2b0   : > { %6744 = vpow2.f32 %v5256_v10 }
 0x2b1   : > { %2614 = vst.msk [vmem:[%s8360_s16 + $0x18] sm:$0xff] %vm2143_vm2, %v2605_v47 }
 0x2b3   : > { %v6739_v44 = vpop.eup %6738 }
 0x2b4   : > { %v2584_v2 = vadd.f32 1.0, %v6739_v44 }
 0x2b5   : > { %v6741_v12 = vpop.eup %6740 }
 0x2b6   : > { %v2606_v34 = vmul.f32 %v6741_v12, %v8338_v57  ;;  %6746 = vrcp.f32 %v2584_v2  ;;  %v2811_v57 = vld [vmem:[%s9434_s1 + $0x18] sm:$0xff] (%p2250_p0) }
 0x2b7   :  { %v6170_v46 = vpack.c.bf16 (%p2250_p0), %v2812_v41, %v2811_v57 }
 0x2b8   : > { %2615 = vst.msk [vmem:[%s8360_s16 + $0x20] sm:$0xff] %vm2143_vm2, %v2606_v34 }
 0x2b9   : > { %v6743_v26 = vpop.eup %6742  ;;  %6171 = vmatpush3.bf16.msra.mxu1 (%p2250_p0), %v6170_v46 }
 0x2ba   : > { %v6745_v49 = vpop.eup %6744  ;;  %v2607_v59 = vmul.f32 %v6743_v26, %v2550_v45  ;;  %6172 = vmatprep.subr.bf16.mxu1 (%p2250_p0), %v9439_v13 }
 0x2bb   : > { %v2585_v3 = vadd.f32 1.0, %v6745_v49 }
 0x2bc   : > { %2616 = vst.msk [vmem:[%s8360_s16 + $0x28] sm:$0xff] %vm2143_vm2, %v2607_v59 }
 0x2bd   : > { %6748 = vrcp.f32 %v2585_v3  ;;  %6174 = vmatpush3.bf16.msra.mxu1 (%p2250_p0), %v6173_v30 }
 0x2c0   : > { %v6747_v38 = vpop.eup %6746 }
 0x2c1   : > { %v2608_v35 = vmul.f32 %v6747_v38, %v2551_v28 }
 0x2c3   : > { %2617 = vst.msk [vmem:[%s8360_s16 + $0x30] sm:$0xff] %vm2143_vm2, %v2608_v35 }
 0x2c4   :  { %2252 = sbr.rel (!%p2250_p0) target bundleno = 624 (0x270), region = 53 }
 0x2c7   : > { %v6749_v31 = vpop.eup %6748 }
 0x2c8   : > { %v2609_v15 = vmul.f32 %v6749_v31, %v2552_v7 }
 0x2ca   : > { %2618 = vst.msk [vmem:[%s8360_s16 + $0x38] sm:$0xff] %vm2143_vm2, %v2609_v15 }
 0x2d1   :  { %v8402_v19 = vld [vmem:[#allocation3] sm:$0xff]  ;;  %v8404_v43 = vld [vmem:[#allocation3 + $0x8] sm:$0xff]  ;;  %v8406_v16 = vld [vmem:[#allocation3 + $0x10] sm:$0xff] }
 0x2d2   :  { %v8408_v1 = vld [vmem:[#allocation3 + $0x18] sm:$0xff]  ;;  %v2683_v9 = vsel %vm2143_vm2, %v8402_v19, 0.0  ;;  %v2684_v33 = vsel %vm2143_vm2, %v8404_v43, 0.0  ;;  %v8416_v56 = vld [vmem:[#allocation3 + $0x20] sm:$0xff]  ;;  %v2686_v32 = vsel %vm2143_vm2, %v8406_v16, 0.0  ;;  %v8423_v63 = vld [vmem:[#allocation3 + $0x28] sm:$0xff] }
 0x2d3   :  { %v2685_v45 = vadd.f32 %v2684_v33, %v2683_v9  ;;  %v2688_v21 = vsel %vm2143_vm2, %v8408_v1, 0.0  ;;  %v2690_v22 = vsel %vm2143_vm2, %v8416_v56, 0.0  ;;  %v8427_v25 = vld [vmem:[#allocation3 + $0x30] sm:$0xff]  ;;  %v2692_v4 = vsel %vm2143_vm2, %v8423_v63, 0.0  ;;  %v8431_v42 = vld [vmem:[#allocation3 + $0x38] sm:$0xff]  ;;  %v8435_v51 = vld [vmem:[#allocation3 + $0x40] sm:$0xff] }
 0x2d4   :  { %v2694_v20 = vsel %vm2143_vm2, %v8427_v25, 0.0  ;;  %v2696_v14 = vsel %vm2143_vm2, %v8431_v42, 0.0  ;;  %v8439_v54 = vld [vmem:[#allocation3 + $0x48] sm:$0xff]  ;;  %v2698_v5 = vsel %vm2143_vm2, %v8435_v51, 0.0  ;;  %v8443_v28 = vld [vmem:[#allocation3 + $0x50] sm:$0xff]  ;;  %v8447_v17 = vld [vmem:[#allocation3 + $0x58] sm:$0xff] }
 0x2d5   :  { %v2687_v27 = vadd.f32 %v2686_v32, %v2685_v45  ;;  %v2700_v53 = vsel %vm2143_vm2, %v8439_v54, 0.0  ;;  %v2702_v24 = vsel %vm2143_vm2, %v8443_v28, 0.0  ;;  %v8451_v61 = vld [vmem:[#allocation3 + $0x60] sm:$0xff]  ;;  %v2704_v60 = vsel %vm2143_vm2, %v8447_v17, 0.0  ;;  %v8455_v39 = vld [vmem:[#allocation3 + $0x68] sm:$0xff]  ;;  %v8459_v7 = vld [vmem:[#allocation3 + $0x70] sm:$0xff] }
 0x2d6   :  { %v2706_v23 = vsel %vm2143_vm2, %v8451_v61, 0.0  ;;  %v2708_v55 = vsel %vm2143_vm2, %v8455_v39, 0.0  ;;  %v8463_v48 = vld [vmem:[#allocation3 + $0x78] sm:$0xff]  ;;  %v2710_v36 = vsel %vm2143_vm2, %v8459_v7, 0.0  ;;  %v8467_v47 = vld [vmem:[#allocation3 + $0x80] sm:$0xff]  ;;  %v8471_v12 = vld [vmem:[#allocation3 + $0x88] sm:$0xff] }
 0x2d7   :  { %v2689_v0 = vadd.f32 %v2688_v21, %v2687_v27  ;;  %v2712_v2 = vsel %vm2143_vm2, %v8463_v48, 0.0  ;;  %v2714_v26 = vsel %vm2143_vm2, %v8467_v47, 0.0  ;;  %v8475_v49 = vld [vmem:[#allocation3 + $0x90] sm:$0xff]  ;;  %v2716_v3 = vsel %vm2143_vm2, %v8471_v12, 0.0  ;;  %v8479_v38 = vld [vmem:[#allocation3 + $0x98] sm:$0xff]  ;;  %v8483_v15 = vld [vmem:[#allocation3 + $0xa0] sm:$0xff] }
 0x2d8   :  { %v2718_v31 = vsel %vm2143_vm2, %v8475_v49, 0.0  ;;  %v2720_v41 = vsel %vm2143_vm2, %v8479_v38, 0.0  ;;  %v8487_v37 = vld [vmem:[#allocation3 + $0xa8] sm:$0xff]  ;;  %v2722_v18 = vsel %vm2143_vm2, %v8483_v15, 0.0  ;;  %v8491_v9 = vld [vmem:[#allocation3 + $0xb0] sm:$0xff]  ;;  %v8495_v45 = vld [vmem:[#allocation3 + $0xb8] sm:$0xff] }
 0x2d9   :  { %v2691_v40 = vadd.f32 %v2690_v22, %v2689_v0  ;;  %v2724_v30 = vsel %vm2143_vm2, %v8487_v37, 0.0  ;;  %v2726_v21 = vsel %vm2143_vm2, %v8491_v9, 0.0  ;;  %v8499_v27 = vld [vmem:[#allocation3 + $0xc0] sm:$0xff]  ;;  %v2728_v0 = vsel %vm2143_vm2, %v8495_v45, 0.0 }
 0x2db   :  { %v2693_v50 = vadd.f32 %v2692_v4, %v2691_v40  ;;  %v8503_v4 = vld [vmem:[#allocation3 + $0xc8] sm:$0xff] }
 0x2dd   :  { %v2695_v8 = vadd.f32 %v2694_v20, %v2693_v50  ;;  %v2730_v20 = vsel %vm2143_vm2, %v8499_v27, 0.0  ;;  %v8507_v50 = vld [vmem:[#allocation3 + $0xd0] sm:$0xff] }
 0x2df   :  { %v2697_v52 = vadd.f32 %v2696_v14, %v2695_v8  ;;  %v2732_v8 = vsel %vm2143_vm2, %v8503_v4, 0.0 }
 0x2e1   :  { %v2699_v62 = vadd.f32 %v2698_v5, %v2697_v52  ;;  %v8511_v5 = vld [vmem:[#allocation3 + $0xd8] sm:$0xff] }
 0x2e3   :  { %v2701_v6 = vadd.f32 %v2700_v53, %v2699_v62  ;;  %v2734_v53 = vsel %vm2143_vm2, %v8507_v50, 0.0  ;;  %v8515_v62 = vld [vmem:[#allocation3 + $0xe0] sm:$0xff] }
 0x2e5   :  { %v2703_v58 = vadd.f32 %v2702_v24, %v2701_v6  ;;  %v2736_v6 = vsel %vm2143_vm2, %v8511_v5, 0.0 }
 0x2e7   :  { %v2705_v29 = vadd.f32 %v2704_v60, %v2703_v58  ;;  %v8519_v60 = vld [vmem:[#allocation3 + $0xe8] sm:$0xff] }
 0x2e9   :  { %v2707_v10 = vadd.f32 %v2706_v23, %v2705_v29  ;;  %v2738_v23 = vsel %vm2143_vm2, %v8515_v62, 0.0  ;;  %v8523_v29 = vld [vmem:[#allocation3 + $0xf0] sm:$0xff] }
 0x2eb   :  { %v2709_v44 = vadd.f32 %v2708_v55, %v2707_v10  ;;  %v2740_v10 = vsel %vm2143_vm2, %v8519_v60, 0.0 }
 0x2ed   :  { %v2711_v34 = vadd.f32 %v2710_v36, %v2709_v44  ;;  %v8527_v36 = vld [vmem:[#allocation3 + $0xf8] sm:$0xff] }
 0x2ef   :  { %v2713_v59 = vadd.f32 %v2712_v2, %v2711_v34  ;;  %v2742_v2 = vsel %vm2143_vm2, %v8523_v29, 0.0  ;;  %v8531_v34 = vld [vmem:[#allocation3 + $0x100] sm:$0xff] }
 0x2f1   :  { %v2715_v35 = vadd.f32 %v2714_v26, %v2713_v59  ;;  %v2744_v59 = vsel %vm2143_vm2, %v8527_v36, 0.0 }
 0x2f3   :  { %v2717_v57 = vadd.f32 %v2716_v3, %v2715_v35  ;;  %v8535_v3 = vld [vmem:[#allocation3 + $0x108] sm:$0xff] }
 0x2f5   :  { %v2719_v46 = vadd.f32 %v2718_v31, %v2717_v57  ;;  %v2746_v31 = vsel %vm2143_vm2, %v8531_v34, 0.0  ;;  %v8539_v57 = vld [vmem:[#allocation3 + $0x110] sm:$0xff] }
 0x2f7   :  { %v2721_v33 = vadd.f32 %v2720_v41, %v2719_v46  ;;  %v2748_v46 = vsel %vm2143_vm2, %v8535_v3, 0.0 }
 0x2f9   :  { %v2723_v32 = vadd.f32 %v2722_v18, %v2721_v33  ;;  %v8543_v18 = vld [vmem:[#allocation3 + $0x118] sm:$0xff] }
 0x2fb   :  { %v2725_v22 = vadd.f32 %v2724_v30, %v2723_v32  ;;  %v2750_v30 = vsel %vm2143_vm2, %v8539_v57, 0.0  ;;  %v8547_v32 = vld [vmem:[#allocation3 + $0x120] sm:$0xff] }
 0x2fd   :  { %v2727_v40 = vadd.f32 %v2726_v21, %v2725_v22  ;;  %v2752_v22 = vsel %vm2143_vm2, %v8543_v18, 0.0 }
 0x2ff   :  { %v2729_v14 = vadd.f32 %v2728_v0, %v2727_v40  ;;  %v8551_v0 = vld [vmem:[#allocation3 + $0x128] sm:$0xff] }
 0x301   :  { %v2731_v52 = vadd.f32 %v2730_v20, %v2729_v14  ;;  %v2754_v20 = vsel %vm2143_vm2, %v8547_v32, 0.0  ;;  %v8555_v14 = vld [vmem:[#allocation3 + $0x130] sm:$0xff] }
 0x303   :  { %v2733_v24 = vadd.f32 %v2732_v8, %v2731_v52  ;;  %v2756_v52 = vsel %vm2143_vm2, %v8551_v0, 0.0 }
 0x305   :  { %v2735_v58 = vadd.f32 %v2734_v53, %v2733_v24  ;;  %v8559_v53 = vld [vmem:[#allocation3 + $0x138] sm:$0xff] }
 0x307   :  { %v2737_v55 = vadd.f32 %v2736_v6, %v2735_v58  ;;  %v2758_v6 = vsel %vm2143_vm2, %v8555_v14, 0.0  ;;  %v8563_v58 = vld [vmem:[#allocation3 + $0x140] sm:$0xff] }
 0x309   :  { %v2739_v44 = vadd.f32 %v2738_v23, %v2737_v55  ;;  %v2760_v55 = vsel %vm2143_vm2, %v8559_v53, 0.0 }
 0x30b   :  { %v2741_v26 = vadd.f32 %v2740_v10, %v2739_v44  ;;  %v8567_v10 = vld [vmem:[#allocation3 + $0x148] sm:$0xff] }
 0x30d   :  { %v2743_v35 = vadd.f32 %v2742_v2, %v2741_v26  ;;  %v2762_v2 = vsel %vm2143_vm2, %v8563_v58, 0.0  ;;  %v8571_v26 = vld [vmem:[#allocation3 + $0x150] sm:$0xff] }
 0x30f   :  { %v2745_v41 = vadd.f32 %v2744_v59, %v2743_v35  ;;  %v2764_v35 = vsel %vm2143_vm2, %v8567_v10, 0.0 }
 0x311   :  { %v2747_v33 = vadd.f32 %v2746_v31, %v2745_v41  ;;  %v8575_v31 = vld [vmem:[#allocation3 + $0x158] sm:$0xff] }
 0x313   :  { %v2749_v21 = vadd.f32 %v2748_v46, %v2747_v33  ;;  %v2766_v46 = vsel %vm2143_vm2, %v8571_v26, 0.0  ;;  %v8579_v33 = vld [vmem:[#allocation3 + $0x160] sm:$0xff] }
 0x315   :  { %v2751_v40 = vadd.f32 %v2750_v30, %v2749_v21  ;;  %v2768_v21 = vsel %vm2143_vm2, %v8575_v31, 0.0 }
 0x317   :  { %v2753_v8 = vadd.f32 %v2752_v22, %v2751_v40  ;;  %v8583_v22 = vld [vmem:[#allocation3 + $0x168] sm:$0xff] }
 0x319   :  { %v2755_v24 = vadd.f32 %v2754_v20, %v2753_v8  ;;  %v2770_v20 = vsel %vm2143_vm2, %v8579_v33, 0.0  ;;  %v8587_v8 = vld [vmem:[#allocation3 + $0x170] sm:$0xff] }
 0x31b   :  { %v2757_v23 = vadd.f32 %v2756_v52, %v2755_v24  ;;  %v2772_v24 = vsel %vm2143_vm2, %v8583_v22, 0.0 }
 0x31d   :  { %v2759_v44 = vadd.f32 %v2758_v6, %v2757_v23  ;;  %v8591_v6 = vld [vmem:[#allocation3 + $0x178] sm:$0xff] }
 0x31f   :  { %v2761_v59 = vadd.f32 %v2760_v55, %v2759_v44  ;;  %v2774_v55 = vsel %vm2143_vm2, %v8587_v8, 0.0  ;;  %v8595_v44 = vld [vmem:[#allocation3 + $0x180] sm:$0xff] }
 0x320   :  { %9454 = vst [vmem:[#allocation4_spill] sm:$0xff] %v8595_v44 }
 0x321   :  { %v2763_v41 = vadd.f32 %v2762_v2, %v2761_v59  ;;  %v2776_v59 = vsel %vm2143_vm2, %v8591_v6, 0.0 }
 0x323   :  { %v2765_v30 = vadd.f32 %v2764_v35, %v2763_v41  ;;  %v8599_v35 = vld [vmem:[#allocation3 + $0x188] sm:$0xff] }
 0x324   :  { %9455 = vst [vmem:[#allocation5_spill] sm:$0xff] %v8599_v35 }
 0x325   :  { %v2767_v40 = vadd.f32 %v2766_v46, %v2765_v30  ;;  %v2778_v46 = vsel %vm2143_vm2, %v8595_v44, 0.0  ;;  %v8603_v30 = vld [vmem:[#allocation3 + $0x190] sm:$0xff] }
 0x326   :  { %9456 = vst [vmem:[#allocation6_spill] sm:$0xff] %v8603_v30 }
 0x327   :  { %v2769_v52 = vadd.f32 %v2768_v21, %v2767_v40  ;;  %v2780_v40 = vsel %vm2143_vm2, %v8599_v35, 0.0 }
 0x329   :  { %v2771_v23 = vadd.f32 %v2770_v20, %v2769_v52  ;;  %v8607_v20 = vld [vmem:[#allocation3 + $0x198] sm:$0xff] }
 0x32a   :  { %9457 = vst [vmem:[#allocation7_spill] sm:$0xff] %v8607_v20 }
 0x32b   :  { %v2773_v2 = vadd.f32 %v2772_v24, %v2771_v23  ;;  %v2782_v24 = vsel %vm2143_vm2, %v8603_v30, 0.0  ;;  %v8611_v23 = vld [vmem:[#allocation3 + $0x1a0] sm:$0xff] }
 0x32c   :  { %9458 = vst [vmem:[#allocation8_spill] sm:$0xff] %v8611_v23 }
 0x32d   :  { %v2775_v41 = vadd.f32 %v2774_v55, %v2773_v2  ;;  %v2784_v55 = vsel %vm2143_vm2, %v8607_v20, 0.0  ;;  %v8615_v2 = vld [vmem:[#allocation3 + $0x1a8] sm:$0xff] }
 0x32e   :  { %9459 = vst [vmem:[#allocation9_spill] sm:$0xff] %v8615_v2 }
 0x32f   :  { %v2777_v21 = vadd.f32 %v2776_v59, %v2775_v41  ;;  %v2786_v59 = vsel %vm2143_vm2, %v8611_v23, 0.0  ;;  %v8619_v41 = vld [vmem:[#allocation3 + $0x1b0] sm:$0xff] }
 0x330   :  { %9460 = vst [vmem:[#allocation10_spill] sm:$0xff] %v8619_v41 }
 0x331   :  { %v2779_v52 = vadd.f32 %v2778_v46, %v2777_v21  ;;  %v2788_v46 = vsel %vm2143_vm2, %v8615_v2, 0.0  ;;  %v8623_v21 = vld [vmem:[#allocation3 + $0x1b8] sm:$0xff] }
 0x332   :  { %9461 = vst [vmem:[#allocation11_spill] sm:$0xff] %v8623_v21 }
 0x333   :  { %v2781_v11 = vadd.f32 %v2780_v40, %v2779_v52  ;;  %v2790_v40 = vsel %vm2143_vm2, %v8619_v41, 0.0  ;;  %v8627_v52 = vld [vmem:[#allocation3 + $0x1c0] sm:$0xff] }
 0x334   :  { %9462 = vst [vmem:[#allocation12_spill] sm:$0xff] %v8627_v52 }
 0x335   :  { %v2783_v13 = vadd.f32 %v2782_v24, %v2781_v11  ;;  %v2792_v11 = vsel %vm2143_vm2, %v8623_v21, 0.0  ;;  %v8631_v24 = vld [vmem:[#allocation3 + $0x1c8] sm:$0xff] }
 0x336   :  { %9463 = vst [vmem:[#allocation13_spill] sm:$0xff] %v8631_v24 }
 0x337   :  { %v2785_v35 = vadd.f32 %v2784_v55, %v2783_v13  ;;  %v2794_v13 = vsel %vm2143_vm2, %v8627_v52, 0.0  ;;  %v8635_v55 = vld [vmem:[#allocation3 + $0x1d0] sm:$0xff] }
 0x338   :  { %9464 = vst [vmem:[#allocation14_spill] sm:$0xff] %v8635_v55 }
 0x339   :  { %v2787_v30 = vadd.f32 %v2786_v59, %v2785_v35  ;;  %v2796_v35 = vsel %vm2143_vm2, %v8631_v24, 0.0  ;;  %v8639_v59 = vld [vmem:[#allocation3 + $0x1d8] sm:$0xff] }
 0x33a   :  { %9465 = vst [vmem:[#allocation15_spill] sm:$0xff] %v8639_v59 }
 0x33b   :  { %v2789_v20 = vadd.f32 %v2788_v46, %v2787_v30  ;;  %v2798_v30 = vsel %vm2143_vm2, %v8635_v55, 0.0  ;;  %v8643_v46 = vld [vmem:[#allocation3 + $0x1e0] sm:$0xff] }
 0x33d   :  { %v2791_v23 = vadd.f32 %v2790_v40, %v2789_v20  ;;  %v2800_v20 = vsel %vm2143_vm2, %v8639_v59, 0.0  ;;  %v8647_v40 = vld [vmem:[#allocation3 + $0x1e8] sm:$0xff] }
 0x33f   :  { %v2793_v2 = vadd.f32 %v2792_v11, %v2791_v23  ;;  %v2802_v23 = vsel %vm2143_vm2, %v8643_v46, 0.0  ;;  %v8651_v11 = vld [vmem:[#allocation3 + $0x1f0] sm:$0xff] }
 0x341   :  { %v2795_v41 = vadd.f32 %v2794_v13, %v2793_v2  ;;  %v2804_v2 = vsel %vm2143_vm2, %v8647_v40, 0.0  ;;  %v8655_v13 = vld [vmem:[#allocation3 + $0x1f8] sm:$0xff] }
 0x342   :  { %9466 = vst [vmem:[#allocation16_spill] sm:$0xff] %v8655_v13  ;;  %v2808_v59 = vsel %vm2143_vm2, %v8655_v13, 0.0 }
 0x343   :  { %v2797_v21 = vadd.f32 %v2796_v35, %v2795_v41  ;;  %v2806_v41 = vsel %vm2143_vm2, %v8651_v11, 0.0 }
 0x345   :  { %v2799_v52 = vadd.f32 %v2798_v30, %v2797_v21 }
 0x347   :  { %v2801_v24 = vadd.f32 %v2800_v20, %v2799_v52  ;;  %v2900_v52 = vld [vmem:[%s9434_s1 + $0x38] sm:$0xff] }
 0x348   :  { %5946 = vmatpush3.msra.mxu0 %v2900_v52 }
 0x349   :  { %v2803_v55 = vadd.f32 %v2802_v23, %v2801_v24  ;;  %v5257_v24 = vld [vmem:[%s9437_s2 + $0xd] ss:$0 sm:$0xff] }
 0x34b   :  { %v2805_v35 = vadd.f32 %v2804_v2, %v2803_v55 }
 0x34d   :  { %v2807_v21 = vadd.f32 %v2806_v41, %v2805_v35 }
 0x34f   :  { %v2809_v30 = vadd.f32 %v2808_v59, %v2807_v21  ;;  %v3050_v21 = vld [vmem:[%s9434_s1 + $0x48] sm:$0xff] }
 0x351   :  { %v2810_v44 = vmul.f32 0.015625, %v2809_v30  ;;  %v3051_v30 = vld [vmem:[%s9434_s1 + $0x50] sm:$0xff] }
 0x353   :  { %5943 = vmatmul.mubr.msk.f32.vlgmr.msra.gmra.mrb[64].mxu1 %vm2143_vm2, %v2810_v44  ;;  %v3049_v44 = vld [vmem:[%s9434_s1 + $0x40] sm:$0xff] }
 0x354   :  { %v6175_v52 = vpack.c.bf16 %v3050_v21, %v3049_v44 }
 0x356   :  { %6176 = vmatprep.subr.bf16.mxu1 %v6175_v52 }
 0x357   :  { %6178 = vmatpush3.bf16.msra.mxu1 %v6175_v52 }
 0x426   :  { %v2889_v20 = vpop.f32.mrb[64].mxu1 }
 0x427   :  { %v2890_v23 = vadd.f32 %v5257_v24, %v2889_v20  ;;  %v5944_v55 = vpop.f32.mrb[65].mxu1  ;;  %v5260_v20 = vld [vmem:[%s9437_s2 + $0xe] ss:$0 sm:$0xff] }
 0x429   :  { %v5259_v2 = vmul.f32 -1.442695, %v2890_v23 }
 0x42b   :  { %6750 = vpow2.f32 %v5259_v2 }
 0x435   :  { %v6751_v13 = vpop.eup %6750 }
 0x436   :  { %v2896_v41 = vadd.f32 1.0, %v6751_v13  ;;  %v3052_v13 = vld [vmem:[%s9434_s1 + $0x58] sm:$0xff] }
 0x437   :  { %v6179_v24 = vpack.c.bf16 %v3052_v13, %v3051_v30 }
 0x438   :  { %6752 = vrcp.f32 %v2896_v41 }
 0x439   :  { %6180 = vmatprep.subr.bf16.mxu1 %v6179_v24 }
 0x43a   :  { %6182 = vmatpush3.bf16.msra.mxu1 %v6179_v24 }
 0x442   :  { %v6753_v59 = vpop.eup %6752 }
 0x443   :  { %v2899_v35 = vmul.f32 %v6753_v59, %v2890_v23 }
 0x445   :  { %5948 = vmatmul.mubr.msk.f32.vlgmr.msra.gmra.mrb[64].mxu0 %vm1117_vm1, %v2899_v35 }
 0x518   :  { %v2975_v23 = vpop.f32.mrb[64].mxu0 }
 0x519   :  { %v2976_v55 = vadd.f32 %v5260_v20, %v2975_v23  ;;  %v5949_v2 = vpop.f32.mrb[65].mxu0 }
 0x51b   :  { %v5262_v41 = vmul.f32 -1.442695, %v2976_v55  ;;  %v9468_v55 = vld [vmem:[#allocation4_spill] sm:$0xff] }
 0x51d   :  { %6754 = vpow2.f32 %v5262_v41  ;;  %v9470_v41 = vld [vmem:[#allocation6_spill] sm:$0xff] }
 0x527   :  { %v6755_v59 = vpop.eup %6754 }
 0x528   :  { %v2982_v35 = vadd.f32 1.0, %v6755_v59 }
 0x52a   :  { %6756 = vrcp.f32 %v2982_v35  ;;  %v9471_v35 = vld [vmem:[#allocation7_spill] sm:$0xff] }
 0x534   :  { %v8684_v44 = vpop.eup %6756 }
 0x535   :  { %v2985_v21 = vmul.f32 %v8684_v44, %v8402_v19  ;;  %v2986_v30 = vmul.f32 %v8684_v44, %v8404_v43  ;;  %v2987_v52 = vmul.f32 %v8684_v44, %v8406_v16  ;;  %v2988_v13 = vmul.f32 %v8684_v44, %v8408_v1 }
 0x536   :  { %v2989_v24 = vmul.f32 %v8684_v44, %v8416_v56  ;;  %v2990_v19 = vmul.f32 %v8684_v44, %v8423_v63  ;;  %v2991_v43 = vmul.f32 %v8684_v44, %v8427_v25  ;;  %v2992_v16 = vmul.f32 %v8684_v44, %v8431_v42 }
 0x537   :  { %5958 = vmatprep.mubr.msk.f32.mxu1 %vm2143_vm2, %v2985_v21  ;;  %v2993_v1 = vmul.f32 %v8684_v44, %v8435_v51  ;;  %v2994_v56 = vmul.f32 %v8684_v44, %v8439_v54  ;;  %v2995_v63 = vmul.f32 %v8684_v44, %v8443_v28  ;;  %v2996_v25 = vmul.f32 %v8684_v44, %v8447_v17  ;;  %v9472_v21 = vld [vmem:[#allocation8_spill] sm:$0xff] }
 0x538   :  { %5959 = vmatmul.mubr.msk.f32.vlgmr.msra.gmra.mrb[66].mxu1 %vm2143_vm2, %v2986_v30  ;;  %v2997_v42 = vmul.f32 %v8684_v44, %v8451_v61  ;;  %v2998_v51 = vmul.f32 %v8684_v44, %v8455_v39  ;;  %v2999_v54 = vmul.f32 %v8684_v44, %v8459_v7  ;;  %v3000_v28 = vmul.f32 %v8684_v44, %v8463_v48 }
 0x539   :  { %5961 = vmatprep.mubr.msk.f32.mxu1 %vm2143_vm2, %v2987_v52  ;;  %v3001_v17 = vmul.f32 %v8684_v44, %v8467_v47  ;;  %v3002_v61 = vmul.f32 %v8684_v44, %v8471_v12  ;;  %v3003_v39 = vmul.f32 %v8684_v44, %v8475_v49  ;;  %v3004_v7 = vmul.f32 %v8684_v44, %v8479_v38  ;;  %v9473_v52 = vld [vmem:[#allocation9_spill] sm:$0xff] }
 0x53a   :  { %v3005_v48 = vmul.f32 %v8684_v44, %v8483_v15  ;;  %v3006_v47 = vmul.f32 %v8684_v44, %v8487_v37  ;;  %v3007_v12 = vmul.f32 %v8684_v44, %v8491_v9  ;;  %v3008_v49 = vmul.f32 %v8684_v44, %v8495_v45 }
 0x53b   :  { %v3009_v38 = vmul.f32 %v8684_v44, %v8499_v27  ;;  %v3010_v15 = vmul.f32 %v8684_v44, %v8503_v4  ;;  %v3011_v37 = vmul.f32 %v8684_v44, %v8507_v50  ;;  %v3012_v9 = vmul.f32 %v8684_v44, %v8511_v5 }
 0x53c   :  { %5962 = vmatmul.mubr.msk.f32.gmra.mrb[68].mxu1 %vm2143_vm2, %v2988_v13  ;;  %v3013_v45 = vmul.f32 %v8684_v44, %v8515_v62  ;;  %v3014_v27 = vmul.f32 %v8684_v44, %v8519_v60  ;;  %v3015_v4 = vmul.f32 %v8684_v44, %v8523_v29  ;;  %v3016_v50 = vmul.f32 %v8684_v44, %v8527_v36 }
 0x53d   :  { %5964 = vmatprep.mubr.msk.f32.mxu1 %vm2143_vm2, %v2989_v24  ;;  %v3017_v5 = vmul.f32 %v8684_v44, %v8531_v34  ;;  %v3018_v62 = vmul.f32 %v8684_v44, %v8535_v3  ;;  %v3019_v60 = vmul.f32 %v8684_v44, %v8539_v57  ;;  %v3020_v29 = vmul.f32 %v8684_v44, %v8543_v18  ;;  %v9474_v24 = vld [vmem:[#allocation10_spill] sm:$0xff] }
 0x53e   :  { %v3021_v36 = vmul.f32 %v8684_v44, %v8547_v32  ;;  %v3022_v34 = vmul.f32 %v8684_v44, %v8551_v0  ;;  %v3023_v3 = vmul.f32 %v8684_v44, %v8555_v14  ;;  %v3024_v57 = vmul.f32 %v8684_v44, %v8559_v53 }
 0x53f   :  { %v3025_v18 = vmul.f32 %v8684_v44, %v8563_v58  ;;  %v3026_v32 = vmul.f32 %v8684_v44, %v8567_v10  ;;  %v3027_v0 = vmul.f32 %v8684_v44, %v8571_v26  ;;  %v3028_v14 = vmul.f32 %v8684_v44, %v8575_v31  ;;  %v3635_v58 = vld [vmem:[%s9434_s1 + $0x60] sm:$0xff]  ;;  %v3636_v10 = vld [vmem:[%s9434_s1 + $0x68] sm:$0xff] }
 0x540   :  { %5965 = vmatmul.mubr.msk.f32.gmra.mrb[70].mxu1 %vm2143_vm2, %v2990_v19  ;;  %v3029_v53 = vmul.f32 %v8684_v44, %v8579_v33  ;;  %v6183_v26 = vpack.c.bf16 %v3636_v10, %v3635_v58  ;;  %v3030_v20 = vmul.f32 %v8684_v44, %v8583_v22  ;;  %v3031_v31 = vmul.f32 %v8684_v44, %v8587_v8  ;;  %v9469_v22 = vld [vmem:[#allocation5_spill] sm:$0xff] }
 0x541   :  { %5967 = vmatprep.mubr.msk.f32.mxu1 %vm2143_vm2, %v2991_v43  ;;  %v9467_v33 = vmov 0.0|0.0   ;;  %v3032_v23 = vmul.f32 %v8684_v44, %v8591_v6  ;;  %v3033_v2 = vmul.f32 %v8684_v44, %v9468_v55  ;;  %v3034_v8 = vmul.f32 %v8684_v44, %v9469_v22  ;;  %v9475_v43 = vld [vmem:[#allocation11_spill] sm:$0xff] }
 0x542   :  { %6184 = vmatprep.subr.bf16.mxu0 %v6183_v26  ;;  %v3035_v59 = vmul.f32 %v8684_v44, %v9470_v41  ;;  %v3036_v6 = vmul.f32 %v8684_v44, %v9471_v35  ;;  %v3037_v30 = vmul.f32 %v8684_v44, %v9472_v21  ;;  %v3038_v13 = vmul.f32 %v8684_v44, %v9473_v52 }
 0x543   :  { %6186 = vmatpush3.bf16.msra.mxu0 %v6183_v26  ;;  %v3039_v19 = vmul.f32 %v8684_v44, %v9474_v24 }
 0x544   :  { %5968 = vmatmul.mubr.msk.f32.gmra.mrb[72].mxu1 %vm2143_vm2, %v2992_v16  ;;  %6187 = vmatprep.subr.bf16.mxu0 %v9467_v33  ;;  %v3040_v16 = vmul.f32 %v8684_v44, %v9475_v43 }
 0x545   :  { %5970 = vmatprep.mubr.msk.f32.mxu1 %vm2143_vm2, %v2993_v1  ;;  %v9476_v1 = vld [vmem:[#allocation12_spill] sm:$0xff] }
 0x548   :  { %5971 = vmatmul.mubr.msk.f32.gmra.mrb[74].mxu1 %vm2143_vm2, %v2994_v56  ;;  %v3041_v56 = vmul.f32 %v8684_v44, %v9476_v1 }
 0x549   :  { %5973 = vmatprep.mubr.msk.f32.mxu1 %vm2143_vm2, %v2995_v63  ;;  %v9477_v63 = vld [vmem:[#allocation13_spill] sm:$0xff] }
 0x54c   :  { %5974 = vmatmul.mubr.msk.f32.gmra.mrb[76].mxu1 %vm2143_vm2, %v2996_v25  ;;  %v3042_v25 = vmul.f32 %v8684_v44, %v9477_v63 }
 0x54d   :  { %5976 = vmatprep.mubr.msk.f32.mxu1 %vm2143_vm2, %v2997_v42  ;;  %v9478_v42 = vld [vmem:[#allocation14_spill] sm:$0xff] }
 0x550   :  { %5977 = vmatmul.mubr.msk.f32.gmra.mrb[78].mxu1 %vm2143_vm2, %v2998_v51  ;;  %v3043_v51 = vmul.f32 %v8684_v44, %v9478_v42 }
 0x551   :  { %5979 = vmatprep.mubr.msk.f32.mxu1 %vm2143_vm2, %v2999_v54  ;;  %v9479_v54 = vld [vmem:[#allocation15_spill] sm:$0xff] }
 0x554   :  { %5980 = vmatmul.mubr.msk.f32.gmra.mrb[80].mxu1 %vm2143_vm2, %v3000_v28  ;;  %v3044_v28 = vmul.f32 %v8684_v44, %v9479_v54 }
 0x555   :  { %5982 = vmatprep.mubr.msk.f32.mxu1 %vm2143_vm2, %v3001_v17  ;;  %v3045_v17 = vmul.f32 %v8684_v44, %v8643_v46  ;;  %v8888_v46 = vld [vmem:[%s9437_s2 + $0xf] ss:$0 sm:$0xff] }
 0x558   :  { %5983 = vmatmul.mubr.msk.f32.gmra.mrb[82].mxu1 %vm2143_vm2, %v3002_v61  ;;  %v3046_v61 = vmul.f32 %v8684_v44, %v8647_v40 }
 0x559   :  { %5985 = vmatprep.mubr.msk.f32.mxu1 %vm2143_vm2, %v3003_v39  ;;  %v3047_v39 = vmul.f32 %v8684_v44, %v8651_v11 }
 0x55c   :  { %5986 = vmatmul.mubr.msk.f32.gmra.mrb[84].mxu1 %vm2143_vm2, %v3004_v7  ;;  %v9480_v7 = vld [vmem:[#allocation16_spill] sm:$0xff] }
 0x55d   :  { %5988 = vmatprep.mubr.msk.f32.mxu1 %vm2143_vm2, %v3005_v48  ;;  %v3048_v48 = vmul.f32 %v8684_v44, %v9480_v7 }
 0x560   :  { %5989 = vmatmul.mubr.msk.f32.gmra.mrb[86].mxu1 %vm2143_vm2, %v3006_v47 }
 0x561   :  { %5991 = vmatprep.mubr.msk.f32.mxu1 %vm2143_vm2, %v3007_v12 }
 0x564   :  { %5992 = vmatmul.mubr.msk.f32.gmra.mrb[88].mxu1 %vm2143_vm2, %v3008_v49 }
 0x565   :  { %5994 = vmatprep.mubr.msk.f32.mxu1 %vm2143_vm2, %v3009_v38 }
 0x568   :  { %5995 = vmatmul.mubr.msk.f32.gmra.mrb[90].mxu1 %vm2143_vm2, %v3010_v15 }
 0x569   :  { %5997 = vmatprep.mubr.msk.f32.mxu1 %vm2143_vm2, %v3011_v37 }
 0x56c   :  { %5998 = vmatmul.mubr.msk.f32.gmra.mrb[92].mxu1 %vm2143_vm2, %v3012_v9 }
 0x56d   :  { %6000 = vmatprep.mubr.msk.f32.mxu1 %vm2143_vm2, %v3013_v45 }
 0x570   :  { %6001 = vmatmul.mubr.msk.f32.gmra.mrb[94].mxu1 %vm2143_vm2, %v3014_v27 }
 0x571   :  { %6003 = vmatprep.mubr.msk.f32.mxu1 %vm2143_vm2, %v3015_v4 }
 0x574   :  { %6004 = vmatmul.mubr.msk.f32.gmra.mrb[96].mxu1 %vm2143_vm2, %v3016_v50 }
 0x575   :  { %6006 = vmatprep.mubr.msk.f32.mxu1 %vm2143_vm2, %v3017_v5 }
 0x578   :  { %6007 = vmatmul.mubr.msk.f32.gmra.mrb[98].mxu1 %vm2143_vm2, %v3018_v62 }
 0x579   :  { %6009 = vmatprep.mubr.msk.f32.mxu1 %vm2143_vm2, %v3019_v60 }
 0x57c   :  { %6010 = vmatmul.mubr.msk.f32.gmra.mrb[100].mxu1 %vm2143_vm2, %v3020_v29 }
 0x57d   :  { %6012 = vmatprep.mubr.msk.f32.mxu1 %vm2143_vm2, %v3021_v36 }
 0x580   :  { %6013 = vmatmul.mubr.msk.f32.gmra.mrb[102].mxu1 %vm2143_vm2, %v3022_v34 }
 0x581   :  { %6015 = vmatprep.mubr.msk.f32.mxu1 %vm2143_vm2, %v3023_v3 }
 0x584   :  { %6016 = vmatmul.mubr.msk.f32.gmra.mrb[104].mxu1 %vm2143_vm2, %v3024_v57 }
 0x585   :  { %6018 = vmatprep.mubr.msk.f32.mxu1 %vm2143_vm2, %v3025_v18 }
 0x588   :  { %6019 = vmatmul.mubr.msk.f32.gmra.mrb[106].mxu1 %vm2143_vm2, %v3026_v32 }
 0x589   :  { %6021 = vmatprep.mubr.msk.f32.mxu1 %vm2143_vm2, %v3027_v0 }
 0x58c   :  { %6022 = vmatmul.mubr.msk.f32.gmra.mrb[108].mxu1 %vm2143_vm2, %v3028_v14 }
 0x58d   :  { %6024 = vmatprep.mubr.msk.f32.mxu1 %vm2143_vm2, %v3029_v53 }
 0x590   :  { %6025 = vmatmul.mubr.msk.f32.gmra.mrb[110].mxu1 %vm2143_vm2, %v3030_v20 }
 0x591   :  { %6027 = vmatprep.mubr.msk.f32.mxu1 %vm2143_vm2, %v3031_v31 }
 0x594   :  { %6028 = vmatmul.mubr.msk.f32.gmra.mrb[112].mxu1 %vm2143_vm2, %v3032_v23 }
 0x595   :  { %6030 = vmatprep.mubr.msk.f32.mxu1 %vm2143_vm2, %v3033_v2 }
 0x598   :  { %6031 = vmatmul.mubr.msk.f32.gmra.mrb[114].mxu1 %vm2143_vm2, %v3034_v8 }
 0x599   :  { %6033 = vmatprep.mubr.msk.f32.mxu1 %vm2143_vm2, %v3035_v59 }
 0x59c   :  { %6034 = vmatmul.mubr.msk.f32.gmra.mrb[116].mxu1 %vm2143_vm2, %v3036_v6 }
 0x59d   :  { %6036 = vmatprep.mubr.msk.f32.mxu1 %vm2143_vm2, %v3037_v30 }
 0x5a0   :  { %6037 = vmatmul.mubr.msk.f32.gmra.mrb[118].mxu1 %vm2143_vm2, %v3038_v13 }
 0x5a1   :  { %6039 = vmatprep.mubr.msk.f32.mxu1 %vm2143_vm2, %v3039_v19 }
 0x5a4   :  { %6040 = vmatmul.mubr.msk.f32.gmra.mrb[120].mxu1 %vm2143_vm2, %v3040_v16 }
 0x5a5   :  { %6042 = vmatprep.mubr.msk.f32.mxu1 %vm2143_vm2, %v3041_v56 }
 0x5a8   :  { %6043 = vmatmul.mubr.msk.f32.gmra.mrb[122].mxu1 %vm2143_vm2, %v3042_v25 }
 0x5a9   :  { %6045 = vmatprep.mubr.msk.f32.mxu1 %vm2143_vm2, %v3043_v51 }
 0x5ac   :  { %6046 = vmatmul.mubr.msk.f32.gmra.mrb[124].mxu1 %vm2143_vm2, %v3044_v28 }
 0x5ad   :  { %6048 = vmatprep.mubr.msk.f32.mxu1 %vm2143_vm2, %v3045_v17 }
 0x5b0   :  { %6049 = vmatmul.mubr.msk.f32.gmra.mrb[126].mxu1 %vm2143_vm2, %v3046_v61 }
 0x5b1   :  { %6051 = vmatprep.mubr.msk.f32.mxu1 %vm2143_vm2, %v3047_v39 }
 0x5b4   :  { %6052 = vmatmul.mubr.msk.f32.gmra.mrb[128].mxu1 %vm2143_vm2, %v3048_v48 }
 0x60b   :  { %v5960_v47 = vpop.f32.mrb[66].mxu1 }
 0x60c   :  { %v3316_v12 = vpop.f32.mrb[67].mxu1  ;;  %v3322_v11 = vadd.f32 %v5960_v47, %v8888_v46 }
 0x60d   :  { %v3317_v40 = vadd.f32 %v8888_v46, %v3316_v12 }
 0x60f   :  { %v5963_v49 = vpop.f32.mrb[68].mxu1  ;;  %6058 = vmatprep.mubr.msk.f32.mxu0 %vm85_vm0, %v3317_v40 }
 0x610   :  { %v3326_v38 = vpop.f32.mrb[69].mxu1  ;;  %6059 = vmatmul.mubr.msk.f32.vlgmr.msra.gmra.mrb[66].mxu0 %vm85_vm0, %v3322_v11  ;;  %v3332_v15 = vadd.f32 %v5963_v49, %v8888_v46 }
 0x611   :  { %v3327_v44 = vadd.f32 %v8888_v46, %v3326_v38 }
 0x613   :  { %v5966_v37 = vpop.f32.mrb[70].mxu1  ;;  %6061 = vmatprep.mubr.msk.f32.mxu0 %vm85_vm0, %v3327_v44 }
 0x614   :  { %v3336_v9 = vpop.f32.mrb[71].mxu1  ;;  %6062 = vmatmul.mubr.msk.f32.gmra.mrb[68].mxu0 %vm85_vm0, %v3332_v15  ;;  %v3342_v27 = vadd.f32 %v5966_v37, %v8888_v46 }
 0x615   :  { %v3337_v45 = vadd.f32 %v8888_v46, %v3336_v9 }
 0x617   :  { %v5969_v4 = vpop.f32.mrb[72].mxu1  ;;  %6064 = vmatprep.mubr.msk.f32.mxu0 %vm85_vm0, %v3337_v45 }
 0x618   :  { %v3346_v50 = vpop.f32.mrb[73].mxu1  ;;  %6065 = vmatmul.mubr.msk.f32.gmra.mrb[70].mxu0 %vm85_vm0, %v3342_v27  ;;  %v3352_v62 = vadd.f32 %v5969_v4, %v8888_v46 }
 0x619   :  { %v3347_v5 = vadd.f32 %v8888_v46, %v3346_v50 }
 0x61b   :  { %v5972_v60 = vpop.f32.mrb[74].mxu1  ;;  %6067 = vmatprep.mubr.msk.f32.mxu0 %vm85_vm0, %v3347_v5 }
 0x61c   :  { %v3356_v29 = vpop.f32.mrb[75].mxu1  ;;  %6068 = vmatmul.mubr.msk.f32.gmra.mrb[72].mxu0 %vm85_vm0, %v3352_v62  ;;  %v3362_v34 = vadd.f32 %v5972_v60, %v8888_v46 }
 0x61d   :  { %v3357_v36 = vadd.f32 %v8888_v46, %v3356_v29 }
 0x61f   :  { %v5975_v3 = vpop.f32.mrb[76].mxu1  ;;  %6070 = vmatprep.mubr.msk.f32.mxu0 %vm85_vm0, %v3357_v36 }
 0x620   :  { %v3366_v57 = vpop.f32.mrb[77].mxu1  ;;  %6071 = vmatmul.mubr.msk.f32.gmra.mrb[74].mxu0 %vm85_vm0, %v3362_v34  ;;  %v3372_v32 = vadd.f32 %v5975_v3, %v8888_v46 }
 0x621   :  { %v3367_v18 = vadd.f32 %v8888_v46, %v3366_v57 }
 0x623   :  { %v5978_v0 = vpop.f32.mrb[78].mxu1  ;;  %6073 = vmatprep.mubr.msk.f32.mxu0 %vm85_vm0, %v3367_v18 }
 0x624   :  { %v3376_v14 = vpop.f32.mrb[79].mxu1  ;;  %6074 = vmatmul.mubr.msk.f32.gmra.mrb[76].mxu0 %vm85_vm0, %v3372_v32  ;;  %v3382_v58 = vadd.f32 %v5978_v0, %v8888_v46 }
 0x625   :  { %v3377_v53 = vadd.f32 %v8888_v46, %v3376_v14 }
 0x627   :  { %v5981_v10 = vpop.f32.mrb[80].mxu1  ;;  %6076 = vmatprep.mubr.msk.f32.mxu0 %vm85_vm0, %v3377_v53 }
 0x628   :  { %v3386_v26 = vpop.f32.mrb[81].mxu1  ;;  %6077 = vmatmul.mubr.msk.f32.gmra.mrb[78].mxu0 %vm85_vm0, %v3382_v58  ;;  %v3392_v31 = vadd.f32 %v5981_v10, %v8888_v46 }
 0x629   :  { %v3387_v20 = vadd.f32 %v8888_v46, %v3386_v26 }
 0x62b   :  { %v5984_v23 = vpop.f32.mrb[82].mxu1  ;;  %6079 = vmatprep.mubr.msk.f32.mxu0 %vm85_vm0, %v3387_v20 }
 0x62c   :  { %v3396_v55 = vpop.f32.mrb[83].mxu1  ;;  %6080 = vmatmul.mubr.msk.f32.gmra.mrb[80].mxu0 %vm85_vm0, %v3392_v31  ;;  %v3402_v22 = vadd.f32 %v5984_v23, %v8888_v46 }
 0x62d   :  { %v3397_v2 = vadd.f32 %v8888_v46, %v3396_v55 }
 0x62f   :  { %v5987_v8 = vpop.f32.mrb[84].mxu1  ;;  %6082 = vmatprep.mubr.msk.f32.mxu0 %vm85_vm0, %v3397_v2 }
 0x630   :  { %v3406_v41 = vpop.f32.mrb[85].mxu1  ;;  %6083 = vmatmul.mubr.msk.f32.gmra.mrb[82].mxu0 %vm85_vm0, %v3402_v22  ;;  %v3412_v35 = vadd.f32 %v5987_v8, %v8888_v46 }
 0x631   :  { %v3407_v59 = vadd.f32 %v8888_v46, %v3406_v41 }
 0x633   :  { %v5990_v6 = vpop.f32.mrb[86].mxu1  ;;  %6085 = vmatprep.mubr.msk.f32.mxu0 %vm85_vm0, %v3407_v59 }
 0x634   :  { %v3416_v21 = vpop.f32.mrb[87].mxu1  ;;  %6086 = vmatmul.mubr.msk.f32.gmra.mrb[84].mxu0 %vm85_vm0, %v3412_v35  ;;  %v3422_v52 = vadd.f32 %v5990_v6, %v8888_v46 }
 0x635   :  { %v3417_v30 = vadd.f32 %v8888_v46, %v3416_v21 }
 0x637   :  { %v5993_v13 = vpop.f32.mrb[88].mxu1  ;;  %6088 = vmatprep.mubr.msk.f32.mxu0 %vm85_vm0, %v3417_v30 }
 0x638   :  { %v3426_v24 = vpop.f32.mrb[89].mxu1  ;;  %6089 = vmatmul.mubr.msk.f32.gmra.mrb[86].mxu0 %vm85_vm0, %v3422_v52  ;;  %v3432_v43 = vadd.f32 %v5993_v13, %v8888_v46 }
 0x639   :  { %v3427_v19 = vadd.f32 %v8888_v46, %v3426_v24 }
 0x63b   :  { %v5996_v16 = vpop.f32.mrb[90].mxu1  ;;  %6091 = vmatprep.mubr.msk.f32.mxu0 %vm85_vm0, %v3427_v19 }
 0x63c   :  { %v3436_v1 = vpop.f32.mrb[91].mxu1  ;;  %6092 = vmatmul.mubr.msk.f32.gmra.mrb[88].mxu0 %vm85_vm0, %v3432_v43  ;;  %v3442_v63 = vadd.f32 %v5996_v16, %v8888_v46 }
 0x63d   :  { %v3437_v56 = vadd.f32 %v8888_v46, %v3436_v1 }
 0x63f   :  { %v5999_v25 = vpop.f32.mrb[92].mxu1  ;;  %6094 = vmatprep.mubr.msk.f32.mxu0 %vm85_vm0, %v3437_v56 }
 0x640   :  { %v3446_v42 = vpop.f32.mrb[93].mxu1  ;;  %6095 = vmatmul.mubr.msk.f32.gmra.mrb[90].mxu0 %vm85_vm0, %v3442_v63  ;;  %v3452_v54 = vadd.f32 %v5999_v25, %v8888_v46 }
 0x641   :  { %v3447_v51 = vadd.f32 %v8888_v46, %v3446_v42 }
 0x643   :  { %v6002_v28 = vpop.f32.mrb[94].mxu1  ;;  %6097 = vmatprep.mubr.msk.f32.mxu0 %vm85_vm0, %v3447_v51 }
 0x644   :  { %v3456_v17 = vpop.f32.mrb[95].mxu1  ;;  %6098 = vmatmul.mubr.msk.f32.gmra.mrb[92].mxu0 %vm85_vm0, %v3452_v54  ;;  %v3462_v39 = vadd.f32 %v6002_v28, %v8888_v46 }
 0x645   :  { %v3457_v61 = vadd.f32 %v8888_v46, %v3456_v17 }
 0x647   :  { %v6005_v7 = vpop.f32.mrb[96].mxu1  ;;  %6100 = vmatprep.mubr.msk.f32.mxu0 %vm85_vm0, %v3457_v61 }
 0x648   :  { %v3466_v48 = vpop.f32.mrb[97].mxu1  ;;  %6101 = vmatmul.mubr.msk.f32.gmra.mrb[94].mxu0 %vm85_vm0, %v3462_v39  ;;  %v3472_v12 = vadd.f32 %v6005_v7, %v8888_v46 }
 0x649   :  { %v3467_v47 = vadd.f32 %v8888_v46, %v3466_v48 }
 0x64b   :  { %v6008_v40 = vpop.f32.mrb[98].mxu1  ;;  %6103 = vmatprep.mubr.msk.f32.mxu0 %vm85_vm0, %v3467_v47 }
 0x64c   :  { %v3476_v11 = vpop.f32.mrb[99].mxu1  ;;  %6104 = vmatmul.mubr.msk.f32.gmra.mrb[96].mxu0 %vm85_vm0, %v3472_v12  ;;  %v3482_v38 = vadd.f32 %v6008_v40, %v8888_v46 }
 0x64d   :  { %v3477_v49 = vadd.f32 %v8888_v46, %v3476_v11 }
 0x64f   :  { %v6011_v44 = vpop.f32.mrb[100].mxu1  ;;  %6106 = vmatprep.mubr.msk.f32.mxu0 %vm85_vm0, %v3477_v49  ;;  %v9481_v49 = vmov 0.0  }
 0x650   :  { %v3486_v15 = vpop.f32.mrb[101].mxu1  ;;  %6107 = vmatmul.mubr.msk.f32.gmra.mrb[98].mxu0 %vm85_vm0, %v3482_v38  ;;  %v3492_v9 = vadd.f32 %v6011_v44, %v8888_v46  ;;  %v4795_v38 = vld [vmem:[%s9434_s1 + $0x70] sm:$0xff]  ;;  %v4796_v44 = vld [vmem:[%s9434_s1 + $0x78] sm:$0xff] }
 0x651   :  { %v3487_v37 = vadd.f32 %v8888_v46, %v3486_v15  ;;  %v6188_v15 = vpack.c.bf16 %v4796_v44, %v4795_v38 }
 0x653   :  { %v6014_v45 = vpop.f32.mrb[102].mxu1  ;;  %6109 = vmatprep.mubr.msk.f32.mxu0 %vm85_vm0, %v3487_v37  ;;  %6189 = vmatpush3.bf16.msra.mxu0 %v6188_v15 }
 0x654   :  { %v3496_v27 = vpop.f32.mrb[103].mxu1  ;;  %6110 = vmatmul.mubr.msk.f32.gmra.mrb[100].mxu0 %vm85_vm0, %v3492_v9  ;;  %v3502_v50 = vadd.f32 %v6014_v45, %v8888_v46  ;;  %6190 = vmatprep.subr.bf16.mxu0 %v9467_v33 }
 0x655   :  { %v3497_v4 = vadd.f32 %v8888_v46, %v3496_v27 }
 0x657   :  { %v6017_v5 = vpop.f32.mrb[104].mxu1  ;;  %6112 = vmatprep.mubr.msk.f32.mxu0 %vm85_vm0, %v3497_v4 }
 0x658   :  { %v3506_v62 = vpop.f32.mrb[105].mxu1  ;;  %6113 = vmatmul.mubr.msk.f32.gmra.mrb[102].mxu0 %vm85_vm0, %v3502_v50  ;;  %v3512_v29 = vadd.f32 %v6017_v5, %v8888_v46 }
 0x659   :  { %v3507_v60 = vadd.f32 %v8888_v46, %v3506_v62 }
 0x65b   :  { %v6020_v36 = vpop.f32.mrb[106].mxu1  ;;  %6115 = vmatprep.mubr.msk.f32.mxu0 %vm85_vm0, %v3507_v60 }
 0x65c   :  { %v3516_v34 = vpop.f32.mrb[107].mxu1  ;;  %6116 = vmatmul.mubr.msk.f32.gmra.mrb[104].mxu0 %vm85_vm0, %v3512_v29  ;;  %v3522_v57 = vadd.f32 %v6020_v36, %v8888_v46  ;;  %v4797_v29 = vld [vmem:[%s9434_s1 + $0x80] sm:$0xff]  ;;  %v4798_v36 = vld [vmem:[%s9434_s1 + $0x88] sm:$0xff] }
 0x65d   :  { %v3517_v3 = vadd.f32 %v8888_v46, %v3516_v34 }
 0x65f   :  { %v6023_v18 = vpop.f32.mrb[108].mxu1  ;;  %6118 = vmatprep.mubr.msk.f32.mxu0 %vm85_vm0, %v3517_v3  ;;  %v6191_v3 = vpack.c.bf16 %v4798_v36, %v4797_v29 }
 0x660   :  { %v3526_v32 = vpop.f32.mrb[109].mxu1  ;;  %6119 = vmatmul.mubr.msk.f32.gmra.mrb[106].mxu0 %vm85_vm0, %v3522_v57  ;;  %v3532_v14 = vadd.f32 %v6023_v18, %v8888_v46 }
 0x661   :  { %v3527_v0 = vadd.f32 %v8888_v46, %v3526_v32  ;;  %6192 = vmatpush3.bf16.msra.mxu0 %v6191_v3 }
 0x663   :  { %v6026_v53 = vpop.f32.mrb[110].mxu1  ;;  %6121 = vmatprep.mubr.msk.f32.mxu0 %vm85_vm0, %v3527_v0 }
 0x664   :  { %v3536_v58 = vpop.f32.mrb[111].mxu1  ;;  %6122 = vmatmul.mubr.msk.f32.gmra.mrb[108].mxu0 %vm85_vm0, %v3532_v14  ;;  %v3542_v26 = vadd.f32 %v6026_v53, %v8888_v46 }
 0x665   :  { %v3537_v10 = vadd.f32 %v8888_v46, %v3536_v58 }
 0x667   :  { %v6029_v20 = vpop.f32.mrb[112].mxu1  ;;  %6124 = vmatprep.mubr.msk.f32.mxu0 %vm85_vm0, %v3537_v10 }
 0x668   :  { %v3546_v31 = vpop.f32.mrb[113].mxu1  ;;  %6125 = vmatmul.mubr.msk.f32.gmra.mrb[110].mxu0 %vm85_vm0, %v3542_v26  ;;  %v3552_v55 = vadd.f32 %v6029_v20, %v8888_v46 }
 0x669   :  { %v3547_v23 = vadd.f32 %v8888_v46, %v3546_v31 }
 0x66b   :  { %v6032_v2 = vpop.f32.mrb[114].mxu1  ;;  %6127 = vmatprep.mubr.msk.f32.mxu0 %vm85_vm0, %v3547_v23 }
 0x66c   :  { %v3556_v22 = vpop.f32.mrb[115].mxu1  ;;  %6128 = vmatmul.mubr.msk.f32.gmra.mrb[112].mxu0 %vm85_vm0, %v3552_v55  ;;  %v3562_v41 = vadd.f32 %v6032_v2, %v8888_v46 }
 0x66d   :  { %v3557_v8 = vadd.f32 %v8888_v46, %v3556_v22 }
 0x66f   :  { %v6035_v59 = vpop.f32.mrb[116].mxu1  ;;  %6130 = vmatprep.mubr.msk.f32.mxu0 %vm85_vm0, %v3557_v8 }
 0x670   :  { %v3566_v35 = vpop.f32.mrb[117].mxu1  ;;  %6131 = vmatmul.mubr.msk.f32.gmra.mrb[114].mxu0 %vm85_vm0, %v3562_v41  ;;  %v3572_v21 = vadd.f32 %v6035_v59, %v8888_v46 }
 0x671   :  { %v3567_v6 = vadd.f32 %v8888_v46, %v3566_v35 }
 0x673   :  { %v6038_v30 = vpop.f32.mrb[118].mxu1  ;;  %6133 = vmatprep.mubr.msk.f32.mxu0 %vm85_vm0, %v3567_v6 }
 0x674   :  { %v3576_v52 = vpop.f32.mrb[119].mxu1  ;;  %6134 = vmatmul.mubr.msk.f32.gmra.mrb[116].mxu0 %vm85_vm0, %v3572_v21  ;;  %v3582_v24 = vadd.f32 %v6038_v30, %v8888_v46 }
 0x675   :  { %v3577_v13 = vadd.f32 %v8888_v46, %v3576_v52 }
 0x677   :  { %v6041_v19 = vpop.f32.mrb[120].mxu1  ;;  %6136 = vmatprep.mubr.msk.f32.mxu0 %vm85_vm0, %v3577_v13 }
 0x678   :  { %v3586_v43 = vpop.f32.mrb[121].mxu1  ;;  %6137 = vmatmul.mubr.msk.f32.gmra.mrb[118].mxu0 %vm85_vm0, %v3582_v24  ;;  %v3592_v1 = vadd.f32 %v6041_v19, %v8888_v46 }
 0x679   :  { %v3587_v16 = vadd.f32 %v8888_v46, %v3586_v43 }
 0x67b   :  { %v6044_v56 = vpop.f32.mrb[122].mxu1  ;;  %6139 = vmatprep.mubr.msk.f32.mxu0 %vm85_vm0, %v3587_v16 }
 0x67c   :  { %v3596_v63 = vpop.f32.mrb[123].mxu1  ;;  %6140 = vmatmul.mubr.msk.f32.gmra.mrb[120].mxu0 %vm85_vm0, %v3592_v1  ;;  %v3602_v42 = vadd.f32 %v6044_v56, %v8888_v46 }
 0x67d   :  { %v3597_v25 = vadd.f32 %v8888_v46, %v3596_v63 }
 0x67f   :  { %v6047_v51 = vpop.f32.mrb[124].mxu1  ;;  %6142 = vmatprep.mubr.msk.f32.mxu0 %vm85_vm0, %v3597_v25 }
 0x680   :  { %v3606_v54 = vpop.f32.mrb[125].mxu1  ;;  %6143 = vmatmul.mubr.msk.f32.gmra.mrb[122].mxu0 %vm85_vm0, %v3602_v42  ;;  %v3612_v17 = vadd.f32 %v6047_v51, %v8888_v46 }
 0x681   :  { %v3607_v28 = vadd.f32 %v8888_v46, %v3606_v54 }
 0x683   :  { %v6050_v61 = vpop.f32.mrb[126].mxu1  ;;  %6145 = vmatprep.mubr.msk.f32.mxu0 %vm85_vm0, %v3607_v28 }
 0x684   :  { %v3616_v39 = vpop.f32.mrb[127].mxu1  ;;  %6146 = vmatmul.mubr.msk.f32.gmra.mrb[124].mxu0 %vm85_vm0, %v3612_v17  ;;  %v3622_v48 = vadd.f32 %v6050_v61, %v8888_v46 }
 0x685   :  { %v3617_v7 = vadd.f32 %v8888_v46, %v3616_v39 }
 0x687   :  { %v6053_v47 = vpop.f32.mrb[128].mxu1  ;;  %6148 = vmatprep.mubr.msk.f32.mxu0 %vm85_vm0, %v3617_v7 }
 0x688   :  { %v3626_v12 = vpop.f32.mrb[129].mxu1  ;;  %6149 = vmatmul.mubr.msk.f32.gmra.mrb[126].mxu0 %vm85_vm0, %v3622_v48  ;;  %v3632_v11 = vadd.f32 %v6053_v47, %v8888_v46 }
 0x689   :  { %v3627_v40 = vadd.f32 %v8888_v46, %v3626_v12  ;;  %v9030_v46 = vld [vmem:[%s9437_s2 + $0x10] ss:$0 sm:$0xff] }
 0x68b   :  { %6151 = vmatprep.mubr.msk.f32.mxu0 %vm85_vm0, %v3627_v40 }
 0x68c   :  { %6152 = vmatmul.mubr.msk.f32.gmra.mrb[128].mxu0 %vm85_vm0, %v3632_v11 }
 0x68d   :  { %6162 = vmatprep.mubr.msk.f32.mxu0 %vm7025_vm3, %v9481_v49 }
 0x6e3   :  { %v6060_v37 = vpop.f32.mrb[66].mxu0 }
 0x6e4   :  { %v9033_v9 = vadd.f32 %v6060_v37, %v9030_v46  ;;  %v3900_v45 = vpop.f32.mrb[67].mxu0 }
 0x6e5   :  { %v9036_v27 = vadd.f32 %v9030_v46, %v3900_v45 }
 0x6e6   :  { %v5394_v4 = vmul.f32 -1.442695, %v9033_v9 }
 0x6e7   :  { %v5393_v50 = vmul.f32 -1.442695, %v9036_v27  ;;  %v6063_v5 = vpop.f32.mrb[68].mxu0 }
 0x6e8   :  { %6758 = vpow2.f32 %v5394_v4  ;;  %v9041_v33 = vadd.f32 %v6063_v5, %v9030_v46  ;;  %v3910_v62 = vpop.f32.mrb[69].mxu0 }
 0x6e9   :  { %6760 = vpow2.f32 %v5393_v50  ;;  %v9044_v60 = vadd.f32 %v9030_v46, %v3910_v62 }
 0x6ea   :  { %v5396_v34 = vmul.f32 -1.442695, %v9041_v33 }
 0x6eb   :  { %v5395_v57 = vmul.f32 -1.442695, %v9044_v60  ;;  %v6066_v18 = vpop.f32.mrb[70].mxu0 }
 0x6ec   :  { %6762 = vpow2.f32 %v5396_v34  ;;  %v9055_v32 = vadd.f32 %v6066_v18, %v9030_v46  ;;  %v3920_v0 = vpop.f32.mrb[71].mxu0 }
 0x6ed   :  { %6764 = vpow2.f32 %v5395_v57  ;;  %v9058_v14 = vadd.f32 %v9030_v46, %v3920_v0 }
 0x6ee   :  { %v5398_v53 = vmul.f32 -1.442695, %v9055_v32 }
 0x6ef   :  { %v5397_v58 = vmul.f32 -1.442695, %v9058_v14  ;;  %v6069_v10 = vpop.f32.mrb[72].mxu0 }
 0x6f0   :  { %6766 = vpow2.f32 %v5398_v53  ;;  %v9063_v26 = vadd.f32 %v6069_v10, %v9030_v46  ;;  %v3930_v20 = vpop.f32.mrb[73].mxu0 }
 0x6f1   :  { %6768 = vpow2.f32 %v5397_v58  ;;  %v9066_v31 = vadd.f32 %v9030_v46, %v3930_v20 }
 0x6f2   :  { %v6759_v23 = vpop.eup %6758  ;;  %v5400_v55 = vmul.f32 -1.442695, %v9063_v26 }
 0x6f3   :  { %v6761_v2 = vpop.eup %6760  ;;  %v4412_v22 = vadd.f32 1.0, %v6759_v23  ;;  %v5399_v8 = vmul.f32 -1.442695, %v9066_v31  ;;  %v6072_v41 = vpop.f32.mrb[74].mxu0 }
 0x6f4   :  { %v4411_v59 = vadd.f32 1.0, %v6761_v2  ;;  %6770 = vpow2.f32 %v5400_v55  ;;  %v9071_v35 = vadd.f32 %v6072_v41, %v9030_v46  ;;  %v3940_v6 = vpop.f32.mrb[75].mxu0 }
 0x6f5   :  { %6772 = vrcp.f32 %v4412_v22  ;;  %v9074_v21 = vadd.f32 %v9030_v46, %v3940_v6 }
 0x6f6   :  { %v6763_v30 = vpop.eup %6762  ;;  %6774 = vrcp.f32 %v4411_v59  ;;  %v5402_v52 = vmul.f32 -1.442695, %v9071_v35 }
 0x6f7   :  { %v6765_v13 = vpop.eup %6764  ;;  %v4414_v24 = vadd.f32 1.0, %v6763_v30  ;;  %6776 = vpow2.f32 %v5399_v8  ;;  %v5401_v19 = vmul.f32 -1.442695, %v9074_v21  ;;  %v6075_v43 = vpop.f32.mrb[76].mxu0 }
 0x6f8   :  { %v4413_v16 = vadd.f32 1.0, %v6765_v13  ;;  %6778 = vpow2.f32 %v5402_v52  ;;  %v9079_v1 = vadd.f32 %v6075_v43, %v9030_v46  ;;  %v3950_v56 = vpop.f32.mrb[77].mxu0 }
 0x6f9   :  { %6780 = vrcp.f32 %v4414_v24  ;;  %v9082_v63 = vadd.f32 %v9030_v46, %v3950_v56 }
 0x6fa   :  { %v6767_v25 = vpop.eup %6766  ;;  %6782 = vrcp.f32 %v4413_v16  ;;  %v5404_v42 = vmul.f32 -1.442695, %v9079_v1 }
 0x6fb   :  { %v6769_v51 = vpop.eup %6768  ;;  %v4416_v54 = vadd.f32 1.0, %v6767_v25  ;;  %6784 = vpow2.f32 %v5401_v19  ;;  %v5403_v28 = vmul.f32 -1.442695, %v9082_v63  ;;  %v6078_v17 = vpop.f32.mrb[78].mxu0 }
 0x6fc   :  { %v4415_v61 = vadd.f32 1.0, %v6769_v51  ;;  %6786 = vpow2.f32 %v5404_v42  ;;  %v9087_v39 = vadd.f32 %v6078_v17, %v9030_v46  ;;  %v3960_v7 = vpop.f32.mrb[79].mxu0 }
 0x6fd   :  { %6788 = vrcp.f32 %v4416_v54  ;;  %v9090_v48 = vadd.f32 %v9030_v46, %v3960_v7 }
 0x6fe   :  { %v6771_v47 = vpop.eup %6770  ;;  %6790 = vrcp.f32 %v4415_v61  ;;  %v5406_v12 = vmul.f32 -1.442695, %v9087_v39 }
 0x6ff   :  { %v6773_v40 = vpop.eup %6772  ;;  %v4418_v11 = vadd.f32 1.0, %v6771_v47  ;;  %6792 = vpow2.f32 %v5403_v28  ;;  %v5405_v49 = vmul.f32 -1.442695, %v9090_v48  ;;  %v6081_v38 = vpop.f32.mrb[80].mxu0 }
 0x700   :  { %v6775_v44 = vpop.eup %6774  ;;  %v4604_v15 = vmul.f32 %v6773_v40, %v9033_v9  ;;  %6794 = vpow2.f32 %v5406_v12  ;;  %v9096_v37 = vadd.f32 %v6081_v38, %v9030_v46  ;;  %v3970_v45 = vpop.f32.mrb[81].mxu0 }
 0x701   :  { %v6777_v4 = vpop.eup %6776  ;;  %v4603_v50 = vmul.f32 %v6775_v44, %v9036_v27  ;;  %6796 = vrcp.f32 %v4418_v11  ;;  %v9100_v5 = vadd.f32 %v9030_v46, %v3970_v45 }
 0x702   :  { %v6779_v62 = vpop.eup %6778  ;;  %v4668_v29 = vsel %vm2143_vm2, %v4604_v15, 0.0  ;;  %v4417_v36 = vadd.f32 1.0, %v6777_v4  ;;  %6798 = vpow2.f32 %v5405_v49  ;;  %v5408_v34 = vmul.f32 -1.442695, %v9096_v37 }
 0x703   :  { %v6781_v9 = vpop.eup %6780  ;;  %v4667_v3 = vsel %vm2143_vm2, %v4603_v50, 0.0  ;;  %v4420_v57 = vadd.f32 1.0, %v6779_v62  ;;  %v5407_v18 = vmul.f32 -1.442695, %v9100_v5  ;;  %v6084_v0 = vpop.f32.mrb[82].mxu0 }
 0x704   :  { %v6783_v53 = vpop.eup %6782  ;;  %v4669_v27 = vadd.f32 %v4668_v29, %v4667_v3  ;;  %6800 = vrcp.f32 %v4417_v36  ;;  %v9107_v58 = vadd.f32 %v6084_v0, %v9030_v46  ;;  %v3980_v10 = vpop.f32.mrb[83].mxu0  ;;  %v4606_v23 = vmul.f32 %v6781_v9, %v9041_v33 }
 0x705   :  { %v6785_v20 = vpop.eup %6784  ;;  %v4605_v55 = vmul.f32 %v6783_v53, %v9044_v60  ;;  %6802 = vrcp.f32 %v4420_v57  ;;  %v9112_v2 = vadd.f32 %v9030_v46, %v3980_v10 }
 0x706   :  { %v6787_v22 = vpop.eup %6786  ;;  %v4419_v8 = vadd.f32 1.0, %v6785_v20  ;;  %6804 = vpow2.f32 %v5408_v34  ;;  %v5410_v41 = vmul.f32 -1.442695, %v9107_v58  ;;  %v4672_v56 = vsel %vm2143_vm2, %v4606_v23, 0.0 }
 0x707   :  { %v6789_v59 = vpop.eup %6788  ;;  %v4670_v6 = vsel %vm2143_vm2, %v4605_v55, 0.0  ;;  %v4422_v30 = vadd.f32 1.0, %v6787_v22  ;;  %6806 = vpow2.f32 %v5407_v18  ;;  %v5409_v52 = vmul.f32 -1.442695, %v9112_v2  ;;  %v6087_v13 = vpop.f32.mrb[84].mxu0 }
 0x708   :  { %v6791_v33 = vpop.eup %6790  ;;  %v4671_v24 = vadd.f32 %v4670_v6, %v4669_v27  ;;  %v4608_v60 = vmul.f32 %v6789_v59, %v9055_v32  ;;  %6808 = vrcp.f32 %v4419_v8  ;;  %v9119_v19 = vadd.f32 %v6087_v13, %v9030_v46  ;;  %v3990_v43 = vpop.f32.mrb[85].mxu0 }
 0x709   :  { %v6793_v16 = vpop.eup %6792  ;;  %v4607_v25 = vmul.f32 %v6791_v33, %v9058_v14  ;;  %6810 = vrcp.f32 %v4422_v30  ;;  %v9124_v42 = vadd.f32 %v9030_v46, %v3990_v43 }
 0x70a   :  { %v6795_v51 = vpop.eup %6794  ;;  %v4673_v54 = vadd.f32 %v4672_v56, %v4671_v24  ;;  %v4421_v28 = vadd.f32 1.0, %v6793_v16  ;;  %6812 = vpow2.f32 %v5410_v41  ;;  %v5412_v7 = vmul.f32 -1.442695, %v9119_v19 }
 0x70b   :  { %v6797_v17 = vpop.eup %6796  ;;  %v4674_v32 = vsel %vm2143_vm2, %v4607_v25, 0.0  ;;  %v4424_v61 = vadd.f32 1.0, %v6795_v51  ;;  %6814 = vpow2.f32 %v5409_v52  ;;  %v6090_v47 = vpop.f32.mrb[86].mxu0  ;;  %v4676_v40 = vsel %vm2143_vm2, %v4608_v60, 0.0 }
 0x70c   :  { %v6799_v12 = vpop.eup %6798  ;;  %v4675_v14 = vadd.f32 %v4674_v32, %v4673_v54  ;;  %6816 = vrcp.f32 %v4421_v28  ;;  %v5411_v11 = vmul.f32 -1.442695, %v9124_v42  ;;  %v4000_v49 = vpop.f32.mrb[87].mxu0  ;;  %v9131_v44 = vadd.f32 %v6090_v47, %v9030_v46 }
 0x70d   :  { %6818 = vrcp.f32 %v4424_v61  ;;  %v4423_v38 = vadd.f32 1.0, %v6799_v12  ;;  %v9134_v15 = vadd.f32 %v9030_v46, %v4000_v49  ;;  %v4610_v4 = vmul.f32 %v6797_v17, %v9063_v26 }
 0x70e   :  { %v6801_v45 = vpop.eup %6800  ;;  %v4677_v50 = vadd.f32 %v4676_v40, %v4675_v14  ;;  %6820 = vpow2.f32 %v5412_v7  ;;  %v5414_v36 = vmul.f32 -1.442695, %v9131_v44 }
 0x70f   :  { %v6803_v62 = vpop.eup %6802  ;;  %v4609_v29 = vmul.f32 %v6801_v45, %v9066_v31  ;;  %6822 = vrcp.f32 %v4423_v38  ;;  %v5413_v34 = vmul.f32 -1.442695, %v9134_v15  ;;  %v6093_v9 = vpop.f32.mrb[88].mxu0  ;;  %v4680_v20 = vsel %vm2143_vm2, %v4610_v4, 0.0 }
 0x710   :  { %v6805_v3 = vpop.eup %6804  ;;  %v4612_v57 = vmul.f32 %v6803_v62, %v9071_v35  ;;  %6824 = vpow2.f32 %v5411_v11  ;;  %v9142_v18 = vadd.f32 %v6093_v9, %v9030_v46  ;;  %v4010_v0 = vpop.f32.mrb[89].mxu0 }
 0x711   :  { %v6807_v26 = vpop.eup %6806  ;;  %v4678_v53 = vsel %vm2143_vm2, %v4609_v29, 0.0  ;;  %v4426_v27 = vadd.f32 1.0, %v6805_v3  ;;  %6826 = vpow2.f32 %v5414_v36  ;;  %v9146_v31 = vadd.f32 %v9030_v46, %v4010_v0 }
 0x712   :  { %v6809_v10 = vpop.eup %6808  ;;  %v4679_v23 = vadd.f32 %v4678_v53, %v4677_v50  ;;  %v4425_v55 = vadd.f32 1.0, %v6807_v26  ;;  %6828 = vpow2.f32 %v5413_v34  ;;  %v5416_v8 = vmul.f32 -1.442695, %v9142_v18 }
 0x713   :  { %v6811_v35 = vpop.eup %6810  ;;  %v4611_v22 = vmul.f32 %v6809_v10, %v9074_v21  ;;  %6830 = vrcp.f32 %v4426_v27  ;;  %v5415_v41 = vmul.f32 -1.442695, %v9146_v31  ;;  %v6096_v59 = vpop.f32.mrb[90].mxu0  ;;  %v4684_v30 = vsel %vm2143_vm2, %v4612_v57, 0.0 }
 0x714   :  { %v6813_v6 = vpop.eup %6812  ;;  %v4681_v52 = vadd.f32 %v4680_v20, %v4679_v23  ;;  %6832 = vrcp.f32 %v4425_v55  ;;  %v9154_v13 = vadd.f32 %v6096_v59, %v9030_v46  ;;  %v4020_v33 = vpop.f32.mrb[91].mxu0  ;;  %v4614_v25 = vmul.f32 %v6811_v35, %v9079_v1 }
 0x715   :  { %v6815_v24 = vpop.eup %6814  ;;  %v4682_v60 = vsel %vm2143_vm2, %v4611_v22, 0.0  ;;  %v4428_v43 = vadd.f32 1.0, %v6813_v6  ;;  %6834 = vpow2.f32 %v5416_v8  ;;  %v9158_v21 = vadd.f32 %v9030_v46, %v4020_v33 }
 0x716   :  { %v6817_v16 = vpop.eup %6816  ;;  %v4683_v56 = vadd.f32 %v4682_v60, %v4681_v52  ;;  %v4427_v51 = vadd.f32 1.0, %v6815_v24  ;;  %6836 = vpow2.f32 %v5415_v41  ;;  %v5418_v17 = vmul.f32 -1.442695, %v9154_v13 }
 0x717   :  { %v6819_v54 = vpop.eup %6818  ;;  %v4613_v28 = vmul.f32 %v6817_v16, %v9082_v63  ;;  %6838 = vrcp.f32 %v4428_v43  ;;  %v5417_v32 = vmul.f32 -1.442695, %v9158_v21  ;;  %v6099_v61 = vpop.f32.mrb[92].mxu0  ;;  %v4688_v62 = vsel %vm2143_vm2, %v4614_v25, 0.0 }
 0x718   :  { %v6821_v7 = vpop.eup %6820  ;;  %v4685_v47 = vadd.f32 %v4684_v30, %v4683_v56  ;;  %6840 = vrcp.f32 %v4427_v51  ;;  %v9165_v12 = vadd.f32 %v6099_v61, %v9030_v46  ;;  %v4030_v40 = vpop.f32.mrb[93].mxu0  ;;  %v4616_v45 = vmul.f32 %v6819_v54, %v9087_v39 }
 0x719   :  { %v6823_v14 = vpop.eup %6822  ;;  %v4686_v1 = vsel %vm2143_vm2, %v4613_v28, 0.0  ;;  %v4430_v11 = vadd.f32 1.0, %v6821_v7  ;;  %6842 = vpow2.f32 %v5418_v17  ;;  %v9169_v63 = vadd.f32 %v9030_v46, %v4030_v40 }
 0x71a   :  { %v6825_v49 = vpop.eup %6824  ;;  %v4687_v38 = vadd.f32 %v4686_v1, %v4685_v47  ;;  %v4615_v4 = vmul.f32 %v6823_v14, %v9090_v48  ;;  %6844 = vpow2.f32 %v5417_v32  ;;  %v5420_v36 = vmul.f32 -1.442695, %v9165_v12 }
 0x71b   :  { %v6827_v50 = vpop.eup %6826  ;;  %6846 = vrcp.f32 %v4430_v11  ;;  %v4429_v29 = vadd.f32 1.0, %v6825_v49  ;;  %v6102_v34 = vpop.f32.mrb[94].mxu0  ;;  %v5419_v27 = vmul.f32 -1.442695, %v9169_v63  ;;  %v4692_v23 = vsel %vm2143_vm2, %v4616_v45, 0.0 }
 0x71c   :  { %v6829_v9 = vpop.eup %6828  ;;  %v4689_v3 = vadd.f32 %v4688_v62, %v4687_v38  ;;  %v4690_v57 = vsel %vm2143_vm2, %v4615_v4, 0.0  ;;  %v4432_v0 = vadd.f32 1.0, %v6827_v50  ;;  %v9177_v26 = vadd.f32 %v6102_v34, %v9030_v46  ;;  %v4040_v39 = vpop.f32.mrb[95].mxu0 }
 0x71d   :  { %v6831_v53 = vpop.eup %6830  ;;  %6848 = vrcp.f32 %v4429_v29  ;;  %v4431_v48 = vadd.f32 1.0, %v6829_v9  ;;  %v9181_v10 = vadd.f32 %v9030_v46, %v4040_v39 }
 0x71e   :  { %v6833_v20 = vpop.eup %6832  ;;  %v4691_v55 = vadd.f32 %v4690_v57, %v4689_v3  ;;  %6850 = vrcp.f32 %v4432_v0  ;;  %v4618_v22 = vmul.f32 %v6831_v53, %v9096_v37  ;;  %v5422_v41 = vmul.f32 -1.442695, %v9177_v26 }
 0x71f   :  { %v6835_v35 = vpop.eup %6834  ;;  %v4617_v8 = vmul.f32 %v6833_v20, %v9100_v5  ;;  %6852 = vrcp.f32 %v4431_v48  ;;  %v6105_v59 = vpop.f32.mrb[96].mxu0  ;;  %v5421_v33 = vmul.f32 -1.442695, %v9181_v10 }
 0x720   :  { %v6837_v6 = vpop.eup %6836  ;;  %v4693_v30 = vadd.f32 %v4692_v23, %v4691_v55  ;;  %v4434_v52 = vadd.f32 1.0, %v6835_v35  ;;  %6854 = vpow2.f32 %v5420_v36  ;;  %v4050_v24 = vpop.f32.mrb[97].mxu0  ;;  %v9190_v37 = vadd.f32 %v6105_v59, %v9030_v46 }
 0x721   :  { %v6839_v60 = vpop.eup %6838  ;;  %v4694_v43 = vsel %vm2143_vm2, %v4617_v8, 0.0  ;;  %v4433_v16 = vadd.f32 1.0, %v6837_v6  ;;  %6856 = vpow2.f32 %v5419_v27  ;;  %v9193_v25 = vadd.f32 %v9030_v46, %v4050_v24 }
 0x722   :  { %v6841_v5 = vpop.eup %6840  ;;  %v4695_v56 = vadd.f32 %v4694_v43, %v4693_v30  ;;  %6858 = vrcp.f32 %v4434_v52  ;;  %v4696_v54 = vsel %vm2143_vm2, %v4618_v22, 0.0  ;;  %v4620_v28 = vmul.f32 %v6839_v60, %v9107_v58 }
 0x723   :  { %v6843_v51 = vpop.eup %6842  ;;  %v4619_v17 = vmul.f32 %v6841_v5, %v9112_v2  ;;  %6860 = vrcp.f32 %v4433_v16  ;;  %v6108_v32 = vpop.f32.mrb[98].mxu0  ;;  %v5424_v40 = vmul.f32 -1.442695, %v9190_v37  ;;  %v5423_v38 = vmul.f32 -1.442695, %v9193_v25 }
 0x724   :  { %v6845_v61 = vpop.eup %6844  ;;  %v4697_v7 = vadd.f32 %v4696_v54, %v4695_v56  ;;  %v4436_v47 = vadd.f32 1.0, %v6843_v51  ;;  %6862 = vpow2.f32 %v5422_v41  ;;  %v4060_v14 = vpop.f32.mrb[99].mxu0  ;;  %v9203_v2 = vadd.f32 %v6108_v32, %v9030_v46 }
 0x725   :  { %v6847_v1 = vpop.eup %6846  ;;  %v4698_v11 = vsel %vm2143_vm2, %v4619_v17, 0.0  ;;  %v4435_v49 = vadd.f32 1.0, %v6845_v61  ;;  %6864 = vpow2.f32 %v5421_v33  ;;  %v4700_v50 = vsel %vm2143_vm2, %v4620_v28, 0.0 }
 0x726   :  { %v4699_v45 = vadd.f32 %v4698_v11, %v4697_v7  ;;  %v4622_v58 = vmul.f32 %v6847_v1, %v9119_v19  ;;  %6866 = vrcp.f32 %v4436_v47  ;;  %v9207_v62 = vadd.f32 %v9030_v46, %v4060_v14 }
 0x727   :  { %v6849_v4 = vpop.eup %6848  ;;  %6868 = vrcp.f32 %v4435_v49  ;;  %v6111_v29 = vpop.f32.mrb[100].mxu0  ;;  %v5426_v0 = vmul.f32 -1.442695, %v9203_v2 }
 0x728   :  { %v6851_v36 = vpop.eup %6850  ;;  %v4621_v34 = vmul.f32 %v6849_v4, %v9124_v42  ;;  %v4701_v9 = vadd.f32 %v4700_v50, %v4699_v45  ;;  %6870 = vpow2.f32 %v5424_v40  ;;  %v4070_v3 = vpop.f32.mrb[101].mxu0  ;;  %v4704_v19 = vsel %vm2143_vm2, %v4622_v58, 0.0 }
 0x729   :  { %v6853_v57 = vpop.eup %6852  ;;  %6872 = vpow2.f32 %v5423_v38  ;;  %v5425_v39 = vmul.f32 -1.442695, %v9207_v62  ;;  %v9216_v20 = vadd.f32 %v6111_v29, %v9030_v46  ;;  %v9219_v42 = vadd.f32 %v9030_v46, %v4070_v3 }
 0x72a   :  { %v6855_v53 = vpop.eup %6854  ;;  %v4702_v48 = vsel %vm2143_vm2, %v4621_v34, 0.0  ;;  %v4623_v27 = vmul.f32 %v6853_v57, %v9134_v15  ;;  %v4624_v35 = vmul.f32 %v6851_v36, %v9131_v44  ;;  %6874 = vpow2.f32 %v5426_v0 }
 0x72b   :  { %v6857_v23 = vpop.eup %6856  ;;  %v4703_v55 = vadd.f32 %v4702_v48, %v4701_v9  ;;  %v4438_v22 = vadd.f32 1.0, %v6855_v53  ;;  %v6114_v8 = vpop.f32.mrb[102].mxu0  ;;  %6876 = vpow2.f32 %v5425_v39  ;;  %v5428_v15 = vmul.f32 -1.442695, %v9216_v20 }
 0x72c   :  { %v6859_v41 = vpop.eup %6858  ;;  %v4706_v59 = vsel %vm2143_vm2, %v4623_v27, 0.0  ;;  %v4437_v6 = vadd.f32 1.0, %v6857_v23  ;;  %v4080_v30 = vpop.f32.mrb[103].mxu0  ;;  %v5427_v60 = vmul.f32 -1.442695, %v9219_v42  ;;  %v9228_v16 = vadd.f32 %v6114_v8, %v9030_v46 }
 0x72d   :  { %v6861_v52 = vpop.eup %6860  ;;  %v4705_v33 = vadd.f32 %v4704_v19, %v4703_v55  ;;  %v4626_v24 = vmul.f32 %v6859_v41, %v9142_v18  ;;  %6878 = vrcp.f32 %v4438_v22  ;;  %v9231_v5 = vadd.f32 %v9030_v46, %v4080_v30 }
 0x72e   :  { %v6863_v43 = vpop.eup %6862  ;;  %v4625_v44 = vmul.f32 %v6861_v52, %v9146_v31  ;;  %6880 = vrcp.f32 %v4437_v6  ;;  %v4708_v51 = vsel %vm2143_vm2, %v4624_v35, 0.0  ;;  %v5430_v31 = vmul.f32 -1.442695, %v9228_v16 }
 0x72f   :  { %v6865_v56 = vpop.eup %6864  ;;  %v4707_v54 = vadd.f32 %v4706_v59, %v4705_v33  ;;  %v4440_v28 = vadd.f32 1.0, %v6863_v43  ;;  %6882 = vpow2.f32 %v5428_v15  ;;  %v6117_v18 = vpop.f32.mrb[104].mxu0  ;;  %v4712_v40 = vsel %vm2143_vm2, %v4626_v24, 0.0 }
 0x730   :  { %v6867_v17 = vpop.eup %6866  ;;  %v4710_v32 = vsel %vm2143_vm2, %v4625_v44, 0.0  ;;  %v4439_v61 = vadd.f32 1.0, %v6865_v56  ;;  %6884 = vpow2.f32 %v5427_v60  ;;  %v4090_v7 = vpop.f32.mrb[105].mxu0  ;;  %v5429_v1 = vmul.f32 -1.442695, %v9231_v5 }
 0x731   :  { %v6869_v47 = vpop.eup %6868  ;;  %v4709_v14 = vadd.f32 %v4708_v51, %v4707_v54  ;;  %6886 = vrcp.f32 %v4440_v28  ;;  %v9240_v38 = vadd.f32 %v6117_v18, %v9030_v46  ;;  %v9243_v45 = vadd.f32 %v9030_v46, %v4090_v7 }
 0x732   :  { %v6871_v11 = vpop.eup %6870  ;;  %v4627_v49 = vmul.f32 %v6869_v47, %v9158_v21  ;;  %6888 = vrcp.f32 %v4439_v61  ;;  %v4628_v50 = vmul.f32 %v6867_v17, %v9154_v13 }
 0x733   :  { %v6873_v58 = vpop.eup %6872  ;;  %v4711_v4 = vadd.f32 %v4710_v32, %v4709_v14  ;;  %v4442_v29 = vadd.f32 1.0, %v6871_v11  ;;  %6890 = vpow2.f32 %v5430_v31  ;;  %v6120_v36 = vpop.f32.mrb[106].mxu0  ;;  %v5432_v21 = vmul.f32 -1.442695, %v9240_v38 }
 0x734   :  { %v4714_v34 = vsel %vm2143_vm2, %v4627_v49, 0.0  ;;  %v4441_v9 = vadd.f32 1.0, %v6873_v58  ;;  %6892 = vpow2.f32 %v5429_v1  ;;  %v4100_v3 = vpop.f32.mrb[107].mxu0  ;;  %v6875_v57 = vpop.eup %6874  ;;  %v9249_v0 = vadd.f32 %v6120_v36, %v9030_v46 }
 0x735   :  { %v4713_v19 = vadd.f32 %v4712_v40, %v4711_v4  ;;  %6894 = vrcp.f32 %v4442_v29  ;;  %v6877_v39 = vpop.eup %6876  ;;  %v4444_v53 = vadd.f32 1.0, %v6875_v57  ;;  %v5431_v13 = vmul.f32 -1.442695, %v9243_v45 }
 0x736   :  { %6896 = vrcp.f32 %v4441_v9  ;;  %v9253_v48 = vadd.f32 %v9030_v46, %v4100_v3  ;;  %v4443_v55 = vadd.f32 1.0, %v6877_v39  ;;  %v5434_v35 = vmul.f32 -1.442695, %v9249_v0 }
 0x737   :  { %v6879_v27 = vpop.eup %6878  ;;  %v4715_v23 = vadd.f32 %v4714_v34, %v4713_v19  ;;  %6898 = vpow2.f32 %v5432_v21  ;;  %v6123_v22 = vpop.f32.mrb[108].mxu0  ;;  %v4716_v41 = vsel %vm2143_vm2, %v4628_v50, 0.0 }
 0x738   :  { %v6881_v8 = vpop.eup %6880  ;;  %v4630_v59 = vmul.f32 %v6879_v27, %v9165_v12  ;;  %6900 = vrcp.f32 %v4444_v53  ;;  %v9259_v6 = vadd.f32 %v6123_v22, %v9030_v46  ;;  %v4110_v15 = vpop.f32.mrb[109].mxu0  ;;  %v5433_v12 = vmul.f32 -1.442695, %v9253_v48 }
 0x739   :  { %v6883_v30 = vpop.eup %6882  ;;  %v4629_v52 = vmul.f32 %v6881_v8, %v9169_v63  ;;  %v4717_v33 = vadd.f32 %v4716_v41, %v4715_v23  ;;  %6902 = vrcp.f32 %v4443_v55  ;;  %v9263_v24 = vadd.f32 %v9030_v46, %v4110_v15 }
 0x73a   :  { %v6885_v60 = vpop.eup %6884  ;;  %v4720_v43 = vsel %vm2143_vm2, %v4630_v59, 0.0  ;;  %v4446_v44 = vadd.f32 1.0, %v6883_v30  ;;  %6904 = vpow2.f32 %v5431_v13  ;;  %v5436_v28 = vmul.f32 -1.442695, %v9259_v6 }
 0x73b   :  { %v6887_v56 = vpop.eup %6886  ;;  %v4718_v51 = vsel %vm2143_vm2, %v4629_v52, 0.0  ;;  %v4445_v54 = vadd.f32 1.0, %v6885_v60  ;;  %6906 = vpow2.f32 %v5434_v35  ;;  %v6126_v63 = vpop.f32.mrb[110].mxu0  ;;  %v5435_v40 = vmul.f32 -1.442695, %v9263_v24 }
 0x73c   :  { %v6889_v18 = vpop.eup %6888  ;;  %v4719_v17 = vadd.f32 %v4718_v51, %v4717_v33  ;;  %v4632_v32 = vmul.f32 %v6887_v56, %v9177_v26  ;;  %6908 = vrcp.f32 %v4446_v44  ;;  %v9271_v61 = vadd.f32 %v6126_v63, %v9030_v46  ;;  %v4120_v31 = vpop.f32.mrb[111].mxu0 }
 0x73d   :  { %v6891_v7 = vpop.eup %6890  ;;  %v4631_v47 = vmul.f32 %v6889_v18, %v9181_v10  ;;  %6910 = vrcp.f32 %v4445_v54  ;;  %v9276_v14 = vadd.f32 %v9030_v46, %v4120_v31 }
 0x73e   :  { %v6893_v1 = vpop.eup %6892  ;;  %v4724_v11 = vsel %vm2143_vm2, %v4632_v32, 0.0  ;;  %v4721_v49 = vadd.f32 %v4720_v43, %v4719_v17  ;;  %v4448_v58 = vadd.f32 1.0, %v6891_v7  ;;  %6912 = vpow2.f32 %v5433_v12 }
 0x73f   :  { %v6895_v26 = vpop.eup %6894  ;;  %v4722_v4 = vsel %vm2143_vm2, %v4631_v47, 0.0  ;;  %v4447_v50 = vadd.f32 1.0, %v6893_v1  ;;  %6914 = vpow2.f32 %v5436_v28  ;;  %v5438_v29 = vmul.f32 -1.442695, %v9271_v61  ;;  %v6129_v10 = vpop.f32.mrb[112].mxu0 }
 0x740   :  { %v6897_v36 = vpop.eup %6896  ;;  %v4723_v34 = vadd.f32 %v4722_v4, %v4721_v49  ;;  %v4634_v9 = vmul.f32 %v6895_v26, %v9190_v37  ;;  %6916 = vrcp.f32 %v4448_v58  ;;  %v5437_v21 = vmul.f32 -1.442695, %v9276_v14  ;;  %v4130_v3 = vpop.f32.mrb[113].mxu0 }
 0x741   :  { %v6899_v57 = vpop.eup %6898  ;;  %v4633_v19 = vmul.f32 %v6897_v36, %v9193_v25  ;;  %6918 = vrcp.f32 %v4447_v50  ;;  %v9285_v39 = vadd.f32 %v6129_v10, %v9030_v46  ;;  %v9288_v53 = vadd.f32 %v9030_v46, %v4130_v3 }
 0x742   :  { %v6901_v13 = vpop.eup %6900  ;;  %v4725_v27 = vadd.f32 %v4724_v11, %v4723_v34  ;;  %v4450_v23 = vadd.f32 1.0, %v6899_v57  ;;  %6920 = vpow2.f32 %v5435_v40  ;;  %v4728_v41 = vsel %vm2143_vm2, %v4634_v9, 0.0 }
 0x743   :  { %v6903_v55 = vpop.eup %6902  ;;  %v4726_v37 = vsel %vm2143_vm2, %v4633_v19, 0.0  ;;  %v4636_v35 = vmul.f32 %v6901_v13, %v9203_v2  ;;  %6922 = vpow2.f32 %v5438_v29  ;;  %v5440_v22 = vmul.f32 -1.442695, %v9285_v39  ;;  %v6132_v25 = vpop.f32.mrb[114].mxu0 }
 0x744   :  { %v6905_v8 = vpop.eup %6904  ;;  %v4727_v59 = vadd.f32 %v4726_v37, %v4725_v27  ;;  %v4635_v15 = vmul.f32 %v6903_v55, %v9207_v62  ;;  %6924 = vrcp.f32 %v4450_v23  ;;  %v4140_v30 = vpop.f32.mrb[115].mxu0  ;;  %v5439_v60 = vmul.f32 -1.442695, %v9288_v53 }
 0x745   :  { %v6907_v52 = vpop.eup %6906  ;;  %v4449_v33 = vadd.f32 1.0, %v6905_v8  ;;  %6926 = vpow2.f32 %v5437_v21  ;;  %v9297_v43 = vadd.f32 %v6132_v25, %v9030_v46  ;;  %v4732_v54 = vsel %vm2143_vm2, %v4636_v35, 0.0 }
 0x746   :  { %v6909_v2 = vpop.eup %6908  ;;  %v4729_v44 = vadd.f32 %v4728_v41, %v4727_v59  ;;  %v4730_v12 = vsel %vm2143_vm2, %v4635_v15, 0.0  ;;  %v4452_v56 = vadd.f32 1.0, %v6907_v52  ;;  %6928 = vpow2.f32 %v5440_v22 }
 0x747   :  { %v6911_v51 = vpop.eup %6910  ;;  %6930 = vrcp.f32 %v4449_v33  ;;  %v5442_v62 = vmul.f32 -1.442695, %v9297_v43  ;;  %v9303_v28 = vadd.f32 %v9030_v46, %v4140_v30  ;;  %v6135_v63 = vpop.f32.mrb[116].mxu0  ;;  %v4638_v40 = vmul.f32 %v6909_v2, %v9216_v20 }
 0x748   :  { %v6913_v18 = vpop.eup %6912  ;;  %v4731_v17 = vadd.f32 %v4730_v12, %v4729_v44  ;;  %v4637_v32 = vmul.f32 %v6911_v51, %v9219_v42  ;;  %6932 = vrcp.f32 %v4452_v56  ;;  %v9307_v31 = vadd.f32 %v6135_v63, %v9030_v46  ;;  %v4150_v7 = vpop.f32.mrb[117].mxu0  ;;  %v9340_v63 = vld [vmem:[%s9437_s2 + $0x10] ss:$0 sm:$0xff] }
 0x749   :  { %v6915_v47 = vpop.eup %6914  ;;  %v4451_v1 = vadd.f32 1.0, %v6913_v18  ;;  %6934 = vpow2.f32 %v5439_v60  ;;  %v5441_v11 = vmul.f32 -1.442695, %v9303_v28  ;;  %v9315_v10 = vadd.f32 %v9030_v46, %v4150_v7 }
 0x74a   :  { %v6917_v49 = vpop.eup %6916  ;;  %v4733_v58 = vadd.f32 %v4732_v54, %v4731_v17  ;;  %v4734_v26 = vsel %vm2143_vm2, %v4637_v32, 0.0  ;;  %v4454_v4 = vadd.f32 1.0, %v6915_v47  ;;  %6936 = vpow2.f32 %v5442_v62 }
 0x74b   :  { %v6919_v50 = vpop.eup %6918  ;;  %v4640_v42 = vmul.f32 %v6917_v49, %v9228_v16  ;;  %6938 = vrcp.f32 %v4451_v1  ;;  %v5444_v29 = vmul.f32 -1.442695, %v9307_v31  ;;  %v6138_v20 = vpop.f32.mrb[118].mxu0  ;;  %v4736_v19 = vsel %vm2143_vm2, %v4638_v40, 0.0 }
 0x74c   :  { %v6921_v36 = vpop.eup %6920  ;;  %v4735_v34 = vadd.f32 %v4734_v26, %v4733_v58  ;;  %v4639_v9 = vmul.f32 %v6919_v50, %v9231_v5  ;;  %6940 = vrcp.f32 %v4454_v4  ;;  %v9319_v21 = vadd.f32 %v6138_v20, %v9030_v46  ;;  %v4160_v3 = vpop.f32.mrb[119].mxu0 }
 0x74d   :  { %v6923_v57 = vpop.eup %6922  ;;  %v4453_v16 = vadd.f32 1.0, %v6921_v36  ;;  %6942 = vpow2.f32 %v5441_v11  ;;  %v5443_v13 = vmul.f32 -1.442695, %v9315_v10  ;;  %v4740_v5 = vsel %vm2143_vm2, %v4640_v42, 0.0 }
 0x74e   :  { %v6925_v27 = vpop.eup %6924  ;;  %v4737_v23 = vadd.f32 %v4736_v19, %v4735_v34  ;;  %v4738_v55 = vsel %vm2143_vm2, %v4639_v9, 0.0  ;;  %v4456_v37 = vadd.f32 1.0, %v6923_v57  ;;  %6944 = vpow2.f32 %v5444_v29 }
 0x74f   :  { %v6927_v35 = vpop.eup %6926  ;;  %6946 = vrcp.f32 %v4453_v16  ;;  %v5446_v22 = vmul.f32 -1.442695, %v9319_v21  ;;  %v9327_v25 = vadd.f32 %v9030_v46, %v4160_v3  ;;  %v6141_v8 = vpop.f32.mrb[120].mxu0  ;;  %v4642_v60 = vmul.f32 %v6925_v27, %v9240_v38 }
 0x750   :  { %v6929_v41 = vpop.eup %6928  ;;  %v4739_v59 = vadd.f32 %v4738_v55, %v4737_v23  ;;  %6948 = vrcp.f32 %v4456_v37  ;;  %v4455_v15 = vadd.f32 1.0, %v6927_v35  ;;  %v9330_v30 = vadd.f32 %v6141_v8, %v9030_v46  ;;  %v4170_v52 = vpop.f32.mrb[121].mxu0 }
 0x751   :  { %v6931_v33 = vpop.eup %6930  ;;  %v4458_v2 = vadd.f32 1.0, %v6929_v41  ;;  %6950 = vpow2.f32 %v5443_v13  ;;  %v5445_v44 = vmul.f32 -1.442695, %v9327_v25  ;;  %v9343_v38 = vadd.f32 %v9340_v63, %v4170_v52 }
 0x752   :  { %v6933_v12 = vpop.eup %6932  ;;  %v4641_v56 = vmul.f32 %v6931_v33, %v9243_v45  ;;  %v4741_v51 = vadd.f32 %v4740_v5, %v4739_v59  ;;  %6952 = vrcp.f32 %v4455_v15  ;;  %v5448_v46 = vmul.f32 -1.442695, %v9330_v30 }
 0x753   :  { %v6935_v54 = vpop.eup %6934  ;;  %v4644_v62 = vmul.f32 %v6933_v12, %v9249_v0  ;;  %6954 = vrcp.f32 %v4458_v2  ;;  %v6144_v18 = vpop.f32.mrb[122].mxu0  ;;  %v4744_v40 = vsel %vm2143_vm2, %v4642_v60, 0.0  ;;  %v5447_v4 = vmul.f32 -1.442695, %v9343_v38 }
 0x754   :  { %v6937_v17 = vpop.eup %6936  ;;  %v4742_v45 = vsel %vm2143_vm2, %v4641_v56, 0.0  ;;  %v4457_v32 = vadd.f32 1.0, %v6935_v54  ;;  %6956 = vpow2.f32 %v5446_v22  ;;  %v9347_v7 = vadd.f32 %v9340_v63, %v6144_v18  ;;  %v4180_v0 = vpop.f32.mrb[123].mxu0 }
 0x755   :  { %v6939_v47 = vpop.eup %6938  ;;  %v4743_v1 = vadd.f32 %v4742_v45, %v4741_v51  ;;  %v4460_v11 = vadd.f32 1.0, %v6937_v17  ;;  %6958 = vpow2.f32 %v5445_v44  ;;  %v4748_v58 = vsel %vm2143_vm2, %v4644_v62, 0.0 }
 0x756   :  { %v6941_v49 = vpop.eup %6940  ;;  %v4643_v26 = vmul.f32 %v6939_v47, %v9253_v48  ;;  %6960 = vrcp.f32 %v4457_v32  ;;  %v5450_v29 = vmul.f32 -1.442695, %v9347_v7  ;;  %v9355_v20 = vadd.f32 %v9340_v63, %v4180_v0 }
 0x757   :  { %v6943_v50 = vpop.eup %6942  ;;  %v4745_v42 = vadd.f32 %v4744_v40, %v4743_v1  ;;  %6962 = vrcp.f32 %v4460_v11  ;;  %v6147_v36 = vpop.f32.mrb[124].mxu0  ;;  %v4646_v13 = vmul.f32 %v6941_v49, %v9259_v6 }
 0x758   :  { %v6945_v34 = vpop.eup %6944  ;;  %v4746_v9 = vsel %vm2143_vm2, %v4643_v26, 0.0  ;;  %v4459_v3 = vadd.f32 1.0, %v6943_v50  ;;  %6964 = vpow2.f32 %v5448_v46  ;;  %v9359_v57 = vadd.f32 %v9340_v63, %v6147_v36  ;;  %v4190_v48 = vpop.f32.mrb[125].mxu0 }
 0x759   :  { %v6947_v19 = vpop.eup %6946  ;;  %v4747_v16 = vadd.f32 %v4746_v9, %v4745_v42  ;;  %v4462_v27 = vadd.f32 1.0, %v6945_v34  ;;  %6966 = vpow2.f32 %v5447_v4  ;;  %v5449_v37 = vmul.f32 -1.442695, %v9355_v20 }
 0x75a   :  { %v6949_v23 = vpop.eup %6948  ;;  %v4645_v55 = vmul.f32 %v6947_v19, %v9263_v24  ;;  %6968 = vrcp.f32 %v4459_v3  ;;  %v5452_v35 = vmul.f32 -1.442695, %v9359_v57  ;;  %v9367_v41 = vadd.f32 %v9340_v63, %v4190_v48 }
 0x75b   :  { %v6951_v5 = vpop.eup %6950  ;;  %v4749_v22 = vadd.f32 %v4748_v58, %v4747_v16  ;;  %v4648_v8 = vmul.f32 %v6949_v23, %v9271_v61  ;;  %6970 = vrcp.f32 %v4462_v27  ;;  %v6150_v59 = vpop.f32.mrb[126].mxu0  ;;  %v4752_v12 = vsel %vm2143_vm2, %v4646_v13, 0.0 }
 0x75c   :  { %v6953_v6 = vpop.eup %6952  ;;  %v4750_v15 = vsel %vm2143_vm2, %v4645_v55, 0.0  ;;  %v4461_v52 = vadd.f32 1.0, %v6951_v5  ;;  %6972 = vpow2.f32 %v5450_v29  ;;  %v9371_v24 = vadd.f32 %v9340_v63, %v6150_v59  ;;  %v4200_v33 = vpop.f32.mrb[127].mxu0 }
 0x75d   :  { %v6955_v60 = vpop.eup %6954  ;;  %v4751_v2 = vadd.f32 %v4750_v15, %v4749_v22  ;;  %v4647_v44 = vmul.f32 %v6953_v6, %v9276_v14  ;;  %6974 = vpow2.f32 %v5449_v37  ;;  %v5451_v56 = vmul.f32 -1.442695, %v9367_v41 }
 0x75e   :  { %v6957_v61 = vpop.eup %6956  ;;  %6976 = vrcp.f32 %v4461_v52  ;;  %v5454_v51 = vmul.f32 -1.442695, %v9371_v24  ;;  %v4756_v32 = vsel %vm2143_vm2, %v4648_v8, 0.0  ;;  %v9380_v0 = vadd.f32 %v9340_v63, %v4200_v33 }
 0x75f   :  { %v6959_v54 = vpop.eup %6958  ;;  %v4753_v62 = vadd.f32 %v4752_v12, %v4751_v2  ;;  %v4754_v46 = vsel %vm2143_vm2, %v4647_v44, 0.0  ;;  %v4464_v18 = vadd.f32 1.0, %v6957_v61  ;;  %6978 = vpow2.f32 %v5452_v35  ;;  %v6153_v17 = vpop.f32.mrb[128].mxu0 }
 0x760   :  { %v6961_v45 = vpop.eup %6960  ;;  %v4463_v14 = vadd.f32 1.0, %v6959_v54  ;;  %6980 = vpow2.f32 %v5451_v56  ;;  %v4210_v47 = vpop.f32.mrb[129].mxu0  ;;  %v9384_v49 = vadd.f32 %v9340_v63, %v6153_v17  ;;  %v4650_v26 = vmul.f32 %v6955_v60, %v9285_v39 }
 0x761   :  { %v6963_v40 = vpop.eup %6962  ;;  %v4755_v1 = vadd.f32 %v4754_v46, %v4753_v62  ;;  %v4649_v11 = vmul.f32 %v6961_v45, %v9288_v53  ;;  %6982 = vrcp.f32 %v4464_v18  ;;  %v5453_v4 = vmul.f32 -1.442695, %v9380_v0 }
 0x762   :  { %v6965_v58 = vpop.eup %6964  ;;  %6984 = vrcp.f32 %v4463_v14  ;;  %v9389_v50 = vadd.f32 %v9340_v63, %v4210_v47  ;;  %v5456_v3 = vmul.f32 -1.442695, %v9384_v49  ;;  %v4760_v13 = vsel %vm2143_vm2, %v4650_v26, 0.0 }
 0x763   :  { %v6967_v42 = vpop.eup %6966  ;;  %v4757_v29 = vadd.f32 %v4756_v32, %v4755_v1  ;;  %v4758_v36 = vsel %vm2143_vm2, %v4649_v11, 0.0  ;;  %v4466_v34 = vadd.f32 1.0, %v6965_v58  ;;  %6986 = vpow2.f32 %v5454_v51 }
 0x764   :  { %v6969_v53 = vpop.eup %6968  ;;  %v4465_v9 = vadd.f32 1.0, %v6967_v42  ;;  %6988 = vpow2.f32 %v5453_v4  ;;  %v5455_v16 = vmul.f32 -1.442695, %v9389_v50  ;;  %v4652_v27 = vmul.f32 %v6963_v40, %v9297_v43 }
 0x765   :  { %v6971_v48 = vpop.eup %6970  ;;  %v4759_v19 = vadd.f32 %v4758_v36, %v4757_v29  ;;  %v4651_v39 = vmul.f32 %v6969_v53, %v9303_v28  ;;  %6990 = vrcp.f32 %v4466_v34 }
 0x766   :  { %v6973_v63 = vpop.eup %6972  ;;  %6992 = vrcp.f32 %v4465_v9  ;;  %v4764_v15 = vsel %vm2143_vm2, %v4652_v27, 0.0  ;;  %v4654_v43 = vmul.f32 %v6971_v48, %v9307_v31 }
 0x767   :  { %v6975_v23 = vpop.eup %6974  ;;  %v4761_v55 = vadd.f32 %v4760_v13, %v4759_v19  ;;  %v4762_v37 = vsel %vm2143_vm2, %v4651_v39, 0.0  ;;  %v4468_v35 = vadd.f32 1.0, %v6973_v63  ;;  %6994 = vpow2.f32 %v5456_v3 }
 0x768   :  { %v6977_v5 = vpop.eup %6976  ;;  %v4467_v22 = vadd.f32 1.0, %v6975_v23  ;;  %6996 = vpow2.f32 %v5455_v16  ;;  %v4768_v54 = vsel %vm2143_vm2, %v4654_v43, 0.0 }
 0x769   :  { %v6979_v8 = vpop.eup %6978  ;;  %v4763_v28 = vadd.f32 %v4762_v37, %v4761_v55  ;;  %v4653_v59 = vmul.f32 %v6977_v5, %v9315_v10  ;;  %6998 = vrcp.f32 %v4468_v35 }
 0x76a   :  { %v6981_v6 = vpop.eup %6980  ;;  %7000 = vrcp.f32 %v4467_v22  ;;  %v4470_v52 = vadd.f32 1.0, %v6979_v8 }
 0x76b   :  { %v6983_v33 = vpop.eup %6982  ;;  %v4765_v60 = vadd.f32 %v4764_v15, %v4763_v28  ;;  %v4766_v2 = vsel %vm2143_vm2, %v4653_v59, 0.0  ;;  %v4469_v44 = vadd.f32 1.0, %v6981_v6 }
 0x76c   :  { %v6985_v61 = vpop.eup %6984  ;;  %7002 = vrcp.f32 %v4470_v52  ;;  %v4656_v62 = vmul.f32 %v6983_v33, %v9319_v21 }
 0x76d   :  { %v6987_v12 = vpop.eup %6986  ;;  %v4767_v56 = vadd.f32 %v4766_v2, %v4765_v60  ;;  %v4655_v51 = vmul.f32 %v6985_v61, %v9327_v25  ;;  %7004 = vrcp.f32 %v4469_v44 }
 0x76e   :  { %v6989_v10 = vpop.eup %6988  ;;  %v4472_v31 = vadd.f32 1.0, %v6987_v12  ;;  %v4772_v1 = vsel %vm2143_vm2, %v4656_v62, 0.0 }
 0x76f   :  { %v6991_v46 = vpop.eup %6990  ;;  %v4769_v18 = vadd.f32 %v4768_v54, %v4767_v56  ;;  %v4770_v17 = vsel %vm2143_vm2, %v4655_v51, 0.0  ;;  %v4471_v45 = vadd.f32 1.0, %v6989_v10 }
 0x770   :  { %v6993_v32 = vpop.eup %6992  ;;  %7006 = vrcp.f32 %v4472_v31  ;;  %v4658_v11 = vmul.f32 %v6991_v46, %v9330_v30 }
 0x771   :  { %v6995_v14 = vpop.eup %6994  ;;  %v4771_v47 = vadd.f32 %v4770_v17, %v4769_v18  ;;  %v4657_v40 = vmul.f32 %v6993_v32, %v9343_v38  ;;  %7008 = vrcp.f32 %v4471_v45 }
 0x772   :  { %v6997_v25 = vpop.eup %6996  ;;  %v4474_v58 = vadd.f32 1.0, %v6995_v14  ;;  %v4776_v38 = vsel %vm2143_vm2, %v4658_v11, 0.0 }
 0x773   :  { %v6999_v21 = vpop.eup %6998  ;;  %v4773_v26 = vadd.f32 %v4772_v1, %v4771_v47  ;;  %v4774_v4 = vsel %vm2143_vm2, %v4657_v40, 0.0  ;;  %v4473_v42 = vadd.f32 1.0, %v6997_v25 }
 0x774   :  { %v7001_v29 = vpop.eup %7000  ;;  %7010 = vrcp.f32 %v4474_v58  ;;  %v4660_v9 = vmul.f32 %v6999_v21, %v9347_v7 }
 0x775   :  { %v4775_v36 = vadd.f32 %v4774_v4, %v4773_v26  ;;  %v4659_v34 = vmul.f32 %v7001_v29, %v9355_v20  ;;  %7012 = vrcp.f32 %v4473_v42 }
 0x776   :  { %v7003_v53 = vpop.eup %7002  ;;  %v4780_v63 = vsel %vm2143_vm2, %v4660_v9, 0.0 }
 0x777   :  { %v7005_v3 = vpop.eup %7004  ;;  %v4777_v48 = vadd.f32 %v4776_v38, %v4775_v36  ;;  %v4778_v30 = vsel %vm2143_vm2, %v4659_v34, 0.0  ;;  %v4662_v13 = vmul.f32 %v7003_v53, %v9359_v57 }
 0x778   :  { %v4661_v19 = vmul.f32 %v7005_v3, %v9367_v41 }
 0x779   :  { %v4779_v39 = vadd.f32 %v4778_v30, %v4777_v48  ;;  %v4784_v35 = vsel %vm2143_vm2, %v4662_v13, 0.0 }
 0x77a   :  { %v7007_v16 = vpop.eup %7006  ;;  %v4782_v20 = vsel %vm2143_vm2, %v4661_v19, 0.0 }
 0x77b   :  { %v7009_v27 = vpop.eup %7008  ;;  %v4781_v23 = vadd.f32 %v4780_v63, %v4779_v39  ;;  %v4664_v5 = vmul.f32 %v7007_v16, %v9371_v24  ;;  %v5457_v24 = vld [vmem:[%s9437_s2 + $0x11] ss:$0 sm:$0xff] }
 0x77c   :  { %v4663_v55 = vmul.f32 %v7009_v27, %v9380_v0 }
 0x77d   :  { %v4783_v37 = vadd.f32 %v4782_v20, %v4781_v23  ;;  %v4788_v57 = vsel %vm2143_vm2, %v4664_v5, 0.0 }
 0x77e   :  { %v7011_v7 = vpop.eup %7010  ;;  %v4786_v41 = vsel %vm2143_vm2, %v4663_v55, 0.0 }
 0x77f   :  { %v7013_v22 = vpop.eup %7012  ;;  %v4785_v8 = vadd.f32 %v4784_v35, %v4783_v37  ;;  %v4666_v6 = vmul.f32 %v7011_v7, %v9384_v49 }
 0x780   :  { %v4665_v28 = vmul.f32 %v7013_v22, %v9389_v50 }
 0x781   :  { %v4787_v59 = vadd.f32 %v4786_v41, %v4785_v8  ;;  %v4792_v52 = vsel %vm2143_vm2, %v4666_v6, 0.0 }
 0x782   :  { %v4790_v15 = vsel %vm2143_vm2, %v4665_v28, 0.0 }
 0x783   :  { %v4789_v0 = vadd.f32 %v4788_v57, %v4787_v59 }
 0x785   :  { %v4791_v43 = vadd.f32 %v4790_v15, %v4789_v0 }
 0x787   :  { %v4793_v33 = vadd.f32 %v4792_v52, %v4791_v43 }
 0x789   :  { %v4794_v60 = vmul.f32 0.015625, %v4793_v33 }
 0x78b   :  { %6163 = vmatmul.mubr.msk.f32.vlgmr.msra.gmra.mrb[130].mxu0 %vm2143_vm2, %v4794_v60 }
 0x85e   :  { %v4873_v50 = vpop.f32.mrb[130].mxu0 }
 0x85f   :  { %v4874_v2 = vadd.f32 %v5457_v24, %v4873_v50  ;;  %v6164_v44 = vpop.f32.mrb[131].mxu0 }
 0x861   :  { %4877 = vst [vmem:[%s9435_s3] sm:$0xff] %v4874_v2 }

</bundles_post_ra>
